<compile_context>
chip_gen: v7x
topology: tpu7x:2x2x1
jax: 0.10.0
libtpu: 0.0.40
codegen_flags: <defaults>
</compile_context>

<pallas_src>
import functools

import numpy as np
import jax
import jax.numpy as jnp
from jax.experimental import pallas as pl
from jax.experimental.pallas import tpu as pltpu

_BN_EPS = 1e-5
_INV_SQRT2 = 0.7071067811865476


# --------------------------------------------------------------------------
# VMEM-aware sizing helpers.
# --------------------------------------------------------------------------
def _vmem_limit_bytes():
    """~3/4 of physical VMEM, capped at 100 MiB (v5e/v6e: ~96 MiB, v7x: ~48 MiB)."""
    cap = 64 << 20
    try:
        info = pltpu.get_tpu_info()
        cap = int(getattr(info, "vmem_capacity_bytes", cap))
    except Exception:
        pass
    return int(max(32 << 20, min((cap * 3) // 4, 100 << 20)))


def _pick_tile(n, cap, multiple=1):
    """Largest divisor of n that is <= cap and a multiple of `multiple`.

    Falls back to the full extent n (a block equal to the array dim is always
    legal w.r.t. the (8,128) rule), never to a non-multiple-of-`multiple` tile.
    """
    cap = int(max(1, min(n, cap)))
    for t in range(cap, 0, -1):
        if n % t == 0 and t % multiple == 0:
            return t
    return n


# --------------------------------------------------------------------------
# Pass 1: conv3x3 + BN sum / sum-of-squares accumulation (row-tiled, megacore).
# --------------------------------------------------------------------------
def _conv_stats_kernel(xt_ref, w_ref, mask_ref, out_ref, ssum_ref, ssq_ref,
                       *, TH, Wp, Cin, Cout, pack_k):
    """One (image, row-tile) per grid step.

    xt_ref  : (1, 1, (TH+3)*Wp, Cin) bf16  halo'd, zero-padded, row-flattened tile
    w_ref   : (9*Cin, Cout)          bf16  resident across the grid
    mask_ref: (1, TH*Wp)             f32   1.0 on real pixels, 0.0 on pad columns
    out_ref : (1, 1, TH*Wp, Cout)    bf16  conv output in padded-width layout
    ssum_ref: (1, 1, Cout)           f32   per-image running sum   (resident over tiles)
    ssq_ref : (1, 1, Cout)           f32   per-image running sum^2 (resident over tiles)
    """
    L = TH * Wp
    if pack_k:
        # Small Cin: pack the 9 taps into the contraction dim -> one K=9*Cin matmul.
        taps = [xt_ref[0, 0, dy * Wp + dx: dy * Wp + dx + L, :]
                for dy in range(3) for dx in range(3)]
        packed = jnp.concatenate(taps, axis=1)                    # (L, 9*Cin) bf16
        acc = jnp.dot(packed, w_ref[...], preferred_element_type=jnp.float32)
    else:
        # Large Cin: K already fills the MXU; 9 shifted contiguous-slice matmuls.
        acc = jnp.zeros((L, Cout), jnp.float32)
        for t in range(9):
            dy, dx = divmod(t, 3)
            s = dy * Wp + dx
            acc = acc + jnp.dot(xt_ref[0, 0, s:s + L, :],
                                w_ref[t * Cin:(t + 1) * Cin, :],
                                preferred_element_type=jnp.float32)

    # Store UNMASKED (pad lanes are dropped downstream); BN stats exclude the
    # pad columns via the mask row folded into two skinny MXU matmuls.
    out_ref[0, 0] = acc.astype(out_ref.dtype)
    m = mask_ref[...]                                             # (1, L) f32
    psum = jnp.dot(m, acc, preferred_element_type=jnp.float32)    # (1, Cout)
    psq = jnp.dot(m, acc * acc, preferred_element_type=jnp.float32)

    @pl.when(pl.program_id(1) == 0)
    def _init():
        ssum_ref[0] = jnp.zeros_like(ssum_ref[0])
        ssq_ref[0] = jnp.zeros_like(ssq_ref[0])

    ssum_ref[0] += psum
    ssq_ref[0] += psq


def _conv_bn_stats(x_nhwc_bf16, w_flat_bf16, *, vmem_limit):
    """x: (N,H,W,Cin) bf16, w: (9*Cin,Cout) bf16 -> padded conv + per-image BN sums."""
    N, H, W, Cin = x_nhwc_bf16.shape
    Cout = w_flat_bf16.shape[-1]
    Wp = W + 2

    # Row tile from a VMEM byte budget (input + packed taps + f32 acc + output,
    # with double-buffering headroom).
    bytes_per_row = Wp * (24 * Cin + 10 * Cout)
    TH = _pick_tile(H, min(H, max(8, (vmem_limit // 3) // max(1, bytes_per_row))),
                    multiple=1)
    n_tiles = H // TH
    L = TH * Wp

    # SAME padding; one extra bottom row so every shifted window stays in bounds.
    xp = jnp.pad(x_nhwc_bf16, ((0, 0), (1, 2), (1, 1), (0, 0)))   # (N, H+3, Wp, Cin)
    if n_tiles == 1:
        xt = xp.reshape(N, 1, (H + 3) * Wp, Cin)                  # free reshape
    else:
        # Halo'd per-tile layout: tile i covers padded rows [i*TH, i*TH+TH+3).
        rows = np.arange(n_tiles)[:, None] * TH + np.arange(TH + 3)[None, :]
        xt = jnp.take(xp, jnp.asarray(rows.reshape(-1)), axis=1)
        xt = xt.reshape(N, n_tiles, (TH + 3) * Wp, Cin)           # free reshape

    col = np.arange(L) % Wp
    mask = jnp.asarray((col < W).astype(np.float32)).reshape(1, L)

    pack_k = (9 * Cin) <= 256
    kernel = functools.partial(_conv_stats_kernel, TH=TH, Wp=Wp, Cin=Cin,
                               Cout=Cout, pack_k=pack_k)
    conv_pad, ssum, ssq = pl.pallas_call(
        kernel,
        grid=(N, n_tiles),
        in_specs=[
            pl.BlockSpec((1, 1, (TH + 3) * Wp, Cin), lambda n, i: (n, i, 0, 0)),
            pl.BlockSpec((9 * Cin, Cout), lambda n, i: (0, 0)),   # resident
            pl.BlockSpec((1, L), lambda n, i: (0, 0)),            # resident
        ],
        out_specs=(
            pl.BlockSpec((1, 1, L, Cout), lambda n, i: (n, i, 0, 0)),
            pl.BlockSpec((1, 1, Cout), lambda n, i: (n, 0, 0)),   # per-image accumulator
            pl.BlockSpec((1, 1, Cout), lambda n, i: (n, 0, 0)),   # per-image accumulator
        ),
        out_shape=(
            jax.ShapeDtypeStruct((N, n_tiles, L, Cout), jnp.bfloat16),
            jax.ShapeDtypeStruct((N, 1, Cout), jnp.float32),
            jax.ShapeDtypeStruct((N, 1, Cout), jnp.float32),
        ),
        compiler_params=pltpu.CompilerParams(
            dimension_semantics=("parallel", "arbitrary"),   # batch across TCs (v7x)
            vmem_limit_bytes=vmem_limit),
    )(xt, w_flat_bf16, mask)
    return conv_pad, ssum, ssq


def _fold_bn(ssum, ssq, gamma, beta, m_count):
    """Reduce per-image partials and fold BatchNorm(train) stats into scale/shift."""
    # TODO(synk): single-pass E[x^2]-E[x]^2 loses precision for very large N*H*W;
    # switch to a two-level combine if tighter tolerances are needed.
    total = jnp.sum(ssum[:, 0, :], axis=0)
    totsq = jnp.sum(ssq[:, 0, :], axis=0)
    mean = total / m_count
    var = jnp.maximum(totsq / m_count - mean * mean, 0.0)
    inv = jax.lax.rsqrt(var + _BN_EPS)
    scale = gamma * inv
    shift = beta - mean * scale
    return scale, shift


# --------------------------------------------------------------------------
# Pass 2 (stages 1-3): folded BN (1 FMA) + exact GELU, lane-dense layout.
# --------------------------------------------------------------------------
def _bn_gelu_kernel(x_ref, sc_ref, sh_ref, o_ref, *, out_lanes):
    y = x_ref[...].astype(jnp.float32) * sc_ref[...] + sh_ref[...]
    g = 0.5 * y * (1.0 + jax.lax.erf(y * _INV_SQRT2))
    # drop the (unmasked) pad columns: they sit in the lane suffix.
    o_ref[...] = g[:, :out_lanes].astype(o_ref.dtype)


def _bn_gelu(conv_pad, scale, shift, N, H, W, Cout, *, vmem_limit):
    Wp = W + 2
    rows = N * H
    lanes_in = Wp * Cout
    x2d = conv_pad.reshape(rows, lanes_in)                        # free reshape
    sc = jnp.tile(scale, Wp).reshape(1, lanes_in)
    sh = jnp.tile(shift, Wp).reshape(1, lanes_in)
    # VMEM-aware row tile (bf16 in/out double-buffered + f32 temps), multiple of 8.
    bytes_per_row = lanes_in * 14
    row_cap = min(1024, max(8, (vmem_limit // 4) // max(1, bytes_per_row)))
    tile_r = _pick_tile(rows, row_cap, multiple=8)
    kernel = functools.partial(_bn_gelu_kernel, out_lanes=W * Cout)
    act = pl.pallas_call(
        kernel,
        grid=(rows // tile_r,),
        in_specs=[
            pl.BlockSpec((tile_r, lanes_in), lambda i: (i, 0)),
            pl.BlockSpec((1, lanes_in), lambda i: (0, 0)),        # resident
            pl.BlockSpec((1, lanes_in), lambda i: (0, 0)),        # resident
        ],
        out_specs=pl.BlockSpec((tile_r, W * Cout), lambda i: (i, 0)),
        out_shape=jax.ShapeDtypeStruct((rows, W * Cout), jnp.bfloat16),
        compiler_params=pltpu.CompilerParams(
            dimension_semantics=("parallel",), vmem_limit_bytes=vmem_limit),
    )(x2d, sc, sh)
    return act.reshape(N, H, W, Cout)                             # free reshape


# --------------------------------------------------------------------------
# Pass 2 (stage 4): folded BN + GELU with the 2x2 max-pool fused in.
# --------------------------------------------------------------------------
def _bn_gelu_pool_kernel(x_ref, sc_ref, sh_ref, o_ref, *, C, W2):
    sc = sc_ref[...]
    sh = sh_ref[...]

    def act(v):
        y = v.astype(jnp.float32) * sc + sh
        return 0.5 * y * (1.0 + jax.lax.erf(y * _INV_SQRT2))

    ge = act(x_ref[0, :, 0, :, :])                  # (th2, Wp2, 2C) even rows
    go = act(x_ref[0, :, 1, :, :])                  # (th2, Wp2, 2C) odd rows
    m = jnp.maximum(ge, go)                         # max over the row pair
    m = jnp.maximum(m[:, :, :C], m[:, :, C:])       # max over the column pair
    o_ref[0] = m[:, :W2, :].astype(o_ref.dtype)     # drop the pooled pad column


def _bn_gelu_pool(conv_pad, scale, shift, N, H, W, C, *, vmem_limit):
    Wp = W + 2
    H2, W2 = H // 2, W // 2
    Wp2 = Wp // 2                                   # = W2 + 1 (W is even)
    x5 = conv_pad.reshape(N, H2, 2, Wp2, 2 * C)     # free reshape
    sc = jnp.tile(scale, 2).reshape(1, 1, 2 * C)
    sh = jnp.tile(shift, 2).reshape(1, 1, 2 * C)
    bytes_per_h2row = Wp2 * 2 * C * 24 + W2 * C * 4
    th2 = _pick_tile(H2, min(256, max(1, (vmem_limit // 4) // max(1, bytes_per_h2row))),
                     multiple=1)
    kernel = functools.partial(_bn_gelu_pool_kernel, C=C, W2=W2)
    out = pl.pallas_call(
        kernel,
        grid=(N, H2 // th2),
        in_specs=[
            pl.BlockSpec((1, th2, 2, Wp2, 2 * C), lambda n, i: (n, i, 0, 0, 0)),
            pl.BlockSpec((1, 1, 2 * C), lambda n, i: (0, 0, 0)),    # resident
            pl.BlockSpec((1, 1, 2 * C), lambda n, i: (0, 0, 0)),    # resident
        ],
        out_specs=pl.BlockSpec((1, th2, W2, C), lambda n, i: (n, i, 0, 0)),
        out_shape=jax.ShapeDtypeStruct((N, H2, W2, C), jnp.bfloat16),
        compiler_params=pltpu.CompilerParams(
            dimension_semantics=("parallel", "parallel"),
            vmem_limit_bytes=vmem_limit),
    )(x5, sc, sh)
    return out


# --------------------------------------------------------------------------
# Model wrapper.
# --------------------------------------------------------------------------
def init_params(key, in_channels, out_channels):
    """4 conv stages: (in->out), (out->out), (out->out), (out->out)."""
    dims = [(in_channels, out_channels)] + [(out_channels, out_channels)] * 3
    params = []
    for cin, cout in dims:
        key, kw, kb = jax.random.split(key, 3)
        bound = 1.0 / np.sqrt(cin * 9)              # PyTorch Conv2d default init
        params.append(dict(
            w=jax.random.uniform(kw, (3, 3, cin, cout), jnp.float32, -bound, bound),
            # Conv bias kept for structural parity with nn.Conv2d, but it is a
            # mathematical no-op under the following train-mode BatchNorm
            # (cancelled by mean subtraction), so the kernels never read it.
            b=jax.random.uniform(kb, (cout,), jnp.float32, -bound, bound),
            gamma=jnp.ones((cout,), jnp.float32),   # BatchNorm2d default init
            beta=jnp.zeros((cout,), jnp.float32),
        ))
    return params


def unet_down_forward(x_nchw, params):
    vmem_limit = _vmem_limit_bytes()
    # One NCHW -> NHWC transpose at the boundary; NHWC bf16 between stages.
    x = jnp.transpose(x_nchw, (0, 2, 3, 1)).astype(jnp.bfloat16)
    n_stages = len(params)
    for si, p in enumerate(params):
        N, H, W, Cin = x.shape
        Cout = p["w"].shape[-1]
        w_flat = p["w"].astype(jnp.bfloat16).reshape(9 * Cin, Cout)
        conv_pad, ssum, ssq = _conv_bn_stats(x, w_flat, vmem_limit=vmem_limit)
        scale, shift = _fold_bn(ssum, ssq, p["gamma"], p["beta"], float(N * H * W))
        if si + 1 < n_stages:
            x = _bn_gelu(conv_pad, scale, shift, N, H, W, Cout, vmem_limit=vmem_limit)
        else:
            x = _bn_gelu_pool(conv_pad, scale, shift, N, H, W, Cout,
                              vmem_limit=vmem_limit)
    return jnp.transpose(x, (0, 3, 1, 2))           # NHWC -> NCHW (bf16)


# --------------------------------------------------------------------------
# Pure-JAX reference mirroring the kernels' numerical policy
# (bf16 matmul inputs / inter-stage storage, f32 accumulation and elementwise).
# --------------------------------------------------------------------------
def _ref_forward(x_nchw, params):
    x = jnp.transpose(x_nchw, (0, 2, 3, 1)).astype(jnp.float32)
    n_stages = len(params)
    for si, p in enumerate(params):
        N, H, W, Cin = x.shape
        Cout = p["w"].shape[-1]
        xb = x.astype(jnp.bfloat16)
        wb = p["w"].astype(jnp.bfloat16)
        xp = jnp.pad(xb, ((0, 0), (1, 1), (1, 1), (0, 0)))
        conv = jnp.zeros((N * H * W, Cout), jnp.float32)
        for dy in range(3):
            for dx in range(3):
                tap = xp[:, dy:dy + H, dx:dx + W, :].reshape(N * H * W, Cin)
                conv = conv + jnp.dot(tap, wb[dy, dx],
                                      preferred_element_type=jnp.float32)
        m = float(N * H * W)
        mean = conv.sum(0) / m
        var = jnp.maximum((conv * conv).sum(0) / m - mean * mean, 0.0)
        scale = p["gamma"] * jax.lax.rsqrt(var + _BN_EPS)
        shift = p["beta"] - mean * scale
        y = conv.astype(jnp.bfloat16).astype(jnp.float32) * scale + shift
        g = 0.5 * y * (1.0 + jax.lax.erf(y * _INV_SQRT2))
        if si + 1 < n_stages:
            x = g.astype(jnp.bfloat16).reshape(N, H, W, Cout)
        else:
            g = g.reshape(N, H, W, Cout)
            x = jnp.max(g.reshape(N, H // 2, 2, W // 2, 2, Cout), axis=(2, 4))
    return jnp.transpose(x, (0, 3, 1, 2))


if __name__ == "__main__":
    key = jax.random.PRNGKey(0)
    kx, kp = jax.random.split(key)
    in_channels, out_channels = 4, 8
    x = jax.random.normal(kx, (2, in_channels, 16, 16), jnp.float32)   # NCHW
    params = init_params(kp, in_channels, out_channels)

    fwd = jax.jit(unet_down_forward)
    out = jax.block_until_ready(fwd(x, params))
    assert out.shape == (2, out_channels, 8, 8), out.shape

    ref = jax.block_until_ready(_ref_forward(x, params))
    np.testing.assert_allclose(np.asarray(out, dtype=np.float32),
                               np.asarray(ref, dtype=np.float32),
                               atol=2e-2, rtol=2e-2)
    print("KERNEL_OK")
</pallas_src>

<mosaic_0001>
module attributes {stable_mosaic.version = 11 : i64} {
  func.func @_conv_stats_kernel(%arg0: i32, %arg1: i32, %arg2: memref<1x1x342x4xbf16, #tpu.memory_space<vmem>>, %arg3: memref<36x8xbf16, #tpu.memory_space<vmem>>, %arg4: memref<1x288xf32, #tpu.memory_space<vmem>>, %arg5: memref<1x1x288x8xbf16, #tpu.memory_space<vmem>>, %arg6: memref<1x1x8xf32, #tpu.memory_space<vmem>>, %arg7: memref<1x1x8xf32, #tpu.memory_space<vmem>>) attributes {dimension_semantics = [#tpu.dimension_semantics<parallel>, #tpu.dimension_semantics<arbitrary>], iteration_bounds = array<i64: 2, 1>, scalar_prefetch = 0 : i64, scratch_operands = 0 : i64, tpu.core_type = #tpu.core_type<tc>, window_params = [{transform_indices = @transform_0, window_bounds = array<i64: 1, 1, 342, 4>}, {pipeline_mode = #tpu.pipeline_mode<synchronous>, transform_indices = @transform_1, window_bounds = array<i64: 36, 8>}, {pipeline_mode = #tpu.pipeline_mode<synchronous>, transform_indices = @transform_2, window_bounds = array<i64: 1, 288>}, {transform_indices = @transform_3, window_bounds = array<i64: 1, 1, 288, 8>}, {transform_indices = @transform_4, window_bounds = array<i64: 1, 1, 8>}, {transform_indices = @transform_5, window_bounds = array<i64: 1, 1, 8>}]} {
    %c0 = arith.constant 0 : index
    %c0_0 = arith.constant 0 : index
    %c0_1 = arith.constant 0 : index
    %c0_2 = arith.constant 0 : index
    %0 = vector.load %arg2[%c0, %c0_0, %c0_1, %c0_2] : memref<1x1x342x4xbf16, #tpu.memory_space<vmem>>, vector<1x1x288x4xbf16>
    %1 = vector.shape_cast %0 : vector<1x1x288x4xbf16> to vector<288x4xbf16>
    %c0_3 = arith.constant 0 : index
    %c0_4 = arith.constant 0 : index
    %c1 = arith.constant 1 : index
    %c0_5 = arith.constant 0 : index
    %2 = vector.load %arg2[%c0_3, %c0_4, %c1, %c0_5] : memref<1x1x342x4xbf16, #tpu.memory_space<vmem>>, vector<1x1x288x4xbf16>
    %3 = vector.shape_cast %2 : vector<1x1x288x4xbf16> to vector<288x4xbf16>
    %c0_6 = arith.constant 0 : index
    %c0_7 = arith.constant 0 : index
    %c2 = arith.constant 2 : index
    %c0_8 = arith.constant 0 : index
    %4 = vector.load %arg2[%c0_6, %c0_7, %c2, %c0_8] : memref<1x1x342x4xbf16, #tpu.memory_space<vmem>>, vector<1x1x288x4xbf16>
    %5 = vector.shape_cast %4 : vector<1x1x288x4xbf16> to vector<288x4xbf16>
    %c0_9 = arith.constant 0 : index
    %c0_10 = arith.constant 0 : index
    %c18 = arith.constant 18 : index
    %c0_11 = arith.constant 0 : index
    %6 = vector.load %arg2[%c0_9, %c0_10, %c18, %c0_11] : memref<1x1x342x4xbf16, #tpu.memory_space<vmem>>, vector<1x1x288x4xbf16>
    %7 = vector.shape_cast %6 : vector<1x1x288x4xbf16> to vector<288x4xbf16>
    %c0_12 = arith.constant 0 : index
    %c0_13 = arith.constant 0 : index
    %c19 = arith.constant 19 : index
    %c0_14 = arith.constant 0 : index
    %8 = vector.load %arg2[%c0_12, %c0_13, %c19, %c0_14] : memref<1x1x342x4xbf16, #tpu.memory_space<vmem>>, vector<1x1x288x4xbf16>
    %9 = vector.shape_cast %8 : vector<1x1x288x4xbf16> to vector<288x4xbf16>
    %c0_15 = arith.constant 0 : index
    %c0_16 = arith.constant 0 : index
    %c20 = arith.constant 20 : index
    %c0_17 = arith.constant 0 : index
    %10 = vector.load %arg2[%c0_15, %c0_16, %c20, %c0_17] : memref<1x1x342x4xbf16, #tpu.memory_space<vmem>>, vector<1x1x288x4xbf16>
    %11 = vector.shape_cast %10 : vector<1x1x288x4xbf16> to vector<288x4xbf16>
    %c0_18 = arith.constant 0 : index
    %c0_19 = arith.constant 0 : index
    %c36 = arith.constant 36 : index
    %c0_20 = arith.constant 0 : index
    %12 = vector.load %arg2[%c0_18, %c0_19, %c36, %c0_20] : memref<1x1x342x4xbf16, #tpu.memory_space<vmem>>, vector<1x1x288x4xbf16>
    %13 = vector.shape_cast %12 : vector<1x1x288x4xbf16> to vector<288x4xbf16>
    %c0_21 = arith.constant 0 : index
    %c0_22 = arith.constant 0 : index
    %c37 = arith.constant 37 : index
    %c0_23 = arith.constant 0 : index
    %14 = vector.load %arg2[%c0_21, %c0_22, %c37, %c0_23] : memref<1x1x342x4xbf16, #tpu.memory_space<vmem>>, vector<1x1x288x4xbf16>
    %15 = vector.shape_cast %14 : vector<1x1x288x4xbf16> to vector<288x4xbf16>
    %c0_24 = arith.constant 0 : index
    %c0_25 = arith.constant 0 : index
    %c38 = arith.constant 38 : index
    %c0_26 = arith.constant 0 : index
    %16 = vector.load %arg2[%c0_24, %c0_25, %c38, %c0_26] : memref<1x1x342x4xbf16, #tpu.memory_space<vmem>>, vector<1x1x288x4xbf16>
    %17 = vector.shape_cast %16 : vector<1x1x288x4xbf16> to vector<288x4xbf16>
    %18 = tpu.concatenate %1, %3, %5, %7, %9, %11, %13, %15, %17 in 1 : vector<288x4xbf16>, vector<288x4xbf16>, vector<288x4xbf16>, vector<288x4xbf16>, vector<288x4xbf16>, vector<288x4xbf16>, vector<288x4xbf16>, vector<288x4xbf16>, vector<288x4xbf16> -> vector<288x36xbf16>
    %c0_27 = arith.constant 0 : index
    %c0_28 = arith.constant 0 : index
    %19 = vector.load %arg3[%c0_27, %c0_28] : memref<36x8xbf16, #tpu.memory_space<vmem>>, vector<36x8xbf16>
    %cst = arith.constant dense<0.000000e+00> : vector<288x8xf32>
    %20 = tpu.matmul %18, %19, %cst {dimension_numbers = #tpu.dot_dimension_numbers<[1], [0], [0], [1], [0, 0, 1, 1], [], []>} : vector<288x36xbf16>, vector<36x8xbf16>, vector<288x8xf32> -> vector<288x8xf32>
    %21 = arith.truncf %20 : vector<288x8xf32> to vector<288x8xbf16>
    %c0_29 = arith.constant 0 : index
    %c0_30 = arith.constant 0 : index
    %c0_31 = arith.constant 0 : index
    %c0_32 = arith.constant 0 : index
    %22 = vector.load %arg5[%c0_29, %c0_30, %c0_31, %c0_32] : memref<1x1x288x8xbf16, #tpu.memory_space<vmem>>, vector<1x1x288x8xbf16>
    %23 = vector.shape_cast %22 : vector<1x1x288x8xbf16> to vector<288x8xbf16>
    %24 = vector.shape_cast %21 : vector<288x8xbf16> to vector<1x1x288x8xbf16>
    tpu.vector_store %arg5[%c0_29, %c0_30, %c0_31, %c0_32], %24 {strides = array<i32>} : memref<1x1x288x8xbf16, #tpu.memory_space<vmem>>, vector<1x1x288x8xbf16>,
    %c0_33 = arith.constant 0 : index
    %c0_34 = arith.constant 0 : index
    %25 = vector.load %arg4[%c0_33, %c0_34] : memref<1x288xf32, #tpu.memory_space<vmem>>, vector<1x288xf32>
    %cst_35 = arith.constant dense<0.000000e+00> : vector<1x8xf32>
    %26 = tpu.matmul %25, %20, %cst_35 {dimension_numbers = #tpu.dot_dimension_numbers<[1], [0], [0], [1], [0, 0, 1, 1], [], []>} : vector<1x288xf32>, vector<288x8xf32>, vector<1x8xf32> -> vector<1x8xf32>
    %27 = arith.mulf %20, %20 : vector<288x8xf32>
    %cst_36 = arith.constant dense<0.000000e+00> : vector<1x8xf32>
    %28 = tpu.matmul %25, %27, %cst_36 {dimension_numbers = #tpu.dot_dimension_numbers<[1], [0], [0], [1], [0, 0, 1, 1], [], []>} : vector<1x288xf32>, vector<288x8xf32>, vector<1x8xf32> -> vector<1x8xf32>
    %c0_i32 = arith.constant 0 : i32
    %29 = arith.cmpi eq, %arg1, %c0_i32 : i32
    %30 = arith.extui %29 : i1 to i32
    %c0_i32_37 = arith.constant 0 : i32
    %31 = arith.cmpi ne, %30, %c0_i32_37 : i32
    scf.if %31 {
      %cst_50 = arith.constant 0.000000e+00 : f32
      %44 = vector.broadcast %cst_50 : f32 to vector<1x8xf32>
      %c0_51 = arith.constant 0 : index
      %c0_52 = arith.constant 0 : index
      %c0_53 = arith.constant 0 : index
      %45 = vector.load %arg6[%c0_51, %c0_52, %c0_53] : memref<1x1x8xf32, #tpu.memory_space<vmem>>, vector<1x1x8xf32>
      %46 = vector.shape_cast %45 : vector<1x1x8xf32> to vector<1x8xf32>
      %47 = vector.shape_cast %44 : vector<1x8xf32> to vector<1x1x8xf32>
      tpu.vector_store %arg6[%c0_51, %c0_52, %c0_53], %47 {strides = array<i32>} : memref<1x1x8xf32, #tpu.memory_space<vmem>>, vector<1x1x8xf32>,
      %cst_54 = arith.constant 0.000000e+00 : f32
      %48 = vector.broadcast %cst_54 : f32 to vector<1x8xf32>
      %c0_55 = arith.constant 0 : index
      %c0_56 = arith.constant 0 : index
      %c0_57 = arith.constant 0 : index
      %49 = vector.load %arg7[%c0_55, %c0_56, %c0_57] : memref<1x1x8xf32, #tpu.memory_space<vmem>>, vector<1x1x8xf32>
      %50 = vector.shape_cast %49 : vector<1x1x8xf32> to vector<1x8xf32>
      %51 = vector.shape_cast %48 : vector<1x8xf32> to vector<1x1x8xf32>
      tpu.vector_store %arg7[%c0_55, %c0_56, %c0_57], %51 {strides = array<i32>} : memref<1x1x8xf32, #tpu.memory_space<vmem>>, vector<1x1x8xf32>,
    } else {
    }
    %c0_38 = arith.constant 0 : index
    %c0_39 = arith.constant 0 : index
    %c0_40 = arith.constant 0 : index
    %32 = vector.load %arg6[%c0_38, %c0_39, %c0_40] : memref<1x1x8xf32, #tpu.memory_space<vmem>>, vector<1x1x8xf32>
    %33 = vector.shape_cast %32 : vector<1x1x8xf32> to vector<1x8xf32>
    %34 = arith.addf %33, %26 : vector<1x8xf32>
    %c0_41 = arith.constant 0 : index
    %c0_42 = arith.constant 0 : index
    %c0_43 = arith.constant 0 : index
    %35 = vector.load %arg6[%c0_41, %c0_42, %c0_43] : memref<1x1x8xf32, #tpu.memory_space<vmem>>, vector<1x1x8xf32>
    %36 = vector.shape_cast %35 : vector<1x1x8xf32> to vector<1x8xf32>
    %37 = vector.shape_cast %34 : vector<1x8xf32> to vector<1x1x8xf32>
    tpu.vector_store %arg6[%c0_41, %c0_42, %c0_43], %37 {strides = array<i32>} : memref<1x1x8xf32, #tpu.memory_space<vmem>>, vector<1x1x8xf32>,
    %c0_44 = arith.constant 0 : index
    %c0_45 = arith.constant 0 : index
    %c0_46 = arith.constant 0 : index
    %38 = vector.load %arg7[%c0_44, %c0_45, %c0_46] : memref<1x1x8xf32, #tpu.memory_space<vmem>>, vector<1x1x8xf32>
    %39 = vector.shape_cast %38 : vector<1x1x8xf32> to vector<1x8xf32>
    %40 = arith.addf %39, %28 : vector<1x8xf32>
    %c0_47 = arith.constant 0 : index
    %c0_48 = arith.constant 0 : index
    %c0_49 = arith.constant 0 : index
    %41 = vector.load %arg7[%c0_47, %c0_48, %c0_49] : memref<1x1x8xf32, #tpu.memory_space<vmem>>, vector<1x1x8xf32>
    %42 = vector.shape_cast %41 : vector<1x1x8xf32> to vector<1x8xf32>
    %43 = vector.shape_cast %40 : vector<1x8xf32> to vector<1x1x8xf32>
    tpu.vector_store %arg7[%c0_47, %c0_48, %c0_49], %43 {strides = array<i32>} : memref<1x1x8xf32, #tpu.memory_space<vmem>>, vector<1x1x8xf32>,
    return
  }
  func.func @transform_0(%arg0: i32, %arg1: i32) -> (i32, i32, i32, i32) {
    %c0_i32 = arith.constant 0 : i32
    %c0_i32_0 = arith.constant 0 : i32
    %c0_i32_1 = arith.constant 0 : i32
    return %arg0, %arg1, %c0_i32, %c0_i32_0 : i32, i32, i32, i32
  }
  func.func @transform_1(%arg0: i32, %arg1: i32) -> (i32, i32) {
    %c0_i32 = arith.constant 0 : i32
    %c0_i32_0 = arith.constant 0 : i32
    %c0_i32_1 = arith.constant 0 : i32
    return %c0_i32, %c0_i32_0 : i32, i32
  }
  func.func @transform_2(%arg0: i32, %arg1: i32) -> (i32, i32) {
    %c0_i32 = arith.constant 0 : i32
    %c0_i32_0 = arith.constant 0 : i32
    %c0_i32_1 = arith.constant 0 : i32
    return %c0_i32, %c0_i32_0 : i32, i32
  }
  func.func @transform_3(%arg0: i32, %arg1: i32) -> (i32, i32, i32, i32) {
    %c0_i32 = arith.constant 0 : i32
    %c0_i32_0 = arith.constant 0 : i32
    %c0_i32_1 = arith.constant 0 : i32
    return %arg0, %arg1, %c0_i32, %c0_i32_0 : i32, i32, i32, i32
  }
  func.func @transform_4(%arg0: i32, %arg1: i32) -> (i32, i32, i32) {
    %c0_i32 = arith.constant 0 : i32
    %c0_i32_0 = arith.constant 0 : i32
    %c0_i32_1 = arith.constant 0 : i32
    return %arg0, %c0_i32, %c0_i32_0 : i32, i32, i32
  }
  func.func @transform_5(%arg0: i32, %arg1: i32) -> (i32, i32, i32) {
    %c0_i32 = arith.constant 0 : i32
    %c0_i32_0 = arith.constant 0 : i32
    %c0_i32_1 = arith.constant 0 : i32
    return %arg0, %c0_i32, %c0_i32_0 : i32, i32, i32
  }
}

module attributes {stable_mosaic.version = 11 : i64} {
  func.func @_bn_gelu_kernel(%arg0: i32, %arg1: memref<32x144xbf16, #tpu.memory_space<vmem>>, %arg2: memref<1x144xf32, #tpu.memory_space<vmem>>, %arg3: memref<1x144xf32, #tpu.memory_space<vmem>>, %arg4: memref<32x128xbf16, #tpu.memory_space<vmem>>) attributes {dimension_semantics = [#tpu.dimension_semantics<parallel>], iteration_bounds = array<i64: 1>, scalar_prefetch = 0 : i64, scratch_operands = 0 : i64, tpu.core_type = #tpu.core_type<tc>, window_params = [{transform_indices = @transform_0, window_bounds = array<i64: 32, 144>}, {pipeline_mode = #tpu.pipeline_mode<synchronous>, transform_indices = @transform_1, window_bounds = array<i64: 1, 144>}, {pipeline_mode = #tpu.pipeline_mode<synchronous>, transform_indices = @transform_2, window_bounds = array<i64: 1, 144>}, {transform_indices = @transform_3, window_bounds = array<i64: 32, 128>}]} {
    %c0 = arith.constant 0 : index
    %c0_0 = arith.constant 0 : index
    %0 = vector.load %arg1[%c0, %c0_0] : memref<32x144xbf16, #tpu.memory_space<vmem>>, vector<32x144xbf16>
    %1 = arith.extf %0 : vector<32x144xbf16> to vector<32x144xf32>
    %c0_1 = arith.constant 0 : index
    %c0_2 = arith.constant 0 : index
    %2 = vector.load %arg2[%c0_1, %c0_2] : memref<1x144xf32, #tpu.memory_space<vmem>>, vector<1x144xf32>
    %3 = vector.broadcast %2 : vector<1x144xf32> to vector<32x144xf32>
    %4 = arith.mulf %1, %3 : vector<32x144xf32>
    %c0_3 = arith.constant 0 : index
    %c0_4 = arith.constant 0 : index
    %5 = vector.load %arg3[%c0_3, %c0_4] : memref<1x144xf32, #tpu.memory_space<vmem>>, vector<1x144xf32>
    %6 = vector.broadcast %5 : vector<1x144xf32> to vector<32x144xf32>
    %7 = arith.addf %4, %6 : vector<32x144xf32>
    %cst = arith.constant 5.000000e-01 : f32
    %8 = vector.broadcast %cst : f32 to vector<32x144xf32>
    %9 = arith.mulf %8, %7 : vector<32x144xf32>
    %cst_5 = arith.constant 0.707106769 : f32
    %10 = vector.broadcast %cst_5 : f32 to vector<32x144xf32>
    %11 = arith.mulf %7, %10 : vector<32x144xf32>
    %12 = math.erf %11 : vector<32x144xf32>
    %cst_6 = arith.constant 1.000000e+00 : f32
    %13 = vector.broadcast %cst_6 : f32 to vector<32x144xf32>
    %14 = arith.addf %13, %12 : vector<32x144xf32>
    %15 = arith.mulf %9, %14 : vector<32x144xf32>
    %16 = vector.extract_strided_slice %15 {offsets = [0, 0], sizes = [32, 128], strides = [1, 1]} : vector<32x144xf32> to vector<32x128xf32>
    %17 = arith.truncf %16 : vector<32x128xf32> to vector<32x128xbf16>
    %c0_7 = arith.constant 0 : index
    %c0_8 = arith.constant 0 : index
    %18 = vector.load %arg4[%c0_7, %c0_8] : memref<32x128xbf16, #tpu.memory_space<vmem>>, vector<32x128xbf16>
    tpu.vector_store %arg4[%c0_7, %c0_8], %17 {strides = array<i32>} : memref<32x128xbf16, #tpu.memory_space<vmem>>, vector<32x128xbf16>,
    return
  }
  func.func @transform_0(%arg0: i32) -> (i32, i32) {
    %c0_i32 = arith.constant 0 : i32
    %c0_i32_0 = arith.constant 0 : i32
    return %arg0, %c0_i32 : i32, i32
  }
  func.func @transform_1(%arg0: i32) -> (i32, i32) {
    %c0_i32 = arith.constant 0 : i32
    %c0_i32_0 = arith.constant 0 : i32
    %c0_i32_1 = arith.constant 0 : i32
    return %c0_i32, %c0_i32_0 : i32, i32
  }
  func.func @transform_2(%arg0: i32) -> (i32, i32) {
    %c0_i32 = arith.constant 0 : i32
    %c0_i32_0 = arith.constant 0 : i32
    %c0_i32_1 = arith.constant 0 : i32
    return %c0_i32, %c0_i32_0 : i32, i32
  }
  func.func @transform_3(%arg0: i32) -> (i32, i32) {
    %c0_i32 = arith.constant 0 : i32
    %c0_i32_0 = arith.constant 0 : i32
    return %arg0, %c0_i32 : i32, i32
  }
}

module attributes {stable_mosaic.version = 11 : i64} {
  func.func @_conv_stats_kernel(%arg0: i32, %arg1: i32, %arg2: memref<1x1x342x8xbf16, #tpu.memory_space<vmem>>, %arg3: memref<72x8xbf16, #tpu.memory_space<vmem>>, %arg4: memref<1x288xf32, #tpu.memory_space<vmem>>, %arg5: memref<1x1x288x8xbf16, #tpu.memory_space<vmem>>, %arg6: memref<1x1x8xf32, #tpu.memory_space<vmem>>, %arg7: memref<1x1x8xf32, #tpu.memory_space<vmem>>) attributes {dimension_semantics = [#tpu.dimension_semantics<parallel>, #tpu.dimension_semantics<arbitrary>], iteration_bounds = array<i64: 2, 1>, scalar_prefetch = 0 : i64, scratch_operands = 0 : i64, tpu.core_type = #tpu.core_type<tc>, window_params = [{transform_indices = @transform_0, window_bounds = array<i64: 1, 1, 342, 8>}, {pipeline_mode = #tpu.pipeline_mode<synchronous>, transform_indices = @transform_1, window_bounds = array<i64: 72, 8>}, {pipeline_mode = #tpu.pipeline_mode<synchronous>, transform_indices = @transform_2, window_bounds = array<i64: 1, 288>}, {transform_indices = @transform_3, window_bounds = array<i64: 1, 1, 288, 8>}, {transform_indices = @transform_4, window_bounds = array<i64: 1, 1, 8>}, {transform_indices = @transform_5, window_bounds = array<i64: 1, 1, 8>}]} {
    %c0 = arith.constant 0 : index
    %c0_0 = arith.constant 0 : index
    %c0_1 = arith.constant 0 : index
    %c0_2 = arith.constant 0 : index
    %0 = vector.load %arg2[%c0, %c0_0, %c0_1, %c0_2] : memref<1x1x342x8xbf16, #tpu.memory_space<vmem>>, vector<1x1x288x8xbf16>
    %1 = vector.shape_cast %0 : vector<1x1x288x8xbf16> to vector<288x8xbf16>
    %c0_3 = arith.constant 0 : index
    %c0_4 = arith.constant 0 : index
    %c1 = arith.constant 1 : index
    %c0_5 = arith.constant 0 : index
    %2 = vector.load %arg2[%c0_3, %c0_4, %c1, %c0_5] : memref<1x1x342x8xbf16, #tpu.memory_space<vmem>>, vector<1x1x288x8xbf16>
    %3 = vector.shape_cast %2 : vector<1x1x288x8xbf16> to vector<288x8xbf16>
    %c0_6 = arith.constant 0 : index
    %c0_7 = arith.constant 0 : index
    %c2 = arith.constant 2 : index
    %c0_8 = arith.constant 0 : index
    %4 = vector.load %arg2[%c0_6, %c0_7, %c2, %c0_8] : memref<1x1x342x8xbf16, #tpu.memory_space<vmem>>, vector<1x1x288x8xbf16>
    %5 = vector.shape_cast %4 : vector<1x1x288x8xbf16> to vector<288x8xbf16>
    %c0_9 = arith.constant 0 : index
    %c0_10 = arith.constant 0 : index
    %c18 = arith.constant 18 : index
    %c0_11 = arith.constant 0 : index
    %6 = vector.load %arg2[%c0_9, %c0_10, %c18, %c0_11] : memref<1x1x342x8xbf16, #tpu.memory_space<vmem>>, vector<1x1x288x8xbf16>
    %7 = vector.shape_cast %6 : vector<1x1x288x8xbf16> to vector<288x8xbf16>
    %c0_12 = arith.constant 0 : index
    %c0_13 = arith.constant 0 : index
    %c19 = arith.constant 19 : index
    %c0_14 = arith.constant 0 : index
    %8 = vector.load %arg2[%c0_12, %c0_13, %c19, %c0_14] : memref<1x1x342x8xbf16, #tpu.memory_space<vmem>>, vector<1x1x288x8xbf16>
    %9 = vector.shape_cast %8 : vector<1x1x288x8xbf16> to vector<288x8xbf16>
    %c0_15 = arith.constant 0 : index
    %c0_16 = arith.constant 0 : index
    %c20 = arith.constant 20 : index
    %c0_17 = arith.constant 0 : index
    %10 = vector.load %arg2[%c0_15, %c0_16, %c20, %c0_17] : memref<1x1x342x8xbf16, #tpu.memory_space<vmem>>, vector<1x1x288x8xbf16>
    %11 = vector.shape_cast %10 : vector<1x1x288x8xbf16> to vector<288x8xbf16>
    %c0_18 = arith.constant 0 : index
    %c0_19 = arith.constant 0 : index
    %c36 = arith.constant 36 : index
    %c0_20 = arith.constant 0 : index
    %12 = vector.load %arg2[%c0_18, %c0_19, %c36, %c0_20] : memref<1x1x342x8xbf16, #tpu.memory_space<vmem>>, vector<1x1x288x8xbf16>
    %13 = vector.shape_cast %12 : vector<1x1x288x8xbf16> to vector<288x8xbf16>
    %c0_21 = arith.constant 0 : index
    %c0_22 = arith.constant 0 : index
    %c37 = arith.constant 37 : index
    %c0_23 = arith.constant 0 : index
    %14 = vector.load %arg2[%c0_21, %c0_22, %c37, %c0_23] : memref<1x1x342x8xbf16, #tpu.memory_space<vmem>>, vector<1x1x288x8xbf16>
    %15 = vector.shape_cast %14 : vector<1x1x288x8xbf16> to vector<288x8xbf16>
    %c0_24 = arith.constant 0 : index
    %c0_25 = arith.constant 0 : index
    %c38 = arith.constant 38 : index
    %c0_26 = arith.constant 0 : index
    %16 = vector.load %arg2[%c0_24, %c0_25, %c38, %c0_26] : memref<1x1x342x8xbf16, #tpu.memory_space<vmem>>, vector<1x1x288x8xbf16>
    %17 = vector.shape_cast %16 : vector<1x1x288x8xbf16> to vector<288x8xbf16>
    %18 = tpu.concatenate %1, %3, %5, %7, %9, %11, %13, %15, %17 in 1 : vector<288x8xbf16>, vector<288x8xbf16>, vector<288x8xbf16>, vector<288x8xbf16>, vector<288x8xbf16>, vector<288x8xbf16>, vector<288x8xbf16>, vector<288x8xbf16>, vector<288x8xbf16> -> vector<288x72xbf16>
    %c0_27 = arith.constant 0 : index
    %c0_28 = arith.constant 0 : index
    %19 = vector.load %arg3[%c0_27, %c0_28] : memref<72x8xbf16, #tpu.memory_space<vmem>>, vector<72x8xbf16>
    %cst = arith.constant dense<0.000000e+00> : vector<288x8xf32>
    %20 = tpu.matmul %18, %19, %cst {dimension_numbers = #tpu.dot_dimension_numbers<[1], [0], [0], [1], [0, 0, 1, 1], [], []>} : vector<288x72xbf16>, vector<72x8xbf16>, vector<288x8xf32> -> vector<288x8xf32>
    %21 = arith.truncf %20 : vector<288x8xf32> to vector<288x8xbf16>
    %c0_29 = arith.constant 0 : index
    %c0_30 = arith.constant 0 : index
    %c0_31 = arith.constant 0 : index
    %c0_32 = arith.constant 0 : index
    %22 = vector.load %arg5[%c0_29, %c0_30, %c0_31, %c0_32] : memref<1x1x288x8xbf16, #tpu.memory_space<vmem>>, vector<1x1x288x8xbf16>
    %23 = vector.shape_cast %22 : vector<1x1x288x8xbf16> to vector<288x8xbf16>
    %24 = vector.shape_cast %21 : vector<288x8xbf16> to vector<1x1x288x8xbf16>
    tpu.vector_store %arg5[%c0_29, %c0_30, %c0_31, %c0_32], %24 {strides = array<i32>} : memref<1x1x288x8xbf16, #tpu.memory_space<vmem>>, vector<1x1x288x8xbf16>,
    %c0_33 = arith.constant 0 : index
    %c0_34 = arith.constant 0 : index
    %25 = vector.load %arg4[%c0_33, %c0_34] : memref<1x288xf32, #tpu.memory_space<vmem>>, vector<1x288xf32>
    %cst_35 = arith.constant dense<0.000000e+00> : vector<1x8xf32>
    %26 = tpu.matmul %25, %20, %cst_35 {dimension_numbers = #tpu.dot_dimension_numbers<[1], [0], [0], [1], [0, 0, 1, 1], [], []>} : vector<1x288xf32>, vector<288x8xf32>, vector<1x8xf32> -> vector<1x8xf32>
    %27 = arith.mulf %20, %20 : vector<288x8xf32>
    %cst_36 = arith.constant dense<0.000000e+00> : vector<1x8xf32>
    %28 = tpu.matmul %25, %27, %cst_36 {dimension_numbers = #tpu.dot_dimension_numbers<[1], [0], [0], [1], [0, 0, 1, 1], [], []>} : vector<1x288xf32>, vector<288x8xf32>, vector<1x8xf32> -> vector<1x8xf32>
    %c0_i32 = arith.constant 0 : i32
    %29 = arith.cmpi eq, %arg1, %c0_i32 : i32
    %30 = arith.extui %29 : i1 to i32
    %c0_i32_37 = arith.constant 0 : i32
    %31 = arith.cmpi ne, %30, %c0_i32_37 : i32
    scf.if %31 {
      %cst_50 = arith.constant 0.000000e+00 : f32
      %44 = vector.broadcast %cst_50 : f32 to vector<1x8xf32>
      %c0_51 = arith.constant 0 : index
      %c0_52 = arith.constant 0 : index
      %c0_53 = arith.constant 0 : index
      %45 = vector.load %arg6[%c0_51, %c0_52, %c0_53] : memref<1x1x8xf32, #tpu.memory_space<vmem>>, vector<1x1x8xf32>
      %46 = vector.shape_cast %45 : vector<1x1x8xf32> to vector<1x8xf32>
      %47 = vector.shape_cast %44 : vector<1x8xf32> to vector<1x1x8xf32>
      tpu.vector_store %arg6[%c0_51, %c0_52, %c0_53], %47 {strides = array<i32>} : memref<1x1x8xf32, #tpu.memory_space<vmem>>, vector<1x1x8xf32>,
      %cst_54 = arith.constant 0.000000e+00 : f32
      %48 = vector.broadcast %cst_54 : f32 to vector<1x8xf32>
      %c0_55 = arith.constant 0 : index
      %c0_56 = arith.constant 0 : index
      %c0_57 = arith.constant 0 : index
      %49 = vector.load %arg7[%c0_55, %c0_56, %c0_57] : memref<1x1x8xf32, #tpu.memory_space<vmem>>, vector<1x1x8xf32>
      %50 = vector.shape_cast %49 : vector<1x1x8xf32> to vector<1x8xf32>
      %51 = vector.shape_cast %48 : vector<1x8xf32> to vector<1x1x8xf32>
      tpu.vector_store %arg7[%c0_55, %c0_56, %c0_57], %51 {strides = array<i32>} : memref<1x1x8xf32, #tpu.memory_space<vmem>>, vector<1x1x8xf32>,
    } else {
    }
    %c0_38 = arith.constant 0 : index
    %c0_39 = arith.constant 0 : index
    %c0_40 = arith.constant 0 : index
    %32 = vector.load %arg6[%c0_38, %c0_39, %c0_40] : memref<1x1x8xf32, #tpu.memory_space<vmem>>, vector<1x1x8xf32>
    %33 = vector.shape_cast %32 : vector<1x1x8xf32> to vector<1x8xf32>
    %34 = arith.addf %33, %26 : vector<1x8xf32>
    %c0_41 = arith.constant 0 : index
    %c0_42 = arith.constant 0 : index
    %c0_43 = arith.constant 0 : index
    %35 = vector.load %arg6[%c0_41, %c0_42, %c0_43] : memref<1x1x8xf32, #tpu.memory_space<vmem>>, vector<1x1x8xf32>
    %36 = vector.shape_cast %35 : vector<1x1x8xf32> to vector<1x8xf32>
    %37 = vector.shape_cast %34 : vector<1x8xf32> to vector<1x1x8xf32>
    tpu.vector_store %arg6[%c0_41, %c0_42, %c0_43], %37 {strides = array<i32>} : memref<1x1x8xf32, #tpu.memory_space<vmem>>, vector<1x1x8xf32>,
    %c0_44 = arith.constant 0 : index
    %c0_45 = arith.constant 0 : index
    %c0_46 = arith.constant 0 : index
    %38 = vector.load %arg7[%c0_44, %c0_45, %c0_46] : memref<1x1x8xf32, #tpu.memory_space<vmem>>, vector<1x1x8xf32>
    %39 = vector.shape_cast %38 : vector<1x1x8xf32> to vector<1x8xf32>
    %40 = arith.addf %39, %28 : vector<1x8xf32>
    %c0_47 = arith.constant 0 : index
    %c0_48 = arith.constant 0 : index
    %c0_49 = arith.constant 0 : index
    %41 = vector.load %arg7[%c0_47, %c0_48, %c0_49] : memref<1x1x8xf32, #tpu.memory_space<vmem>>, vector<1x1x8xf32>
    %42 = vector.shape_cast %41 : vector<1x1x8xf32> to vector<1x8xf32>
    %43 = vector.shape_cast %40 : vector<1x8xf32> to vector<1x1x8xf32>
    tpu.vector_store %arg7[%c0_47, %c0_48, %c0_49], %43 {strides = array<i32>} : memref<1x1x8xf32, #tpu.memory_space<vmem>>, vector<1x1x8xf32>,
    return
  }
  func.func @transform_0(%arg0: i32, %arg1: i32) -> (i32, i32, i32, i32) {
    %c0_i32 = arith.constant 0 : i32
    %c0_i32_0 = arith.constant 0 : i32
    %c0_i32_1 = arith.constant 0 : i32
    return %arg0, %arg1, %c0_i32, %c0_i32_0 : i32, i32, i32, i32
  }
  func.func @transform_1(%arg0: i32, %arg1: i32) -> (i32, i32) {
    %c0_i32 = arith.constant 0 : i32
    %c0_i32_0 = arith.constant 0 : i32
    %c0_i32_1 = arith.constant 0 : i32
    return %c0_i32, %c0_i32_0 : i32, i32
  }
  func.func @transform_2(%arg0: i32, %arg1: i32) -> (i32, i32) {
    %c0_i32 = arith.constant 0 : i32
    %c0_i32_0 = arith.constant 0 : i32
    %c0_i32_1 = arith.constant 0 : i32
    return %c0_i32, %c0_i32_0 : i32, i32
  }
  func.func @transform_3(%arg0: i32, %arg1: i32) -> (i32, i32, i32, i32) {
    %c0_i32 = arith.constant 0 : i32
    %c0_i32_0 = arith.constant 0 : i32
    %c0_i32_1 = arith.constant 0 : i32
    return %arg0, %arg1, %c0_i32, %c0_i32_0 : i32, i32, i32, i32
  }
  func.func @transform_4(%arg0: i32, %arg1: i32) -> (i32, i32, i32) {
    %c0_i32 = arith.constant 0 : i32
    %c0_i32_0 = arith.constant 0 : i32
    %c0_i32_1 = arith.constant 0 : i32
    return %arg0, %c0_i32, %c0_i32_0 : i32, i32, i32
  }
  func.func @transform_5(%arg0: i32, %arg1: i32) -> (i32, i32, i32) {
    %c0_i32 = arith.constant 0 : i32
    %c0_i32_0 = arith.constant 0 : i32
    %c0_i32_1 = arith.constant 0 : i32
    return %arg0, %c0_i32, %c0_i32_0 : i32, i32, i32
  }
}

module attributes {stable_mosaic.version = 11 : i64} {
  func.func @_bn_gelu_pool_kernel(%arg0: i32, %arg1: i32, %arg2: memref<1x8x2x9x16xbf16, #tpu.memory_space<vmem>>, %arg3: memref<1x1x16xf32, #tpu.memory_space<vmem>>, %arg4: memref<1x1x16xf32, #tpu.memory_space<vmem>>, %arg5: memref<1x8x8x8xbf16, #tpu.memory_space<vmem>>) attributes {dimension_semantics = [#tpu.dimension_semantics<parallel>, #tpu.dimension_semantics<parallel>], iteration_bounds = array<i64: 2, 1>, scalar_prefetch = 0 : i64, scratch_operands = 0 : i64, tpu.core_type = #tpu.core_type<tc>, window_params = [{transform_indices = @transform_0, window_bounds = array<i64: 1, 8, 2, 9, 16>}, {pipeline_mode = #tpu.pipeline_mode<synchronous>, transform_indices = @transform_1, window_bounds = array<i64: 1, 1, 16>}, {pipeline_mode = #tpu.pipeline_mode<synchronous>, transform_indices = @transform_2, window_bounds = array<i64: 1, 1, 16>}, {transform_indices = @transform_3, window_bounds = array<i64: 1, 8, 8, 8>}]} {
    %c0 = arith.constant 0 : index
    %c0_0 = arith.constant 0 : index
    %c0_1 = arith.constant 0 : index
    %0 = vector.load %arg3[%c0, %c0_0, %c0_1] : memref<1x1x16xf32, #tpu.memory_space<vmem>>, vector<1x1x16xf32>
    %c0_2 = arith.constant 0 : index
    %c0_3 = arith.constant 0 : index
    %c0_4 = arith.constant 0 : index
    %1 = vector.load %arg4[%c0_2, %c0_3, %c0_4] : memref<1x1x16xf32, #tpu.memory_space<vmem>>, vector<1x1x16xf32>
    %c0_5 = arith.constant 0 : index
    %c0_6 = arith.constant 0 : index
    %c0_7 = arith.constant 0 : index
    %c0_8 = arith.constant 0 : index
    %c0_9 = arith.constant 0 : index
    %2 = vector.load %arg2[%c0_5, %c0_6, %c0_7, %c0_8, %c0_9] : memref<1x8x2x9x16xbf16, #tpu.memory_space<vmem>>, vector<1x8x1x9x16xbf16>
    %3 = vector.shape_cast %2 : vector<1x8x1x9x16xbf16> to vector<8x9x16xbf16>
    %4 = arith.extf %3 : vector<8x9x16xbf16> to vector<8x9x16xf32>
    %5 = vector.broadcast %0 : vector<1x1x16xf32> to vector<8x9x16xf32>
    %6 = arith.mulf %4, %5 : vector<8x9x16xf32>
    %7 = vector.broadcast %1 : vector<1x1x16xf32> to vector<8x9x16xf32>
    %8 = arith.addf %6, %7 : vector<8x9x16xf32>
    %cst = arith.constant 5.000000e-01 : f32
    %9 = vector.broadcast %cst : f32 to vector<8x9x16xf32>
    %10 = arith.mulf %9, %8 : vector<8x9x16xf32>
    %cst_10 = arith.constant 0.707106769 : f32
    %11 = vector.broadcast %cst_10 : f32 to vector<8x9x16xf32>
    %12 = arith.mulf %8, %11 : vector<8x9x16xf32>
    %13 = math.erf %12 : vector<8x9x16xf32>
    %cst_11 = arith.constant 1.000000e+00 : f32
    %14 = vector.broadcast %cst_11 : f32 to vector<8x9x16xf32>
    %15 = arith.addf %14, %13 : vector<8x9x16xf32>
    %16 = arith.mulf %10, %15 : vector<8x9x16xf32>
    %c0_12 = arith.constant 0 : index
    %c0_13 = arith.constant 0 : index
    %c1 = arith.constant 1 : index
    %c0_14 = arith.constant 0 : index
    %c0_15 = arith.constant 0 : index
    %17 = vector.load %arg2[%c0_12, %c0_13, %c1, %c0_14, %c0_15] : memref<1x8x2x9x16xbf16, #tpu.memory_space<vmem>>, vector<1x8x1x9x16xbf16>
    %18 = vector.shape_cast %17 : vector<1x8x1x9x16xbf16> to vector<8x9x16xbf16>
    %19 = arith.extf %18 : vector<8x9x16xbf16> to vector<8x9x16xf32>
    %20 = vector.broadcast %0 : vector<1x1x16xf32> to vector<8x9x16xf32>
    %21 = arith.mulf %19, %20 : vector<8x9x16xf32>
    %22 = vector.broadcast %1 : vector<1x1x16xf32> to vector<8x9x16xf32>
    %23 = arith.addf %21, %22 : vector<8x9x16xf32>
    %cst_16 = arith.constant 5.000000e-01 : f32
    %24 = vector.broadcast %cst_16 : f32 to vector<8x9x16xf32>
    %25 = arith.mulf %24, %23 : vector<8x9x16xf32>
    %cst_17 = arith.constant 0.707106769 : f32
    %26 = vector.broadcast %cst_17 : f32 to vector<8x9x16xf32>
    %27 = arith.mulf %23, %26 : vector<8x9x16xf32>
    %28 = math.erf %27 : vector<8x9x16xf32>
    %cst_18 = arith.constant 1.000000e+00 : f32
    %29 = vector.broadcast %cst_18 : f32 to vector<8x9x16xf32>
    %30 = arith.addf %29, %28 : vector<8x9x16xf32>
    %31 = arith.mulf %25, %30 : vector<8x9x16xf32>
    %32 = arith.maximumf %16, %31 : vector<8x9x16xf32>
    %33 = vector.extract_strided_slice %32 {offsets = [0, 0, 0], sizes = [8, 9, 8], strides = [1, 1, 1]} : vector<8x9x16xf32> to vector<8x9x8xf32>
    %34 = vector.extract_strided_slice %32 {offsets = [0, 0, 8], sizes = [8, 9, 8], strides = [1, 1, 1]} : vector<8x9x16xf32> to vector<8x9x8xf32>
    %35 = arith.maximumf %33, %34 : vector<8x9x8xf32>
    %36 = vector.extract_strided_slice %35 {offsets = [0, 0, 0], sizes = [8, 8, 8], strides = [1, 1, 1]} : vector<8x9x8xf32> to vector<8x8x8xf32>
    %37 = arith.truncf %36 : vector<8x8x8xf32> to vector<8x8x8xbf16>
    %c0_19 = arith.constant 0 : index
    %c0_20 = arith.constant 0 : index
    %c0_21 = arith.constant 0 : index
    %c0_22 = arith.constant 0 : index
    %38 = vector.load %arg5[%c0_19, %c0_20, %c0_21, %c0_22] : memref<1x8x8x8xbf16, #tpu.memory_space<vmem>>, vector<1x8x8x8xbf16>
    %39 = vector.shape_cast %38 : vector<1x8x8x8xbf16> to vector<8x8x8xbf16>
    %40 = vector.shape_cast %37 : vector<8x8x8xbf16> to vector<1x8x8x8xbf16>
    tpu.vector_store %arg5[%c0_19, %c0_20, %c0_21, %c0_22], %40 {strides = array<i32>} : memref<1x8x8x8xbf16, #tpu.memory_space<vmem>>, vector<1x8x8x8xbf16>,
    return
  }
  func.func @transform_0(%arg0: i32, %arg1: i32) -> (i32, i32, i32, i32, i32) {
    %c0_i32 = arith.constant 0 : i32
    %c0_i32_0 = arith.constant 0 : i32
    %c0_i32_1 = arith.constant 0 : i32
    %c0_i32_2 = arith.constant 0 : i32
    return %arg0, %arg1, %c0_i32, %c0_i32_0, %c0_i32_1 : i32, i32, i32, i32, i32
  }
  func.func @transform_1(%arg0: i32, %arg1: i32) -> (i32, i32, i32) {
    %c0_i32 = arith.constant 0 : i32
    %c0_i32_0 = arith.constant 0 : i32
    %c0_i32_1 = arith.constant 0 : i32
    %c0_i32_2 = arith.constant 0 : i32
    return %c0_i32, %c0_i32_0, %c0_i32_1 : i32, i32, i32
  }
  func.func @transform_2(%arg0: i32, %arg1: i32) -> (i32, i32, i32) {
    %c0_i32 = arith.constant 0 : i32
    %c0_i32_0 = arith.constant 0 : i32
    %c0_i32_1 = arith.constant 0 : i32
    %c0_i32_2 = arith.constant 0 : i32
    return %c0_i32, %c0_i32_0, %c0_i32_1 : i32, i32, i32
  }
  func.func @transform_3(%arg0: i32, %arg1: i32) -> (i32, i32, i32, i32) {
    %c0_i32 = arith.constant 0 : i32
    %c0_i32_0 = arith.constant 0 : i32
    %c0_i32_1 = arith.constant 0 : i32
    return %arg0, %arg1, %c0_i32, %c0_i32_0 : i32, i32, i32, i32
  }
}

</mosaic_0001>

<bundles_post_ra>
// kernel: tile.43
= control target key start
LH: loop header
LB: loop body
LE: loop exit
PB: predicated region body
PF: predicated region fallthrough
CT: control target
= control target key end

     0   :  { %s34_s0 = inlined_call_operand.vmem [shape: f32[8], index: 0, kind: input, shape index: {}]   ;;  %s35_s1 = inlined_call_operand.vmem [shape: f32[18,8], index: 1, kind: output, shape index: {}]  }
   0x1   :  { %v4_v0 = vld [vmem:[%s34_s0] ss:$0 sm:$0xff] }
   0x2   :  { %5 = vst [vmem:[%s35_s1] sm:$0xff] %v4_v0  ;;  %10 = vst [vmem:[%s35_s1 + $0x8] sm:$0xff] %v4_v0 }
   0x3   :  { %11 = vst [vmem:[%s35_s1 + $0x10] sm:$0xff] %v4_v0 }

// kernel: tile.44
= control target key start
LH: loop header
LB: loop body
LE: loop exit
PB: predicated region body
PF: predicated region fallthrough
CT: control target
= control target key end

     0   :  { %s139_s10 = smov 120   ;;  %s140_s11 = smov 104   ;;  %vm4_vm0 = vcmask 64512   ;;  %vm10_vm1 = vcmask 1048512   ;;  %vm16_vm2 = vcmask 982912   ;;  %vm22_vm3 = vcmask 917312   ;;  %s218_s0 = inlined_call_operand.vmem [shape: f32[18,8], index: 0, kind: input, shape index: {}]   ;;  %s219_s1 = inlined_call_operand.vmem [shape: f32[1,144], index: 1, kind: output, shape index: {}]  }
   0x1   :  { %v108_v0 = vld [vmem:[%s218_s0 + $0xf] sm:$0x1]   ;;  %v110_v1 = vld [vmem:[%s218_s0 + $0xd] sm:$0x1]   ;;  %v109_v2 = vld [vmem:[%s218_s0 + $0xe] sm:$0x1]  }
   0x2   :  { %8 = vrot.lane.b32.xlu0 %v108_v0, %s139_s10  ;;  %20 = vrot.lane.b32.xlu1 %v110_v1, %s140_s11  ;;  %v111_v3 = vld [vmem:[%s218_s0 + $0xc] sm:$0x1]   ;;  %s141_s16 = smov 112   ;;  %s142_s17 = smov 96   ;;  %v112_v4 = vld [vmem:[%s218_s0 + $0xb] sm:$0x1]  }
   0x3   :  { %v113_v5 = vld [vmem:[%s218_s0 + $0xa] sm:$0x1]   ;;  %s2_s22 = smov 3  ;;  %s143_s23 = smov 88   ;;  %v114_v7 = vld [vmem:[%s218_s0 + $0x9] sm:$0x1]  }
   0x4   :  { %s144_s24 = smov 80   ;;  %v3_v6 = vld [vmem:[%s218_s0] ss:$16 sm:%s2_s22]   ;;  %v115_v8 = vld [vmem:[%s218_s0 + $0x8] sm:$0x1]   ;;  %s145_s2 = smov 72  }
   0x5   :  { %5 = vst.msk [vmem:[#allocation0] ss:$8 sm:$0x3] %vm4_vm0, %v3_v6   ;;  %s146_s3 = smov 64   ;;  %v116_v9 = vld [vmem:[%s218_s0 + $0x7] sm:$0x1]  }
   0x6   :  { %14 = vrot.lane.b32.xlu0 %v109_v2, %s141_s16  ;;  %26 = vrot.lane.b32.xlu1 %v111_v3, %s142_s17  ;;  %v117_v10 = vld [vmem:[%s218_s0 + $0x6] sm:$0x1]   ;;  %s147_s8 = smov 56   ;;  %s148_s9 = smov 48   ;;  %v118_v11 = vld [vmem:[%s218_s0 + $0x5] sm:$0x1]  }
   0x7   :  { %v119_v12 = vld [vmem:[%s218_s0 + $0x4] sm:$0x1]   ;;  %s149_s14 = smov 40   ;;  %s150_s15 = smov 32   ;;  %v120_v13 = vld [vmem:[%s218_s0 + $0x3] sm:$0x1]  }
   0x8   :  { %v121_v14 = vld [vmem:[%s218_s0 + $0x2] sm:$0x1]   ;;  %s91_s20 = smov 3  ;;  %s151_s21 = smov 24   ;;  %vm28_vm4 = vcmask 851712   ;;  %vm34_vm5 = vcmask 786112  }
   0x9   :  { %s152_s22 = smov 16   ;;  %v122_v15 = vld [vmem:[%s218_s0 + $0x1] ss:$16 sm:%s91_s20]   ;;  %s153_s0 = smov 8   ;;  %vm40_vm6 = vcmask 720512   ;;  %vm46_vm7 = vcmask 654912  }
   0xa   :  { %32 = vrot.lane.b32.xlu0 %v112_v4, %s143_s23  ;;  %38 = vrot.lane.b32.xlu1 %v113_v5, %s144_s24  ;;  %vm52_vm8 = vcmask 589312   ;;  %vm58_vm9 = vcmask 523712   ;;  %vm64_vm10 = vcmask 458112   ;;  %vm70_vm11 = vcmask 392512  }
   0xb   :  { %vm76_vm12 = vcmask 326912   ;;  %vm82_vm13 = vcmask 261312   ;;  %vm88_vm14 = vcmask 195712   ;;  %vm95_vm15 = vcmask 130112  }
   0xe   :  { %44 = vrot.lane.b32.xlu0 %v114_v7, %s145_s2  ;;  %50 = vrot.lane.b32.xlu1 %v115_v8, %s146_s3 }
  0x12   :  { %56 = vrot.lane.b32.xlu0 %v116_v9, %s147_s8  ;;  %62 = vrot.lane.b32.xlu1 %v117_v10, %s148_s9 }
  0x16   :  { %68 = vrot.lane.b32.xlu0 %v118_v11, %s149_s14  ;;  %74 = vrot.lane.b32.xlu1 %v119_v12, %s150_s15 }
  0x1a   :  { %80 = vrot.lane.b32.xlu0 %v120_v13, %s151_s21  ;;  %86 = vrot.lane.b32.xlu1 %v121_v14, %s152_s22 }
  0x1e   :  { %93 = vrot.lane.b32.xlu0 %v122_v15, %s153_s0 }
  0x74   :  { %v9_v16 = vpop.permute.xlu0 %8   ;;  %v21_v17 = vpop.permute.xlu1 %20  }
  0x75   :  { %11 = vst.msk [vmem:[#allocation0] sm:$0x1] %vm10_vm1, %v9_v16  }
  0x78   :  { %v15_v18 = vpop.permute.xlu0 %14   ;;  %v27_v19 = vpop.permute.xlu1 %26  }
  0x79   :  { %17 = vst.msk [vmem:[#allocation0] sm:$0x1] %vm16_vm2, %v15_v18  }
  0x7a   :  { %23 = vst.msk [vmem:[#allocation0] sm:$0x1] %vm22_vm3, %v21_v17  }
  0x7b   :  { %29 = vst.msk [vmem:[#allocation0] sm:$0x1] %vm28_vm4, %v27_v19  }
  0x7c   :  { %v33_v20 = vpop.permute.xlu0 %32   ;;  %v39_v21 = vpop.permute.xlu1 %38  }
  0x7d   :  { %35 = vst.msk [vmem:[#allocation0] sm:$0x1] %vm34_vm5, %v33_v20  }
  0x7e   :  { %41 = vst.msk [vmem:[#allocation0] sm:$0x1] %vm40_vm6, %v39_v21  }
  0x80   :  { %v45_v22 = vpop.permute.xlu0 %44   ;;  %v51_v23 = vpop.permute.xlu1 %50  }
  0x81   :  { %47 = vst.msk [vmem:[#allocation0] sm:$0x1] %vm46_vm7, %v45_v22  }
  0x82   :  { %53 = vst.msk [vmem:[#allocation0] sm:$0x1] %vm52_vm8, %v51_v23  }
  0x84   :  { %v57_v24 = vpop.permute.xlu0 %56   ;;  %v63_v25 = vpop.permute.xlu1 %62  }
  0x85   :  { %59 = vst.msk [vmem:[#allocation0] sm:$0x1] %vm58_vm9, %v57_v24  }
  0x86   :  { %65 = vst.msk [vmem:[#allocation0] sm:$0x1] %vm64_vm10, %v63_v25  }
  0x88   :  { %v69_v26 = vpop.permute.xlu0 %68   ;;  %v75_v27 = vpop.permute.xlu1 %74  }
  0x89   :  { %71 = vst.msk [vmem:[#allocation0] sm:$0x1] %vm70_vm11, %v69_v26  }
  0x8a   :  { %77 = vst.msk [vmem:[#allocation0] sm:$0x1] %vm76_vm12, %v75_v27  }
  0x8c   :  { %v81_v28 = vpop.permute.xlu0 %80   ;;  %v87_v29 = vpop.permute.xlu1 %86  }
  0x8d   :  { %83 = vst.msk [vmem:[#allocation0] sm:$0x1] %vm82_vm13, %v81_v28  }
  0x8e   :  { %89 = vst.msk [vmem:[#allocation0] sm:$0x1] %vm88_vm14, %v87_v29  }
  0x90   :  { %v94_v30 = vpop.permute.xlu0 %93  }
  0x91   :  { %96 = vst.msk [vmem:[#allocation0] ss:$8 sm:$0x3] %vm95_vm15, %v94_v30  }
  0x98   :  { %v100_v31 = vld [vmem:[#allocation0] sm:$0x1]  ;;  %v104_v32 = vld [vmem:[#allocation0 + $0x8] sm:$0x1] }
  0x99   :  { %102 = vst [vmem:[%s219_s1] sm:$0x1] %v100_v31  ;;  %123 = vst [vmem:[%s219_s1 + $0x1] sm:$0x1] %v104_v32 }

// kernel: tile.73
= control target key start
LH: loop header
LB: loop body
LE: loop exit
PB: predicated region body
PF: predicated region fallthrough
CT: control target
= control target key end

     0   :  { %s22_s0 = inlined_call_operand.vmem [shape: f32[8], index: 0, kind: input, shape index: {}]   ;;  %s23_s1 = inlined_call_operand.vmem [shape: f32[2,8], index: 1, kind: output, shape index: {}]  }
   0x1   :  { %v4_v0 = vld [vmem:[%s22_s0] ss:$0 sm:$0xff] }
   0x2   :  { %5 = vst [vmem:[%s23_s1] sm:$0x3] %v4_v0 }

// kernel: tile.74
= control target key start
LH: loop header
LB: loop body
LE: loop exit
PB: predicated region body
PF: predicated region fallthrough
CT: control target
= control target key end

     0   :  { %vm7_vm0 = vcmask 64512   ;;  %vm13_vm1 = vcmask 130112   ;;  %s39_s0 = inlined_call_operand.vmem [shape: f32[2,8], index: 0, kind: input, shape index: {}]   ;;  %s40_s1 = inlined_call_operand.vmem [shape: f32[1,1,16], index: 1, kind: output, shape index: {}]  }
   0x1   :  { %v4_v0 = vld [vmem:[%s39_s0] sm:$0x3]  ;;  %s22_s0 = smov 8  }
   0x2   :  { %5 = vst [vmem:[#allocation1] sm:$0x3] %v4_v0 }
   0x9   :  { %v10_v1 = vld [vmem:[#allocation1 + $0x1] sm:$0x1]   ;;  %v6_v2 = vld [vmem:[#allocation1] sm:$0x1]  }
   0xa   :  { %11 = vrot.lane.b32.xlu0 %v10_v1, %s22_s0  ;;  %8 = vst.msk [vmem:[#allocation0] sm:$0x1] %vm7_vm0, %v6_v2  }
  0x7c   :  { %v12_v3 = vpop.permute.xlu0 %11  }
  0x7d   :  { %14 = vst.msk [vmem:[#allocation0] sm:$0x1] %vm13_vm1, %v12_v3  }
  0x84   :  { %v18_v4 = vld [vmem:[#allocation0] sm:$0x1] }
  0x85   :  { %20 = vst [vmem:[%s40_s1] sm:$0x1] %v18_v4 }

// kernel: unet_down_forward.9
= control target key start
LH: loop header
LB: loop body
LE: loop exit
PB: predicated region body
PF: predicated region fallthrough
CT: control target
= control target key end

     0   :  { %v24_v0 = vlaneseq  ;;  %s153_s0 = inlined_call_operand.vmem [shape: bf16[32,144], index: 0, kind: input, shape index: {}]   ;;  %s154_s1 = inlined_call_operand.vmem [shape: f32[1,144], index: 1, kind: input, shape index: {}]   ;;  %s155_s2 = inlined_call_operand.vmem [shape: f32[1,144], index: 2, kind: input, shape index: {}]   ;;  %s156_s3 = inlined_call_operand.vmem [shape: bf16[32,128], index: 3, kind: output, shape index: {}]  }
   0x1   :  { %v14_v1 = vld [vmem:[%s153_s0] ss:$8 sps:$4 sm:$0xff]   ;;  %v16_v3 = vld [vmem:[%s153_s0 + $0x10] ss:$8 sps:$4 sm:$0xff]  }
   0x2   :  { %v25_v2 = vshrl.u32 %v24_v0, 7  ;;  %v18_v4 = vunpack.c.l.bf16 %v14_v1  ;;  %v22_v5 = vld [vmem:[%s154_s1] sm:$0x3]  ;;  %v19_v7 = vunpack.c.h.bf16 %v14_v1  ;;  %v20_v9 = vunpack.c.l.bf16 %v16_v3 }
   0x3   :  { %v33_v6 = vld [vmem:[%s155_s2] sm:$0x3]  ;;  %v21_v10 = vunpack.c.h.bf16 %v16_v3 }
   0x4   :  { %v26_v8 = vsub.s32 0, %v25_v2 }
   0x6   :  { %v27_v11 = vrot.slane %v22_v5, %v26_v8  ;;  %v38_v12 = vrot.slane %v33_v6, %v26_v8 }
   0x8   :  { %v29_v13 = vmul.f32 %v27_v11, %v18_v4  ;;  %v30_v14 = vmul.f32 %v27_v11, %v19_v7  ;;  %v31_v15 = vmul.f32 %v27_v11, %v20_v9  ;;  %v32_v16 = vmul.f32 %v27_v11, %v21_v10 }
   0xa   :  { %v40_v17 = vadd.f32 %v38_v12, %v29_v13  ;;  %v41_v18 = vadd.f32 %v38_v12, %v30_v14  ;;  %v42_v19 = vadd.f32 %v38_v12, %v31_v15  ;;  %v43_v20 = vadd.f32 %v38_v12, %v32_v16 }
   0xc   :  { %v48_v21 = vmul.f32 0.70710677, %v40_v17  ;;  %v49_v22 = vmul.f32 0.70710677, %v41_v18  ;;  %v50_v23 = vmul.f32 0.70710677, %v42_v19 }
   0xd   :  { %v51_v24 = vmul.f32 0.70710677, %v43_v20  ;;  %v44_v25 = vmul.f32 0.5, %v40_v17  ;;  %v45_v27 = vmul.f32 0.5, %v41_v18  ;;  %v46_v30 = vmul.f32 0.5, %v42_v19 }
   0xe   :  { %107 = verf.f32 %v48_v21  ;;  %v47_v33 = vmul.f32 0.5, %v43_v20 }
   0xf   :  { %109 = verf.f32 %v49_v22 }
  0x10   :  { %111 = verf.f32 %v50_v23 }
  0x11   :  { %113 = verf.f32 %v51_v24 }
  0x18   :  { %v108_v26 = vpop.eup %107 }
  0x19   :  { %v110_v28 = vpop.eup %109  ;;  %v56_v29 = vadd.f32 1.0, %v108_v26 }
  0x1a   :  { %v112_v31 = vpop.eup %111  ;;  %v57_v32 = vadd.f32 1.0, %v110_v28 }
  0x1b   :  { %v114_v34 = vpop.eup %113  ;;  %v60_v35 = vmul.f32 %v56_v29, %v44_v25  ;;  %v58_v36 = vadd.f32 1.0, %v112_v31 }
  0x1c   :  { %v61_v37 = vmul.f32 %v57_v32, %v45_v27  ;;  %v59_v38 = vadd.f32 1.0, %v114_v34 }
  0x1d   :  { %v62_v39 = vmul.f32 %v58_v36, %v46_v30 }
  0x1e   :  { %v99_v40 = vpack.c.bf16 %v61_v37, %v60_v35  ;;  %v63_v41 = vmul.f32 %v59_v38, %v47_v33 }
  0x20   :  { %100 = vst [vmem:[%s156_s3] sm:$0xff] %v99_v40   ;;  %v104_v42 = vpack.c.bf16 %v63_v41, %v62_v39 }
  0x22   :  { %106 = vst [vmem:[%s156_s3 + $0x8] sm:$0xff] %v104_v42  }

// kernel: unet_down_forward.15
= control target key start
LH: loop header
LB: loop body
LE: loop exit
PB: predicated region body
PF: predicated region fallthrough
CT: control target
= control target key end

     0   :  { %s672_s12 = smov 0   ;;  %s674_s13 = smov 0   ;;  %s807_s0 = inlined_call_operand.vmem [shape: bf16[2,8,2,9,16], index: 0, kind: input, shape index: {}]   ;;  %s808_s1 = inlined_call_operand.vmem [shape: f32[1,1,16], index: 1, kind: input, shape index: {}]   ;;  %s809_s2 = inlined_call_operand.vmem [shape: f32[1,1,16], index: 2, kind: input, shape index: {}]   ;;  %s810_s3 = inlined_call_operand.vmem [shape: bf16[2,8,8,8], index: 3, kind: output, shape index: {}]  }
   0x1   :  { %s676_s14 = smov 0  }
   0x2 LB: > { %s25_s15 = sadd.s32 1, %s645_s13  ;;  %p531_p0 = scmp.ge.s32.totalorder %s649_s14, 1  ;;  %s649_s14 = sphi %s676_s14, %s13_s14   ;;  %s645_s13 = sphi %s674_s13, %s812_s13   ;;  %s641_s12 = sphi %s672_s12, %s811_s12  }
   0x3   : > { %p27_p1 = scmp.ge.s32.totalorder %s25_s15, 2  ;;  %p159_p2 = scmp.lt.s32.totalorder %s649_s14, 3 }
   0x5   : > { %s814_s15 = smov (%p27_p1, %s25_s15), 0  ;;  %p160_p3 = pnand %p531_p0, %p159_p2 }
   0x6   : > { %p193_p4 = scmp.lt.s32.totalorder (!%p160_p3), %s641_s12, 1  ;;  %v701_v0 = vld [vmem:[%s808_s1] ss:$0 sm:$0xff] (!%p160_p3)  ;;  %s651_s24 = smov (!%p160_p3), 120   ;;  %vm428_vm0 = vcmask (!%p160_p3), 60416  }
   0x7   : > { %163 = sbr.rel (%p160_p3) target bundleno = 185 (0xb9), region = 32  ;;  %v710_v9 = vld [vmem:[%s809_s2] ss:$0 sm:$0xff] (!%p160_p3) }
   0xe   : > { %s816_s12 = smov (!%p193_p4, %s641_s12), 1 }
   0xf   : > { %s548_s16 = sshll.u32 %s816_s12, 7  ;;  %s549_s25 = sshll.u32 %s816_s12, 5 }
  0x10   : > { %s696_s19 = scalar_lea.vmem %s807_s0, %s548_s16  ;;  %s780_s28 = scalar_lea.vmem %s810_s3, %s549_s25 }
  0x11   : > { %v219_v1 = vld [vmem:[%s696_s19 + $0x40] ss:$16 sps:$4 sm:$0xff]   ;;  %v542_v2 = vld [vmem:[%s696_s19 + $0x48] ss:$16 sps:$4 sm:$0xff]  }
  0x12   : > { %v215_v3 = vld [vmem:[%s696_s19] ss:$16 sps:$4 sm:$0xff]   ;;  %v227_v4 = vunpack.c.l.bf16 %v219_v1  ;;  %v228_v5 = vunpack.c.h.bf16 %v219_v1  ;;  %v312_v6 = vunpack.c.l.bf16 %v542_v2  ;;  %v313_v7 = vunpack.c.h.bf16 %v542_v2  ;;  %v538_v8 = vld [vmem:[%s696_s19 + $0x8] ss:$16 sps:$4 sm:$0xff]  }
  0x13   : > { %v223_v10 = vunpack.c.l.bf16 %v215_v3  ;;  %v224_v11 = vunpack.c.h.bf16 %v215_v3  ;;  %v308_v12 = vunpack.c.l.bf16 %v538_v8  ;;  %v309_v13 = vunpack.c.h.bf16 %v538_v8  ;;  %v221_v34 = vld [vmem:[%s696_s19 + $0x60] ss:$16 sps:$4 sm:$0xff]   ;;  %v544_v36 = vld [vmem:[%s696_s19 + $0x68] ss:$16 sps:$4 sm:$0xff]  }
  0x14   : > { %v241_v14 = vmul.f32 %v701_v0, %v227_v4  ;;  %v242_v15 = vmul.f32 %v701_v0, %v228_v5  ;;  %v320_v16 = vmul.f32 %v701_v0, %v312_v6  ;;  %v321_v17 = vmul.f32 %v701_v0, %v313_v7  ;;  %v217_v39 = vld [vmem:[%s696_s19 + $0x20] ss:$16 sps:$4 sm:$0xff]   ;;  %v540_v62 = vld [vmem:[%s696_s19 + $0x28] ss:$16 sps:$4 sm:$0xff]  }
  0x15   : > { %v237_v18 = vmul.f32 %v701_v0, %v223_v10  ;;  %v238_v19 = vmul.f32 %v701_v0, %v224_v11  ;;  %v316_v20 = vmul.f32 %v701_v0, %v308_v12  ;;  %v317_v21 = vmul.f32 %v701_v0, %v309_v13 }
  0x16   : > { %v255_v22 = vadd.f32 %v710_v9, %v241_v14  ;;  %v256_v23 = vadd.f32 %v710_v9, %v242_v15  ;;  %v328_v24 = vadd.f32 %v710_v9, %v320_v16  ;;  %v329_v25 = vadd.f32 %v710_v9, %v321_v17 }
  0x17   : > { %v251_v26 = vadd.f32 %v710_v9, %v237_v18  ;;  %v252_v27 = vadd.f32 %v710_v9, %v238_v19  ;;  %v324_v30 = vadd.f32 %v710_v9, %v316_v20  ;;  %v728_v31 = vadd.f32 %v710_v9, %v317_v21 }
  0x18   : > { %v271_v28 = vmul.f32 0.70710677, %v255_v22  ;;  %v272_v29 = vmul.f32 0.70710677, %v256_v23  ;;  %v344_v32 = vmul.f32 0.70710677, %v328_v24  ;;  %v229_v42 = vunpack.c.l.bf16 %v221_v34 }
  0x19   : > { %v345_v33 = vmul.f32 0.70710677, %v329_v25  ;;  %v267_v35 = vmul.f32 0.70710677, %v251_v26  ;;  %v263_v37 = vmul.f32 0.5, %v255_v22  ;;  %v230_v43 = vunpack.c.h.bf16 %v221_v34 }
  0x1a   : > { %595 = verf.f32 %v271_v28  ;;  %v268_v38 = vmul.f32 0.70710677, %v252_v27  ;;  %v340_v40 = vmul.f32 0.70710677, %v324_v30  ;;  %v341_v41 = vmul.f32 0.70710677, %v728_v31 }
  0x1b   : > { %597 = verf.f32 %v272_v29  ;;  %v314_v44 = vunpack.c.l.bf16 %v544_v36  ;;  %v315_v45 = vunpack.c.h.bf16 %v544_v36  ;;  %v243_v46 = vmul.f32 %v701_v0, %v229_v42 }
  0x1c   : > { %599 = verf.f32 %v344_v32  ;;  %v225_v47 = vunpack.c.l.bf16 %v217_v39  ;;  %v226_v48 = vunpack.c.h.bf16 %v217_v39  ;;  %v244_v49 = vmul.f32 %v701_v0, %v230_v43 }
  0x1d   : > { %601 = verf.f32 %v345_v33  ;;  %v322_v50 = vmul.f32 %v701_v0, %v314_v44  ;;  %v323_v51 = vmul.f32 %v701_v0, %v315_v45  ;;  %v257_v52 = vadd.f32 %v710_v9, %v243_v46 }
  0x1e   : > { %603 = verf.f32 %v267_v35  ;;  %v239_v53 = vmul.f32 %v701_v0, %v225_v47  ;;  %v240_v54 = vmul.f32 %v701_v0, %v226_v48  ;;  %v258_v55 = vadd.f32 %v710_v9, %v244_v49 }
  0x1f   : > { %605 = verf.f32 %v268_v38  ;;  %v743_v56 = vadd.f32 %v710_v9, %v322_v50  ;;  %v746_v57 = vadd.f32 %v710_v9, %v323_v51  ;;  %v264_v58 = vmul.f32 0.5, %v256_v23 }
  0x20   : > { %607 = verf.f32 %v340_v40  ;;  %v273_v59 = vmul.f32 0.70710677, %v257_v52  ;;  %v749_v60 = vadd.f32 %v710_v9, %v239_v53  ;;  %v752_v61 = vadd.f32 %v710_v9, %v240_v54 }
  0x21   : > { %609 = verf.f32 %v341_v41  ;;  %v336_v63 = vmul.f32 0.5, %v328_v24  ;;  %v337_v1 = vmul.f32 0.5, %v329_v25  ;;  %v259_v2 = vmul.f32 0.5, %v251_v26 }
  0x22   : > { %v274_v3 = vmul.f32 0.70710677, %v258_v55  ;;  %v260_v5 = vmul.f32 0.5, %v252_v27  ;;  %611 = verf.f32 %v273_v59  ;;  %v346_v6 = vmul.f32 0.70710677, %v743_v56 }
  0x23   : > { %v347_v7 = vmul.f32 0.70710677, %v746_v57  ;;  %v332_v11 = vmul.f32 0.5, %v324_v30  ;;  %v269_v12 = vmul.f32 0.70710677, %v749_v60  ;;  %v310_v16 = vunpack.c.l.bf16 %v540_v62 }
  0x24   : > { %v596_v4 = vpop.eup %595  ;;  %613 = verf.f32 %v274_v3  ;;  %v270_v15 = vmul.f32 0.70710677, %v752_v61  ;;  %v311_v20 = vunpack.c.h.bf16 %v540_v62  ;;  %v333_v24 = vmul.f32 0.5, %v728_v31 }
  0x25   : > { %v598_v8 = vpop.eup %597  ;;  %v287_v10 = vadd.f32 1.0, %v596_v4  ;;  %615 = verf.f32 %v346_v6  ;;  %v318_v25 = vmul.f32 %v701_v0, %v310_v16  ;;  %v265_v43 = vmul.f32 0.5, %v257_v52 }
  0x26   : > { %v600_v13 = vpop.eup %599  ;;  %v288_v14 = vadd.f32 1.0, %v598_v8  ;;  %617 = verf.f32 %v347_v7  ;;  %v319_v29 = vmul.f32 %v701_v0, %v311_v20  ;;  %v266_v48 = vmul.f32 0.5, %v258_v55 }
  0x27   : > { %v602_v17 = vpop.eup %601  ;;  %v295_v18 = vmul.f32 %v287_v10, %v263_v37  ;;  %v360_v19 = vadd.f32 1.0, %v600_v13  ;;  %619 = verf.f32 %v269_v12  ;;  %v326_v34 = vadd.f32 %v710_v9, %v318_v25 }
  0x28   : > { %v604_v21 = vpop.eup %603  ;;  %v296_v22 = vmul.f32 %v288_v14, %v264_v58  ;;  %v361_v23 = vadd.f32 1.0, %v602_v17  ;;  %621 = verf.f32 %v270_v15  ;;  %v327_v31 = vadd.f32 %v710_v9, %v319_v29 }
  0x29   : > { %v606_v26 = vpop.eup %605  ;;  %v368_v27 = vmul.f32 %v360_v19, %v336_v63  ;;  %v283_v28 = vadd.f32 1.0, %v604_v21  ;;  %v342_v44 = vmul.f32 0.70710677, %v326_v34  ;;  %v338_v53 = vmul.f32 0.5, %v743_v56 }
  0x2a   : > { %v608_v30 = vpop.eup %607  ;;  %v369_v32 = vmul.f32 %v361_v23, %v337_v1  ;;  %v284_v33 = vadd.f32 1.0, %v606_v26  ;;  %v343_v0 = vmul.f32 0.70710677, %v327_v31  ;;  %v339_v52 = vmul.f32 0.5, %v746_v57 }
  0x2b   : > { %v610_v35 = vpop.eup %609  ;;  %v763_v36 = vmax.f32 %v295_v18, %v368_v27  ;;  %v291_v37 = vmul.f32 %v283_v28, %v259_v2  ;;  %v356_v38 = vadd.f32 1.0, %v608_v30  ;;  %623 = verf.f32 %v342_v44 }
  0x2c   : > { %v377_v39 = vmax.f32 %v296_v22, %v369_v32  ;;  %v292_v40 = vmul.f32 %v284_v33, %v260_v5  ;;  %v357_v41 = vadd.f32 1.0, %v610_v35  ;;  %v612_v45 = vpop.eup %611  ;;  %625 = verf.f32 %v343_v0 }
  0x2d   : > { %v364_v42 = vmul.f32 %v356_v38, %v332_v11  ;;  %v289_v51 = vadd.f32 1.0, %v612_v45  ;;  %v261_v8 = vmul.f32 0.5, %v749_v60  ;;  %v262_v57 = vmul.f32 0.5, %v752_v61 }
  0x2e   : > { %v585_v46 = vpack.i.bf16 %v377_v39, %v763_v36  ;;  %v365_v47 = vmul.f32 %v357_v41, %v333_v24  ;;  %v614_v49 = vpop.eup %613  ;;  %v334_v13 = vmul.f32 0.5, %v326_v34  ;;  %v335_v15 = vmul.f32 0.5, %v327_v31 }
  0x2f   : > { %v372_v50 = vmax.f32 %v291_v37, %v364_v42  ;;  %v616_v54 = vpop.eup %615  ;;  %v290_v58 = vadd.f32 1.0, %v614_v49  ;;  %v297_v62 = vmul.f32 %v289_v51, %v265_v43 }
  0x30   : > { %586 = vrot.lane.b32.xlu1 %v585_v46, %s651_s24  ;;  %v373_v9 = vmax.f32 %v292_v40, %v365_v47  ;;  %v618_v59 = vpop.eup %617  ;;  %v362_v63 = vadd.f32 1.0, %v616_v54 }
  0x31   : > { %v298_v55 = vmul.f32 %v290_v58, %v266_v48  ;;  %v363_v2 = vadd.f32 1.0, %v618_v59  ;;  %v620_v3 = vpop.eup %619 }
  0x32   : > { %v575_v1 = vpack.i.bf16 %v373_v9, %v372_v50  ;;  %v370_v4 = vmul.f32 %v362_v63, %v338_v53  ;;  %v622_v5 = vpop.eup %621  ;;  %v285_v10 = vadd.f32 1.0, %v620_v3 }
  0x33   : > { %v371_v56 = vmul.f32 %v363_v2, %v339_v52  ;;  %v286_v11 = vadd.f32 1.0, %v622_v5 }
  0x34   : > { %576 = vrot.lane.b32.xlu0 %v575_v1, %s651_s24  ;;  %v378_v6 = vmax.f32 %v297_v62, %v370_v4  ;;  %v293_v17 = vmul.f32 %v285_v10, %v261_v8 }
  0x35   : > { %v379_v7 = vmax.f32 %v298_v55, %v371_v56  ;;  %v624_v14 = vpop.eup %623  ;;  %v294_v19 = vmul.f32 %v286_v11, %v262_v57 }
  0x36   : > { %v626_v16 = vpop.eup %625  ;;  %v358_v18 = vadd.f32 1.0, %v624_v14 }
  0x37   : > { %v590_v12 = vpack.i.bf16 %v379_v7, %v378_v6  ;;  %v359_v20 = vadd.f32 1.0, %v626_v16 }
  0x38   : > { %v366_v21 = vmul.f32 %v358_v18, %v334_v13 }
  0x39   : > { %591 = vrot.lane.b32.xlu1 %v590_v12, %s651_s24  ;;  %v367_v22 = vmul.f32 %v359_v20, %v335_v15 }
  0x3a   : > { %v374_v23 = vmax.f32 %v293_v17, %v366_v21 }
  0x3b   : > { %v375_v60 = vmax.f32 %v294_v19, %v367_v22 }
  0x3d   : > { %v580_v24 = vpack.i.bf16 %v375_v60, %v374_v23 }
  0x3f   : > { %581 = vrot.lane.b32.xlu0 %v580_v24, %s651_s24 }
  0xa2   : > { %v587_v61 = vpop.permute.xlu1 %586 }
  0xa3   : > { %v589_v25 = vunpack.i.h.bf16 %v587_v61  ;;  %v588_v26 = vunpack.i.l.bf16 %v587_v61 }
  0xa5   : > { %v417_v27 = vmax.f32 %v377_v39, %v589_v25  ;;  %v416_v28 = vmax.f32 %v763_v36, %v588_v26 }
  0xa6   : > { %v577_v29 = vpop.permute.xlu0 %576 }
  0xa7   : > { %v425_v30 = vpack.c.bf16 %v417_v27, %v417_v27  ;;  %v424_v32 = vpack.c.bf16 %v416_v28, %v416_v28  ;;  %v579_v33 = vunpack.i.h.bf16 %v577_v29  ;;  %v578_v34 = vunpack.i.l.bf16 %v577_v29 }
  0xa9   : > { %434 = vst.msk [vmem:[%s780_s28 + $0x14] sm:$0xf] %vm428_vm0, %v425_v30  ;;  %433 = vst.msk [vmem:[%s780_s28 + $0x10] sm:$0xf] %vm428_vm0, %v424_v32  ;;  %v413_v35 = vmax.f32 %v373_v9, %v579_v33  ;;  %v412_v36 = vmax.f32 %v372_v50, %v578_v34 }
  0xab   : > { %v421_v37 = vpack.c.bf16 %v413_v35, %v413_v35  ;;  %v420_v38 = vpack.c.bf16 %v412_v36, %v412_v36  ;;  %v592_v31 = vpop.permute.xlu1 %591 }
  0xac   : > { %v594_v39 = vunpack.i.h.bf16 %v592_v31  ;;  %v593_v40 = vunpack.i.l.bf16 %v592_v31 }
  0xad   : > { %430 = vst.msk [vmem:[%s780_s28 + $0x4] sm:$0xf] %vm428_vm0, %v421_v37  ;;  %429 = vst.msk [vmem:[%s780_s28] sm:$0xf] %vm428_vm0, %v420_v38 }
  0xae   : > { %v419_v41 = vmax.f32 %v379_v7, %v594_v39  ;;  %v418_v42 = vmax.f32 %v378_v6, %v593_v40 }
  0xb0   : > { %v427_v43 = vpack.c.bf16 %v419_v41, %v419_v41  ;;  %v426_v44 = vpack.c.bf16 %v418_v42, %v418_v42 }
  0xb1   : > { %v582_v0 = vpop.permute.xlu0 %581 }
  0xb2   : > { %436 = vst.msk [vmem:[%s780_s28 + $0x1c] sm:$0xf] %vm428_vm0, %v427_v43  ;;  %435 = vst.msk [vmem:[%s780_s28 + $0x18] sm:$0xf] %vm428_vm0, %v426_v44  ;;  %v584_v45 = vunpack.i.h.bf16 %v582_v0  ;;  %v583_v46 = vunpack.i.l.bf16 %v582_v0 }
  0xb4   : > { %v415_v47 = vmax.f32 %v375_v60, %v584_v45  ;;  %v414_v48 = vmax.f32 %v374_v23, %v583_v46 }
  0xb6   : > { %v423_v49 = vpack.c.bf16 %v415_v47, %v415_v47  ;;  %v422_v50 = vpack.c.bf16 %v414_v48, %v414_v48 }
  0xb8   : > { %432 = vst.msk [vmem:[%s780_s28 + $0xc] sm:$0xf] %vm428_vm0, %v423_v49  ;;  %431 = vst.msk [vmem:[%s780_s28 + $0x8] sm:$0xf] %vm428_vm0, %v422_v50 }
  0xb9 PF: > { %s13_s14 = sadd.s32 1, %s649_s14   ;;  %s811_s12 = smov %s645_s13 }
  0xba   : > { %p10_p5 = scmp.ge.s32.totalorder %s13_s14, 4   ;;  %s812_s13 = smov %s814_s15 }
  0xbc   :  { %12 = sbr.rel (!%p10_p5) target bundleno = 2 (0x2), region = 63 }

// kernel: unet_down_forward.8
= control target key start
LH: loop header
LB: loop body
LE: loop exit
PB: predicated region body
PF: predicated region fallthrough
CT: control target
= control target key end

     0   :  { %s2921_s18 = smov 0   ;;  %s2923_s19 = smov 0   ;;  %s4292_s0 = inlined_call_operand.vmem [shape: bf16[2,1,342,4], index: 0, kind: input, shape index: {}]   ;;  %s4293_s1 = inlined_call_operand.vmem [shape: bf16[36,8], index: 1, kind: input, shape index: {}]   ;;  %s4294_s2 = inlined_call_operand.vmem [shape: f32[1,288], index: 2, kind: input, shape index: {}]   ;;  %s4295_s3 = inlined_call_operand.vmem [shape: bf16[2,1,288,8], index: 3, kind: output, shape index: {0}]   ;;  %s4296_s4 = inlined_call_operand.vmem [shape: f32[2,1,8], index: 4, kind: output, shape index: {1}]   ;;  %s4297_s5 = inlined_call_operand.vmem [shape: f32[2,1,8], index: 5, kind: output, shape index: {2}]  }
   0x1   :  { %s2925_s20 = smov 0  }
   0x2 LB: > { %s28_s21 = sadd.s32 1, %s2874_s19  ;;  %p2413_p0 = scmp.ge.s32.totalorder %s2878_s20, 1  ;;  %s2878_s20 = sphi %s2925_s20, %s16_s20   ;;  %s2874_s19 = sphi %s2923_s19, %s4303_s19   ;;  %s2870_s18 = sphi %s2921_s18, %s4302_s18  }
   0x3   : > { %p30_p1 = scmp.ge.s32.totalorder %s28_s21, 2  ;;  %p212_p2 = scmp.lt.s32.totalorder %s2878_s20, 3 }
   0x5   : > { %s4305_s21 = smov (%p30_p1, %s28_s21), 0  ;;  %p213_p3 = pnand %p2413_p0, %p212_p2 }
   0x6   : > { %p254_p4 = scmp.lt.s32.totalorder (!%p213_p3), %s2870_s18, 1  ;;  %vm610_vm0 = vcmask (!%p213_p3), 1046528   ;;  %vm870_vm1 = vcmask (!%p213_p3), 1045504   ;;  %vm422_vm2 = vsmask.f32 (!%p213_p3), 7424  ;;  %s2880_s26 = smov (!%p213_p3), 12  }
   0x7   : > { %216 = sbr.rel (%p213_p3) target bundleno = 907 (0x38b), region = 32  ;;  %s2881_s27 = smov (!%p213_p3), 8   ;;  %vm740_vm3 = vsmask.f32 (!%p213_p3), 6400  ;;  %v2838_v59 = vld [vmem:[%s4293_s1] sm:$0xff] (!%p213_p3)   ;;  %vm1130_vm5 = vcmask (!%p213_p3), 1044480  }
   0x8   : > { %s2882_s28 = smov (!%p213_p3), 20   ;;  %s2883_s29 = smov (!%p213_p3), 4   ;;  %2644 = vmatprep.subr.bf16.mxu0 (!%p213_p3), %v2838_v59  ;;  %vm1000_vm4 = vsmask.f32 (!%p213_p3), 5376  ;;  %vm1557_vm6 = vcmask (!%p213_p3), 1041408   ;;  %vm1204_vm7 = vcmask (!%p213_p3), 31744  }
   0x9   : > { %2645 = vmatpush3.bf16.msra.mxu0 (!%p213_p3), %v2838_v59  ;;  %s2884_s9 = smov (!%p213_p3), 16   ;;  %s2885_s10 = smov (!%p213_p3), 24   ;;  %vm1241_vm8 = vcmask (!%p213_p3), 64512   ;;  %vm1278_vm9 = vcmask (!%p213_p3), 97280   ;;  %vm1315_vm10 = vcmask (!%p213_p3), 130048   ;;  %vm1352_vm11 = vcmask (!%p213_p3), 162816  }
   0xa   : > { %s2886_s11 = smov (!%p213_p3), 28   ;;  %s2887_s12 = smov (!%p213_p3), 32   ;;  %vm1389_vm12 = vcmask (!%p213_p3), 195584   ;;  %vm1426_vm13 = vcmask (!%p213_p3), 228352   ;;  %vm1463_vm14 = vcmask (!%p213_p3), 261120   ;;  %vm1520_vm15 = vcmask (!%p213_p3), 293888  }
   0xe   : > { %s4307_s18 = smov (!%p254_p4, %s2870_s18), 1 }
   0xf   : > { %s2785_s22 = smul.u32 172, %s4307_s18  ;;  %s277_s30 = scalar_lea.vmem %s4297_s5, %s4307_s18 }
  0x10   : > { %s2786_s15 = smul.u32 144, %s4307_s18 }
  0x11   : > { %s2945_s25 = scalar_lea.vmem %s4292_s0, %s2785_s22 }
  0x12   : > { %v282_v0 = vld [vmem:[%s2945_s25 + $0xc] sm:$0xf]  ;;  %v283_v1 = vld [vmem:[%s2945_s25 + $0x10] sm:$0xf]  ;;  %v2950_v2 = vld [vmem:[%s2945_s25 + $0x14] sm:$0xf]  ;;  %s3878_s22 = scalar_lea.vmem %s4295_s3, %s2786_s15 }
  0x13   : > { %v317_v3 = vld [vmem:[%s2945_s25 + $0x8] sm:$0xe]  ;;  %v2954_v4 = vcombine.low %v283_v1, %v2950_v2  ;;  %v280_v5 = vld [vmem:[%s2945_s25 + $0x4] sm:$0xf]  ;;  %v316_v8 = vld [vmem:[%s2945_s25] sm:$0xe] }
  0x14   : > { %v281_v6 = vld [vmem:[%s2945_s25 + $0x8] sm:$0xf]  ;;  %v2436_v7 = vcombine.low %v317_v3, %v282_v0  ;;  %v279_v10 = vld [vmem:[%s2945_s25] sm:$0xf]  ;;  %v2435_v13 = vcombine.low %v316_v8, %v280_v5  ;;  %v2967_v16 = vld [vmem:[%s2945_s25 + $0x18] sm:$0xff]  }
  0x15   : > { %v2959_v9 = vcombine.low %v281_v6, %v282_v0  ;;  %v322_v11 = vld [vmem:[%s2945_s25 + $0x8] sm:$0xc]  ;;  %v614_v12 = vrot.slane %v2954_v4, 1  ;;  %v2964_v14 = vcombine.low %v279_v10, %v280_v5  ;;  %v872_v19 = vrot.slane %v2954_v4, 2  ;;  %v323_v34 = vld [vmem:[%s2945_s25 + $0x10] sm:$0xc] }
  0x16   : > { %v2440_v15 = vcombine.low %v322_v11, %v282_v0  ;;  %v695_v17 = vrot.slane %v2436_v7, 1  ;;  %v611_v21 = vrot.slane %v2435_v13, 1  ;;  %v616_v28 = vrot.slane %v2967_v16, 1  ;;  %v2998_v45 = vld [vmem:[%s2945_s25 + $0x20] sm:$0xff]   ;;  %v2840_v1 = vld [vmem:[%s4293_s1 + $0x8] sm:$0xff]  }
  0x17   : > { %v612_v18 = vrot.slane %v2959_v9, 1  ;;  %v431_v20 = vshll.u32 %v2959_v9, 16  ;;  %v424_v24 = vshrl.u32 %v2964_v14, 16  ;;  %v426_v25 = vshll.u32 %v2964_v14, 16  ;;  %v328_v6 = vld [vmem:[%s2945_s25 + $0x10] sm:$0x8]  ;;  %2646 = vmatprep.subr.bf16.mxu0 %v2840_v1 }
  0x18   : > { %v871_v22 = vrot.slane %v2440_v15, 2  ;;  %v696_v23 = vsel %vm610_vm0, %v695_v17, %v614_v12  ;;  %v435_v31 = vshrl.u32 %v2959_v9, 16  ;;  %v439_v32 = vshll.u32 %v2954_v4, 16  ;;  %2647 = vmatpush3.bf16.msra.mxu0 %v2840_v1 }
  0x19   : > { %701 = vrot.lane.b32.xlu0 %v696_v23, %s2880_s26  ;;  %v613_v26 = vsel %vm610_vm0, %v611_v21, %v612_v18  ;;  %v433_v29 = vrot.slane %v431_v20, 1  ;;  %v428_v30 = vrot.slane %v426_v25, 1  ;;  %v443_v33 = vshrl.u32 %v2954_v4, 16 }
  0x1a   : > { %v873_v27 = vsel %vm870_vm1, %v871_v22, %v872_v19  ;;  %648 = vrot.lane.b32.xlu1 %v613_v26, %s2881_s27  ;;  %v615_v35 = vsel %vm610_vm0, %v612_v18, %v614_v12  ;;  %v2986_v36 = vshll.u32 %v2967_v16, 16  ;;  %v2989_v37 = vshrl.u32 %v2967_v16, 16 }
  0x1b   : > { %v742_v38 = vshrl.u32 %v2436_v7, 16  ;;  %v429_v39 = vor.u32 %v428_v30, %v424_v24  ;;  %v874_v40 = vrot.slane %v2967_v16, 2  ;;  %v437_v41 = vor.u32 %v435_v31, %v433_v29 }
  0x1c   : > { %v2993_v42 = vrot.slane %v439_v32, 1  ;;  %v749_v43 = vrot.slane %v443_v33, 1  ;;  %v750_v44 = vrot.slane %v439_v32, 2  ;;  %v745_v48 = vshll.u32 %v2436_v7, 16 }
  0x1d   : > { %908 = vrot.lane.b32.xlu0 %v873_v27, %s2882_s28  ;;  %v434_v46 = vsel %vm422_vm2, %v429_v39, %v433_v29  ;;  %v744_v47 = vrot.slane %v742_v38, 1  ;;  %v3005_v49 = vsel %vm610_vm0, %v614_v12, %v616_v28  ;;  %v753_v50 = vrot.slane %v2989_v37, 1 }
  0x1e   : > { %650 = vrot.lane.b32.xlu1 %v615_v35, %s2881_s27  ;;  %v754_v51 = vrot.slane %v2986_v36, 2  ;;  %v2441_v52 = vcombine.low %v323_v34, %v2950_v2  ;;  %v747_v53 = vrot.slane %v745_v48, 2  ;;  %v442_v54 = vsel %vm422_vm2, %v437_v41, %v2993_v42  ;;  %v3068_v35 = vld [vmem:[%s2945_s25 + $0x28] sm:$0xff]  }
  0x1f   : > { %v751_v55 = vor.u32 %v750_v44, %v749_v43  ;;  %v875_v60 = vsel %vm870_vm1, %v872_v19, %v874_v40  ;;  %v3022_v62 = vshll.u32 %v2998_v45, 16  ;;  %v3025_v63 = vshrl.u32 %v2998_v45, 16 }
  0x20   : > { %v748_v56 = vor.u32 %v747_v53, %v744_v47  ;;  %v1002_v57 = vshrl.u32 %v2441_v52, 16  ;;  %v1005_v58 = vshll.u32 %v2441_v52, 16  ;;  %v3019_v61 = vor.u32 %v754_v51, %v753_v50  ;;  %v3092_v51 = vld [vmem:[%s2945_s25 + $0x30] sm:$0xff]  }
  0x21   : > { %571 = vrot.lane.b32.xlu0 %v434_v46, %s2883_s29  ;;  %v1009_v0 = vrot.slane %v2989_v37, 2  ;;  %v955_v3 = vrot.slane %v2441_v52, 2  ;;  %v1010_v5 = vrot.slane %v2986_v36, 3  ;;  %v876_v12 = vrot.slane %v2998_v45, 2 }
  0x22   : > { %703 = vrot.lane.b32.xlu1 %v3005_v49, %s2880_s26  ;;  %v752_v7 = vsel %vm740_vm3, %v748_v56, %v751_v55  ;;  %v1004_v8 = vrot.slane %v1002_v57, 2  ;;  %v1007_v10 = vrot.slane %v1005_v58, 3  ;;  %v756_v11 = vsel %vm740_vm3, %v751_v55, %v3019_v61  ;;  %v2841_v55 = vld [vmem:[%s4293_s1 + $0x10] ss:$0 sps:$4 sm:$0x33]  }
  0x23   : > { %v1013_v13 = vrot.slane %v3025_v63, 2  ;;  %v1014_v15 = vrot.slane %v3022_v62, 3  ;;  %v956_v17 = vsel %vm870_vm1, %v955_v3, %v874_v40  ;;  %v1011_v18 = vor.u32 %v1010_v5, %v1009_v0  ;;  %2784 = vmatprep.subr.msk.bf16.mxu0 %vm1557_vm6, %v2841_v55 }
  0x24   : > { %v1008_v19 = vor.u32 %v1007_v10, %v1004_v8  ;;  %v2445_v20 = vcombine.low %v328_v6, %v2950_v2  ;;  %v877_v21 = vsel %vm870_vm1, %v874_v40, %v876_v12  ;;  %v1132_v25 = vrot.slane %v2967_v16, 3 }
  0x25   : > { %573 = vrot.lane.b32.xlu0 %v442_v54, %s2883_s29  ;;  %v3048_v22 = vor.u32 %v1014_v15, %v1013_v13  ;;  %v445_v26 = vor.u32 %v443_v33, %v2993_v42  ;;  %v449_v27 = vrot.slane %v2986_v36, 1  ;;  %v1134_v30 = vrot.slane %v2998_v45, 3 }
  0x26   : > { %910 = vrot.lane.b32.xlu1 %v875_v60, %s2882_s28  ;;  %v1012_v23 = vsel %vm1000_vm4, %v1008_v19, %v1011_v18  ;;  %v1131_v24 = vrot.slane %v2445_v20, 3  ;;  %v457_v34 = vrot.slane %v3022_v62, 1  ;;  %v618_v38 = vrot.slane %v2998_v45, 1 }
  0x27   : > { %v1016_v2 = vsel %vm1000_vm4, %v1011_v18, %v3048_v22  ;;  %v450_v31 = vsel %vm422_vm2, %v445_v26, %v449_v27  ;;  %v453_v32 = vor.u32 %v2989_v37, %v449_v27  ;;  %v1135_v33 = vsel %vm1130_vm5, %v1132_v25, %v1134_v30  ;;  %v3135_v18 = vld [vmem:[%s2945_s25 + $0x38] sm:$0xff]  }
  0x28   : > { %v1133_v29 = vsel %vm1130_vm5, %v1131_v24, %v1132_v25  ;;  %v463_v39 = vshll.u32 %v3068_v35, 16  ;;  %v467_v37 = vshrl.u32 %v3068_v35, 16  ;;  %v757_v40 = vrot.slane %v3025_v63, 1 }
  0x29   : > { %831 = vrot.lane.b32.xlu0 %v752_v7, %s2884_s9  ;;  %v458_v36 = vsel %vm422_vm2, %v453_v32, %v457_v34  ;;  %v758_v41 = vrot.slane %v3022_v62, 2  ;;  %v619_v42 = vsel %vm610_vm0, %v616_v28, %v618_v38  ;;  %v620_v43 = vrot.slane %v3068_v35, 1  ;;  %v3154_v32 = vld [vmem:[%s2945_s25 + $0x40] sm:$0xff]  }
  0x2a   : > { %833 = vrot.lane.b32.xlu1 %v756_v11, %s2884_s9  ;;  %v761_v44 = vrot.slane %v467_v37, 1  ;;  %v762_v46 = vrot.slane %v463_v39, 2  ;;  %v3102_v53 = vshll.u32 %v3092_v51, 16  ;;  %v3105_v54 = vshrl.u32 %v3092_v51, 16 }
  0x2b   : > { %v759_v47 = vor.u32 %v758_v41, %v757_v40  ;;  %v621_v48 = vsel %vm610_vm0, %v618_v38, %v620_v43  ;;  %v1017_v56 = vrot.slane %v467_v37, 2  ;;  %v1018_v57 = vrot.slane %v463_v39, 3 }
  0x2c   : > { %v3089_v50 = vor.u32 %v762_v46, %v761_v44  ;;  %v880_v59 = vrot.slane %v3092_v51, 2  ;;  %v1021_v60 = vrot.slane %v3105_v54, 2  ;;  %v1559_v0 = vsel %vm1557_vm6, %v2841_v55, 0 }
  0x2d   : > { %961 = vrot.lane.b32.xlu0 %v956_v17, %s2885_s10  ;;  %v760_v28 = vsel %vm740_vm3, %v3019_v61, %v759_v47  ;;  %v1022_v61 = vrot.slane %v3102_v53, 3  ;;  %v1019_v62 = vor.u32 %v1018_v57, %v1017_v56  ;;  %2649 = vmatpush3.bf16.msra.mxu0 %v1559_v0  ;;  %v1136_v6 = vrot.slane %v3068_v35, 3 }
  0x2e   : > { %963 = vrot.lane.b32.xlu1 %v877_v21, %s2885_s10  ;;  %v764_v52 = vsel %vm740_vm3, %v759_v47, %v3089_v50  ;;  %v461_v8 = vor.u32 %v3025_v63, %v457_v34  ;;  %v465_v10 = vrot.slane %v463_v39, 1  ;;  %v473_v17 = vrot.slane %v3102_v53, 1 }
  0x2f   : > { %v1023_v3 = vor.u32 %v1022_v61, %v1021_v60  ;;  %v1020_v5 = vsel %vm1000_vm4, %v3048_v22, %v1019_v62  ;;  %v1137_v11 = vsel %vm1130_vm5, %v1134_v30, %v1136_v6  ;;  %v622_v20 = vrot.slane %v3092_v51, 1  ;;  %v3190_v60 = vld [vmem:[%s2945_s25 + $0x48] sm:$0xff]  }
  0x30   : > { %v466_v13 = vsel %vm422_vm2, %v461_v8, %v465_v10  ;;  %v469_v15 = vor.u32 %v467_v37, %v465_v10  ;;  %v483_v22 = vshrl.u32 %v3135_v18, 16  ;;  %v766_v24 = vrot.slane %v3102_v53, 2 }
  0x31   : > { %1091 = vrot.lane.b32.xlu0 %v1012_v23, %s2886_s11  ;;  %v1024_v7 = vsel %vm1000_vm4, %v1019_v62, %v1023_v3  ;;  %v765_v23 = vrot.slane %v3105_v54, 1  ;;  %v623_v25 = vsel %vm610_vm0, %v620_v43, %v622_v20  ;;  %v3163_v38 = vshll.u32 %v3154_v32, 16 }
  0x32   : > { %1093 = vrot.lane.b32.xlu1 %v1016_v2, %s2886_s11  ;;  %v474_v19 = vsel %vm422_vm2, %v469_v15, %v473_v17  ;;  %v624_v2 = vrot.slane %v3135_v18, 1  ;;  %v769_v26 = vrot.slane %v483_v22, 1  ;;  %v3166_v39 = vshrl.u32 %v3154_v32, 16  ;;  %v3215_v15 = vld [vmem:[%s2945_s25 + $0x50] sm:$0xff]  }
  0x33   : > { %v1025_v37 = vrot.slane %v483_v22, 2  ;;  %v1030_v44 = vrot.slane %v3163_v38, 3  ;;  %v1142_v56 = vrot.slane %v3154_v32, 3  ;;  %v626_v62 = vrot.slane %v3154_v32, 1 }
  0x34   : > { %v625_v30 = vsel %vm610_vm0, %v622_v20, %v624_v2  ;;  %v1029_v43 = vrot.slane %v3166_v39, 2  ;;  %v495_v0 = vshll.u32 %v3190_v60, 16  ;;  %v3225_v20 = vshll.u32 %v3215_v15, 16 }
  0x35   : > { %1168 = vrot.lane.b32.xlu0 %v1133_v29, %s2887_s12  ;;  %v767_v29 = vor.u32 %v766_v24, %v765_v23 }
  0x36   : > { %575 = vrot.lane.b32.xlu1 %v450_v31, %s2883_s29  ;;  %v778_v10 = vrot.slane %v495_v0, 2  ;;  %v1034_v23 = vrot.slane %v495_v0, 3 }
  0x37   : > { %v768_v34 = vsel %vm740_vm3, %v3089_v50, %v767_v29 }
  0x39   : > { %1170 = vrot.lane.b32.xlu0 %v1135_v33, %s2887_s12 }
  0x3a   : > { %577 = vrot.lane.b32.xlu1 %v458_v36, %s2883_s29  ;;  %v882_v36 = vrot.slane %v3135_v18, 2 }
  0x3c   : > { %v883_v41 = vsel %vm870_vm1, %v880_v59, %v882_v36 }
  0x3d   : > { %652 = vrot.lane.b32.xlu0 %v3005_v49, %s2881_s27  ;;  %v878_v49 = vrot.slane %v3068_v35, 2 }
  0x3e   : > { %654 = vrot.lane.b32.xlu1 %v619_v42, %s2881_s27 }
  0x3f   : > { %v879_v58 = vsel %vm870_vm1, %v876_v12, %v878_v49  ;;  %v881_v1 = vsel %vm870_vm1, %v878_v49, %v880_v59  ;;  %v1138_v12 = vrot.slane %v3092_v51, 3  ;;  %v477_v49 = vor.u32 %v3105_v54, %v473_v17 }
  0x40   : > { %v489_v59 = vrot.slane %v3163_v38, 1 }
  0x41   : > { %705 = vrot.lane.b32.xlu0 %v619_v42, %s2880_s26  ;;  %v1139_v63 = vsel %vm1130_vm5, %v1136_v6, %v1138_v12  ;;  %v884_v42 = vrot.slane %v3154_v32, 2  ;;  %v627_v6 = vsel %vm610_vm0, %v624_v2, %v626_v62 }
  0x42   : > { %707 = vrot.lane.b32.xlu1 %v621_v48, %s2880_s26 }
  0x43   : > { %v885_v47 = vsel %vm870_vm1, %v882_v36, %v884_v42  ;;  %v1144_v36 = vrot.slane %v3190_v60, 3 }
  0x45   : > { %835 = vrot.lane.b32.xlu0 %v760_v28, %s2884_s9  ;;  %v1140_v28 = vrot.slane %v3135_v18, 3 }
  0x46   : > { %837 = vrot.lane.b32.xlu1 %v764_v52, %s2884_s9 }
  0x47   : > { %v1141_v55 = vsel %vm1130_vm5, %v1138_v12, %v1140_v28  ;;  %v1143_v54 = vsel %vm1130_vm5, %v1140_v28, %v1142_v56  ;;  %v3262_v28 = vld [vmem:[%s2945_s25 + $0x58] sm:$0xff]  }
  0x49   : > { %912 = vrot.lane.b32.xlu0 %v877_v21, %s2882_s28  ;;  %v479_v21 = vshll.u32 %v3135_v18, 16 }
  0x4a   : > { %914 = vrot.lane.b32.xlu1 %v879_v58, %s2882_s28 }
  0x4b   : > { %v770_v27 = vrot.slane %v479_v21, 2  ;;  %v1026_v40 = vrot.slane %v479_v21, 3  ;;  %v481_v53 = vrot.slane %v479_v21, 1  ;;  %v3228_v21 = vshrl.u32 %v3215_v15, 16 }
  0x4d   : > { %965 = vrot.lane.b32.xlu0 %v879_v58, %s2885_s10  ;;  %v771_v31 = vor.u32 %v770_v27, %v769_v26  ;;  %v1027_v46 = vor.u32 %v1026_v40, %v1025_v37  ;;  %v482_v57 = vsel %vm422_vm2, %v477_v49, %v481_v53  ;;  %v485_v58 = vor.u32 %v483_v22, %v481_v53 }
  0x4e   : > { %967 = vrot.lane.b32.xlu1 %v881_v1, %s2885_s10  ;;  %v1037_v2 = vrot.slane %v3228_v21, 2  ;;  %v1038_v26 = vrot.slane %v3225_v20, 3  ;;  %v493_v40 = vor.u32 %v3166_v39, %v489_v59 }
  0x4f   : > { %v772_v33 = vsel %vm740_vm3, %v767_v29, %v771_v31  ;;  %v1028_v50 = vsel %vm1000_vm4, %v1023_v3, %v1027_v46  ;;  %v490_v61 = vsel %vm422_vm2, %v485_v58, %v489_v59  ;;  %v773_v3 = vrot.slane %v3166_v39, 1 }
  0x50   : > { %v632_v59 = vrot.slane %v3262_v28, 1 }
  0x51   : > { %1095 = vrot.lane.b32.xlu0 %v1020_v5, %s2886_s11  ;;  %v774_v5 = vrot.slane %v3163_v38, 2 }
  0x52   : > { %1097 = vrot.lane.b32.xlu1 %v1024_v7, %s2886_s11  ;;  %v628_v7 = vrot.slane %v3190_v60, 1 }
  0x54   : > { %v3210_v12 = vsel %vm610_vm0, %v626_v62, %v628_v7 }
  0x55   : > { %1172 = vrot.lane.b32.xlu0 %v1137_v11, %s2887_s12  ;;  %v775_v11 = vor.u32 %v774_v5, %v773_v3 }
  0x56   : > { %579 = vrot.lane.b32.xlu1 %v466_v13, %s2883_s29 }
  0x57   : > { %v776_v17 = vsel %vm740_vm3, %v771_v31, %v775_v11  ;;  %v3243_v31 = vor.u32 %v1038_v26, %v1037_v2 }
  0x59   : > { %1174 = vrot.lane.b32.xlu0 %v1139_v63, %s2887_s12 }
  0x5a   : > { %581 = vrot.lane.b32.xlu1 %v474_v19, %s2883_s29  ;;  %v886_v19 = vrot.slane %v3190_v60, 2 }
  0x5c   : > { %v887_v24 = vsel %vm870_vm1, %v884_v42, %v886_v19 }
  0x5d   : > { %656 = vrot.lane.b32.xlu0 %v621_v48, %s2881_s27  ;;  %v1031_v48 = vor.u32 %v1030_v44, %v1029_v43  ;;  %v1145_v43 = vsel %vm1130_vm5, %v1142_v56, %v1144_v36  ;;  %v1146_v44 = vrot.slane %v3215_v15, 3  ;;  %v3274_v56 = vshll.u32 %v3262_v28, 16 }
  0x5e   : > { %658 = vrot.lane.b32.xlu1 %v623_v25, %s2881_s27 }
  0x5f   : > { %v1032_v52 = vsel %vm1000_vm4, %v1027_v46, %v1031_v48  ;;  %v1147_v39 = vsel %vm1130_vm5, %v1144_v36, %v1146_v44  ;;  %v786_v5 = vrot.slane %v3274_v56, 2 }
  0x61   : > { %709 = vrot.lane.b32.xlu0 %v623_v25, %s2880_s26  ;;  %v888_v25 = vrot.slane %v3215_v15, 2 }
  0x62   : > { %711 = vrot.lane.b32.xlu1 %v625_v30, %s2880_s26 }
  0x65   : > { %839 = vrot.lane.b32.xlu0 %v768_v34, %s2884_s9 }
  0x66   : > { %841 = vrot.lane.b32.xlu1 %v772_v33, %s2884_s9 }
  0x69   : > { %916 = vrot.lane.b32.xlu0 %v881_v1, %s2882_s28  ;;  %v499_v1 = vshrl.u32 %v3190_v60, 16 }
  0x6a   : > { %918 = vrot.lane.b32.xlu1 %v883_v41, %s2882_s28 }
  0x6b   : > { %v777_v8 = vrot.slane %v499_v1, 1  ;;  %v1033_v22 = vrot.slane %v499_v1, 2 }
  0x6d   : > { %969 = vrot.lane.b32.xlu0 %v883_v41, %s2885_s10  ;;  %v3212_v13 = vor.u32 %v778_v10, %v777_v8  ;;  %v1035_v27 = vor.u32 %v1034_v23, %v1033_v22  ;;  %v497_v41 = vrot.slane %v495_v0, 1  ;;  %v890_v22 = vrot.slane %v3262_v28, 2 }
  0x6e   : > { %971 = vrot.lane.b32.xlu1 %v885_v47, %s2885_s10 }
  0x6f   : > { %v780_v63 = vsel %vm740_vm3, %v775_v11, %v3212_v13  ;;  %v1036_v33 = vsel %vm1000_vm4, %v1031_v48, %v1035_v27  ;;  %v1040_v37 = vsel %vm1000_vm4, %v1035_v27, %v3243_v31  ;;  %v501_v48 = vor.u32 %v499_v1, %v497_v41 }
  0x71   : > { %1099 = vrot.lane.b32.xlu0 %v1028_v50, %s2886_s11  ;;  %v505_v50 = vrot.slane %v3225_v20, 1 }
  0x72   : > { %1101 = vrot.lane.b32.xlu1 %v1032_v52, %s2886_s11 }
  0x73   : > { %v506_v53 = vsel %vm422_vm2, %v501_v48, %v505_v50 }
  0x75   : > { %1176 = vrot.lane.b32.xlu0 %v1141_v55, %s2887_s12  ;;  %v630_v55 = vrot.slane %v3215_v15, 1 }
  0x76   : > { %583 = vrot.lane.b32.xlu1 %v482_v57, %s2883_s29  ;;  %v3277_v57 = vshrl.u32 %v3262_v28, 16 }
  0x77   : > { %v631_v1 = vsel %vm610_vm0, %v628_v7, %v630_v55  ;;  %v3300_v7 = vsel %vm610_vm0, %v630_v55, %v632_v59 }
  0x78   : > { %v785_v3 = vrot.slane %v3277_v57, 1 }
  0x79   : > { %1178 = vrot.lane.b32.xlu0 %v1143_v54, %s2887_s12  ;;  %v781_v54 = vrot.slane %v3228_v21, 1 }
  0x7a   : > { %585 = vrot.lane.b32.xlu1 %v490_v61, %s2883_s29  ;;  %v782_v61 = vrot.slane %v3225_v20, 2 }
  0x7d   : > { %660 = vrot.lane.b32.xlu0 %v625_v30, %s2881_s27  ;;  %v3241_v30 = vsel %vm870_vm1, %v886_v19, %v888_v25 }
  0x7e   : > { %662 = vrot.lane.b32.xlu1 %v627_v6, %s2881_s27 }
  0x81   : > { %713 = vrot.lane.b32.xlu0 %v627_v6, %s2880_s26 }
  0x82   : > { %715 = vrot.lane.b32.xlu1 %v3210_v12, %s2880_s26 }
  0x85   : > { %843 = vrot.lane.b32.xlu0 %v776_v17, %s2884_s9  ;;  %v3302_v17 = vor.u32 %v786_v5, %v785_v3 }
  0x86   : > { %845 = vrot.lane.b32.xlu1 %v780_v63, %s2884_s9  ;;  %v3305_v63 = vld [vmem:[%s2945_s25 + $0x60] sm:$0xff]  }
  0x89   : > { %920 = vrot.lane.b32.xlu0 %v885_v47, %s2882_s28  ;;  %v498_v47 = vsel %vm422_vm2, %v493_v40, %v497_v41  ;;  %v1041_v41 = vrot.slane %v3277_v57, 2 }
  0x8a   : > { %922 = vrot.lane.b32.xlu1 %v887_v24, %s2882_s28 }
  0x8b   : > { %v702_v29 = vpop.permute.xlu0 %701 }
  0x8c   : > { %v649_v34 = vpop.permute.xlu1 %648 }
  0x8d   : > { %973 = vrot.lane.b32.xlu0 %v887_v24, %s2885_s10 }
  0x8e   : > { %975 = vrot.lane.b32.xlu1 %v3241_v30, %s2885_s10 }
  0x8f   : > { %v3250_v38 = vpop.permute.xlu0 %908 }
  0x90   : > { %v651_v42 = vpop.permute.xlu1 %650 }
  0x91   : > { %1103 = vrot.lane.b32.xlu0 %v1036_v33, %s2886_s11 }
  0x92   : > { %1105 = vrot.lane.b32.xlu1 %v1040_v37, %s2886_s11 }
  0x93   : > { %v572_v46 = vpop.permute.xlu0 %571 }
  0x94   : > { %v704_v52 = vpop.permute.xlu1 %703  ;;  %v1206_v62 = vsel %vm1204_vm7, %v2964_v14, %v572_v46  ;;  %v783_v14 = vor.u32 %v782_v61, %v781_v54  ;;  %v892_v46 = vrot.slane %v3305_v63, 2 }
  0x95   : > { %1180 = vrot.lane.b32.xlu0 %v1145_v43, %s2887_s12  ;;  %v1243_v10 = vsel %vm1241_vm8, %v1206_v62, %v649_v34  ;;  %v3323_v34 = vshrl.u32 %v3305_v63, 16 }
  0x96   : > { %587 = vrot.lane.b32.xlu1 %v498_v47, %s2883_s29  ;;  %v1280_v19 = vsel %vm1278_vm9, %v1243_v10, %v702_v29  ;;  %v784_v24 = vsel %vm740_vm3, %v3212_v13, %v783_v14  ;;  %v788_v27 = vsel %vm740_vm3, %v783_v14, %v3302_v17  ;;  %v3320_v29 = vshll.u32 %v3305_v63, 16 }
  0x97   : > { %v574_v49 = vpop.permute.xlu0 %573  ;;  %v891_v13 = vsel %vm870_vm1, %v888_v25, %v890_v22  ;;  %v1045_v47 = vrot.slane %v3323_v34, 2  ;;  %v3351_v61 = vsel %vm870_vm1, %v890_v22, %v892_v46  ;;  %v1150_v14 = vrot.slane %v3305_v63, 3 }
  0x98   : > { %v911_v58 = vpop.permute.xlu1 %910  ;;  %v1208_v8 = vsel %vm1204_vm7, %v2959_v9, %v574_v49  ;;  %v1046_v25 = vrot.slane %v3320_v29, 3 }
  0x99   : > { %1182 = vrot.lane.b32.xlu0 %v1147_v39, %s2887_s12  ;;  %v1245_v9 = vsel %vm1241_vm8, %v1208_v8, %v651_v42  ;;  %v1042_v42 = vrot.slane %v3274_v56, 3  ;;  %v513_v8 = vrot.slane %v3274_v56, 1 }
  0x9a   : > { %589 = vrot.lane.b32.xlu1 %v506_v53, %s2883_s29  ;;  %v1282_v2 = vsel %vm1278_vm9, %v1245_v9, %v704_v52  ;;  %v3353_v62 = vor.u32 %v1046_v25, %v1045_v47 }
  0x9b   : > { %v832_v0 = vpop.permute.xlu0 %831  ;;  %v1043_v53 = vor.u32 %v1042_v42, %v1041_v41  ;;  %v517_v20 = vor.u32 %v3277_v57, %v513_v8  ;;  %v634_v57 = vrot.slane %v3305_v63, 1 }
  0x9c   : > { %v834_v6 = vpop.permute.xlu1 %833  ;;  %v1317_v23 = vsel %vm1315_vm10, %v1280_v19, %v832_v0 }
  0x9d   : > { %664 = vrot.lane.b32.xlu0 %v3210_v12, %s2881_s27  ;;  %v1354_v36 = vsel %vm1352_vm11, %v1317_v23, %v3250_v38  ;;  %v1319_v37 = vsel %vm1315_vm10, %v1282_v2, %v834_v6  ;;  %v1044_v0 = vsel %vm1000_vm4, %v3243_v31, %v1043_v53  ;;  %v1048_v5 = vsel %vm1000_vm4, %v1043_v53, %v3353_v62 }
  0x9e   : > { %666 = vrot.lane.b32.xlu1 %v631_v1, %s2881_s27  ;;  %v1356_v39 = vsel %vm1352_vm11, %v1319_v37, %v911_v58  ;;  %v509_v6 = vor.u32 %v3228_v21, %v505_v50  ;;  %v521_v21 = vrot.slane %v3320_v29, 1  ;;  %v3381_v50 = vld [vmem:[%s2945_s25 + $0x68] sm:$0xff]   ;;  %v790_v2 = vrot.slane %v3320_v29, 2 }
  0x9f   : > { %v962_v11 = vpop.permute.xlu0 %961  ;;  %v3393_v19 = vshll.u32 %v3381_v50, 16  ;;  %v3396_v22 = vshrl.u32 %v3381_v50, 16 }
  0xa0   : > { %v964_v12 = vpop.permute.xlu1 %963  ;;  %v1391_v40 = vsel %vm1389_vm12, %v1354_v36, %v962_v11  ;;  %v514_v9 = vsel %vm422_vm2, %v509_v6, %v513_v8 }
  0xa1   : > { %717 = vrot.lane.b32.xlu0 %v631_v1, %s2880_s26  ;;  %v1393_v49 = vsel %vm1389_vm12, %v1356_v39, %v964_v12  ;;  %v1148_v1 = vrot.slane %v3262_v28, 3  ;;  %v522_v12 = vsel %vm422_vm2, %v517_v20, %v521_v21  ;;  %v793_v36 = vrot.slane %v3396_v22, 1 }
  0xa2   : > { %719 = vrot.lane.b32.xlu1 %v3300_v7, %s2880_s26 }
  0xa3   : > { %v1092_v26 = vpop.permute.xlu0 %1091  ;;  %v1149_v31 = vsel %vm1130_vm5, %v1146_v44, %v1148_v1  ;;  %v1151_v15 = vsel %vm1130_vm5, %v1148_v1, %v1150_v14  ;;  %v1049_v1 = vrot.slane %v3396_v22, 2 }
  0xa4   : > { %v1094_v33 = vpop.permute.xlu1 %1093  ;;  %v1428_v38 = vsel %vm1426_vm13, %v1391_v40, %v1092_v26 }
  0xa5   : > { %847 = vrot.lane.b32.xlu0 %v784_v24, %s2884_s9  ;;  %v1430_v55 = vsel %vm1426_vm13, %v1393_v49, %v1094_v33  ;;  %v789_v24 = vrot.slane %v3323_v34, 1  ;;  %v636_v33 = vrot.slane %v3381_v50, 1 }
  0xa6   : > { %849 = vrot.lane.b32.xlu1 %v788_v27, %s2884_s9  ;;  %v635_v27 = vsel %vm610_vm0, %v632_v59, %v634_v57 }
  0xa7   : > { %v1169_v43 = vpop.permute.xlu0 %1168  ;;  %v791_v40 = vor.u32 %v790_v2, %v789_v24  ;;  %v3414_v42 = vsel %vm610_vm0, %v634_v57, %v636_v33 }
  0xa8   : > { %v576_v48 = vpop.permute.xlu1 %575  ;;  %v1465_v52 = vsel %vm1463_vm14, %v1428_v38, %v1169_v43  ;;  %v3419_v38 = vld [vmem:[%s2945_s25 + $0x70] sm:$0xff]  }
  0xa9   : > { %924 = vrot.lane.b32.xlu0 %v3241_v30, %s2882_s28  ;;  %2650 = vmatprep.mubr.msk.bf16.mxu0 %vm1520_vm15, %v1465_v52  ;;  %v1210_v47 = vsel %vm1204_vm7, %v2954_v4, %v576_v48  ;;  %v792_v25 = vsel %vm740_vm3, %v3302_v17, %v791_v40  ;;  %v894_v52 = vrot.slane %v3381_v50, 2  ;;  %v3434_v4 = vshll.u32 %v3419_v38, 16 }
  0xaa   : > { %926 = vrot.lane.b32.xlu1 %v891_v13, %s2882_s28  ;;  %v3437_v48 = vshrl.u32 %v3419_v38, 16 }
  0xab   : > { %v1171_v54 = vpop.permute.xlu0 %1170  ;;  %v895_v6 = vsel %vm870_vm1, %v892_v46, %v894_v52 }
  0xac   : > { %v3355_v58 = vpop.permute.xlu1 %577  ;;  %v1467_v30 = vsel %vm1463_vm14, %v1430_v55, %v1171_v54 }
  0xad   : > { %977 = vrot.lane.b32.xlu0 %v891_v13, %s2885_s10  ;;  %2651 = vmatmul.mubr.msk.bf16.vlgmr.msra.gmra.mrb[0].mxu0 %vm1520_vm15, %v1467_v30  ;;  %v794_v13 = vrot.slane %v3393_v19, 2  ;;  %v1212_v17 = vsel %vm1204_vm7, %v2967_v16, %v3355_v58  ;;  %v1050_v16 = vrot.slane %v3393_v19, 3 }
  0xae   : > { %979 = vrot.lane.b32.xlu1 %v3351_v61, %s2885_s10 }
  0xaf   : > { %v653_v3 = vpop.permute.xlu0 %652  ;;  %v3416_v59 = vor.u32 %v794_v13, %v793_v36 }
  0xb0   : > { %v655_v10 = vpop.permute.xlu1 %654 }
  0xb1   : > { %1107 = vrot.lane.b32.xlu0 %v1044_v0, %s2886_s11  ;;  %v796_v53 = vsel %vm740_vm3, %v791_v40, %v3416_v59  ;;  %v896_v0 = vrot.slane %v3419_v38, 2  ;;  %v529_v40 = vrot.slane %v3393_v19, 1 }
  0xb2   : > { %1109 = vrot.lane.b32.xlu1 %v1048_v5, %s2886_s11 }
  0xb3   : > { %v706_v11 = vpop.permute.xlu0 %705  ;;  %v533_v29 = vor.u32 %v3396_v22, %v529_v40  ;;  %v638_v22 = vrot.slane %v3419_v38, 1 }
  0xb4   : > { %v708_v56 = vpop.permute.xlu1 %707 }
  0xb5   : > { %1184 = vrot.lane.b32.xlu0 %v1149_v31, %s2887_s12 }
  0xb6   : > { %591 = vrot.lane.b32.xlu1 %v514_v9, %s2883_s29  ;;  %v1054_v9 = vrot.slane %v3434_v4, 3 }
  0xb7   : > { %v836_v44 = vpop.permute.xlu0 %835 }
  0xb8   : > { %v838_v23 = vpop.permute.xlu1 %837 }
  0xb9   : > { %1186 = vrot.lane.b32.xlu0 %v1151_v15, %s2887_s12 }
  0xba   : > { %593 = vrot.lane.b32.xlu1 %v522_v12, %s2883_s29 }
  0xbb   : > { %v913_v26 = vpop.permute.xlu0 %912 }
  0xbc   : > { %v915_v37 = vpop.permute.xlu1 %914 }
  0xbd   : > { %668 = vrot.lane.b32.xlu0 %v3300_v7, %s2881_s27  ;;  %v1247_v7 = vsel %vm1241_vm8, %v1210_v47, %v653_v3  ;;  %v1249_v3 = vsel %vm1241_vm8, %v1212_v17, %v655_v10 }
  0xbe   : > { %670 = vrot.lane.b32.xlu1 %v635_v27, %s2881_s27  ;;  %v1284_v39 = vsel %vm1278_vm9, %v1247_v7, %v706_v11  ;;  %v1286_v58 = vsel %vm1278_vm9, %v1249_v3, %v708_v56  ;;  %v1053_v11 = vrot.slane %v3437_v48, 2  ;;  %v1051_v56 = vor.u32 %v1050_v16, %v1049_v1 }
  0xbf   : > { %v966_v41 = vpop.permute.xlu0 %965  ;;  %v1321_v55 = vsel %vm1315_vm10, %v1284_v39, %v836_v44  ;;  %v1323_v10 = vsel %vm1315_vm10, %v1286_v58, %v838_v23  ;;  %v3470_v23 = vsel %vm870_vm1, %v894_v52, %v896_v0 }
  0xc0   : > { %v968_v43 = vpop.permute.xlu1 %967  ;;  %v1358_v30 = vsel %vm1352_vm11, %v1321_v55, %v913_v26  ;;  %v1360_v44 = vsel %vm1352_vm11, %v1323_v10, %v915_v37  ;;  %v3472_v24 = vor.u32 %v1054_v9, %v1053_v11  ;;  %v1052_v26 = vsel %vm1000_vm4, %v3353_v62, %v1051_v56 }
  0xc1   : > { %721 = vrot.lane.b32.xlu0 %v635_v27, %s2880_s26  ;;  %v1395_v5 = vsel %vm1389_vm12, %v1358_v30, %v966_v41  ;;  %v1397_v46 = vsel %vm1389_vm12, %v1360_v44, %v968_v43  ;;  %v1152_v27 = vrot.slane %v3381_v50, 3  ;;  %v525_v37 = vor.u32 %v3323_v34, %v521_v21  ;;  %v3500_v21 = vld [vmem:[%s2945_s25 + $0x78] sm:$0xff]  }
  0xc2   : > { %723 = vrot.lane.b32.xlu1 %v3414_v42, %s2880_s26  ;;  %v1056_v13 = vsel %vm1000_vm4, %v1051_v56, %v3472_v24  ;;  %v1154_v43 = vrot.slane %v3419_v38, 3  ;;  %v537_v34 = vrot.slane %v3434_v4, 1  ;;  %v3512_v39 = vshll.u32 %v3500_v21, 16 }
  0xc3   : > { %v1096_v49 = vpop.permute.xlu0 %1095  ;;  %v1153_v62 = vsel %vm1130_vm5, %v1150_v14, %v1152_v27  ;;  %v530_v7 = vsel %vm422_vm2, %v525_v37, %v529_v40  ;;  %v797_v55 = vrot.slane %v3437_v48, 1  ;;  %v639_v30 = vsel %vm610_vm0, %v636_v33, %v638_v22 }
  0xc4   : > { %v1098_v54 = vpop.permute.xlu1 %1097  ;;  %v1432_v8 = vsel %vm1426_vm13, %v1395_v5, %v1096_v49  ;;  %v1155_v14 = vsel %vm1130_vm5, %v1152_v27, %v1154_v43  ;;  %v538_v52 = vsel %vm422_vm2, %v533_v29, %v537_v34  ;;  %v3515_v49 = vshrl.u32 %v3500_v21, 16 }
  0xc5   : > { %851 = vrot.lane.b32.xlu0 %v792_v25, %s2884_s9  ;;  %v1434_v12 = vsel %vm1426_vm13, %v1397_v46, %v1098_v54  ;;  %v798_v54 = vrot.slane %v3434_v4, 2  ;;  %v640_v1 = vrot.slane %v3500_v21, 1  ;;  %v802_v5 = vrot.slane %v3512_v39, 2 }
  0xc6   : > { %853 = vrot.lane.b32.xlu1 %v796_v53, %s2884_s9  ;;  %v801_v3 = vrot.slane %v3515_v49, 1  ;;  %v1057_v37 = vrot.slane %v3515_v49, 2 }
  0xc7   : > { %v1173_v31 = vpop.permute.xlu0 %1172  ;;  %v799_v16 = vor.u32 %v798_v54, %v797_v55 }
  0xc8   : > { %v580_v20 = vpop.permute.xlu1 %579  ;;  %v1469_v15 = vsel %vm1463_vm14, %v1432_v8, %v1173_v31  ;;  %v3533_v8 = vsel %vm610_vm0, %v638_v22, %v640_v1  ;;  %v3535_v33 = vor.u32 %v802_v5, %v801_v3  ;;  %v3538_v31 = vld [vmem:[%s2945_s25 + $0x80] sm:$0xff]  }
  0xc9   : > { %928 = vrot.lane.b32.xlu0 %v3351_v61, %s2882_s28  ;;  %2654 = vmatprep.mubr.msk.bf16.mxu0 %vm1520_vm15, %v1469_v15  ;;  %v1214_v9 = vsel %vm1204_vm7, %v2998_v45, %v580_v20  ;;  %v800_v15 = vsel %vm740_vm3, %v3416_v59, %v799_v16  ;;  %v3553_v45 = vshll.u32 %v3538_v31, 16  ;;  %v3556_v20 = vshrl.u32 %v3538_v31, 16 }
  0xca   : > { %930 = vrot.lane.b32.xlu1 %v895_v6, %s2882_s28  ;;  %v804_v56 = vsel %vm740_vm3, %v799_v16, %v3535_v33  ;;  %v900_v27 = vrot.slane %v3538_v31, 2  ;;  %v545_v16 = vrot.slane %v3512_v39, 1 }
  0xcb   : > { %v1175_v57 = vpop.permute.xlu0 %1174 }
  0xcc   : > { %v3474_v2 = vpop.permute.xlu1 %581  ;;  %v1471_v61 = vsel %vm1463_vm14, %v1434_v12, %v1175_v57  ;;  %v549_v4 = vor.u32 %v3515_v49, %v545_v16  ;;  %v642_v49 = vrot.slane %v3538_v31, 1 }
  0xcd   : > { %981 = vrot.lane.b32.xlu0 %v895_v6, %s2885_s10  ;;  %2655 = vmatmul.mubr.msk.bf16.gmra.mrb[4].mxu0 %vm1520_vm15, %v1471_v61  ;;  %v1216_v61 = vsel %vm1204_vm7, %v3068_v35, %v3474_v2  ;;  %v1058_v35 = vrot.slane %v3512_v39, 3 }
  0xce   : > { %983 = vrot.lane.b32.xlu1 %v3470_v23, %s2885_s10 }
  0xcf   : > { %v657_v36 = vpop.permute.xlu0 %656 }
  0xd0   : > { %v659_v41 = vpop.permute.xlu1 %658  ;;  %v1251_v10 = vsel %vm1241_vm8, %v1214_v9, %v657_v36 }
  0xd1   : > { %1111 = vrot.lane.b32.xlu0 %v1052_v26, %s2886_s11  ;;  %v1253_v36 = vsel %vm1241_vm8, %v1216_v61, %v659_v41 }
  0xd2   : > { %1113 = vrot.lane.b32.xlu1 %v1056_v13, %s2886_s11 }
  0xd3   : > { %v710_v47 = vpop.permute.xlu0 %709 }
  0xd4   : > { %v712_v19 = vpop.permute.xlu1 %711  ;;  %v1288_v44 = vsel %vm1278_vm9, %v1251_v10, %v710_v47  ;;  %v1061_v47 = vrot.slane %v3556_v20, 2 }
  0xd5   : > { %1188 = vrot.lane.b32.xlu0 %v1153_v62, %s2887_s12  ;;  %v1290_v2 = vsel %vm1278_vm9, %v1253_v36, %v712_v19 }
  0xd6   : > { %595 = vrot.lane.b32.xlu1 %v530_v7, %s2883_s29 }
  0xd7   : > { %v840_v25 = vpop.permute.xlu0 %839 }
  0xd8   : > { %v842_v53 = vpop.permute.xlu1 %841  ;;  %v1325_v12 = vsel %vm1315_vm10, %v1288_v44, %v840_v25  ;;  %v1059_v25 = vor.u32 %v1058_v35, %v1057_v37 }
  0xd9   : > { %1190 = vrot.lane.b32.xlu0 %v1155_v14, %s2887_s12  ;;  %v1327_v7 = vsel %vm1315_vm10, %v1290_v2, %v842_v53 }
  0xda   : > { %597 = vrot.lane.b32.xlu1 %v538_v52, %s2883_s29 }
  0xdb   : > { %v917_v17 = vpop.permute.xlu0 %916 }
  0xdc   : > { %v919_v6 = vpop.permute.xlu1 %918  ;;  %v1362_v59 = vsel %vm1352_vm11, %v1325_v12, %v917_v17  ;;  %v1060_v17 = vsel %vm1000_vm4, %v3472_v24, %v1059_v25  ;;  %v805_v12 = vrot.slane %v3556_v20, 1 }
  0xdd   : > { %672 = vrot.lane.b32.xlu0 %v3414_v42, %s2881_s27  ;;  %v898_v42 = vrot.slane %v3500_v21, 2  ;;  %v1364_v14 = vsel %vm1352_vm11, %v1327_v7, %v919_v6  ;;  %v541_v6 = vor.u32 %v3437_v48, %v537_v34  ;;  %v553_v48 = vrot.slane %v3553_v45, 1  ;;  %v3619_v34 = vld [vmem:[%s2945_s25 + $0x88] sm:$0xff]  }
  0xde   : > { %674 = vrot.lane.b32.xlu1 %v639_v30, %s2881_s27  ;;  %v3631_v44 = vshll.u32 %v3619_v34, 16 }
  0xdf   : > { %v970_v58 = vpop.permute.xlu0 %969  ;;  %v899_v26 = vsel %vm870_vm1, %v896_v0, %v898_v42  ;;  %v1062_v0 = vrot.slane %v3553_v45, 3  ;;  %v3589_v53 = vsel %vm870_vm1, %v898_v42, %v900_v27  ;;  %v546_v42 = vsel %vm422_vm2, %v541_v6, %v545_v16 }
  0xe0   : > { %v972_v11 = vpop.permute.xlu1 %971  ;;  %v1399_v13 = vsel %vm1389_vm12, %v1362_v59, %v970_v58  ;;  %v643_v59 = vsel %vm610_vm0, %v640_v1, %v642_v49 }
  0xe1   : > { %725 = vrot.lane.b32.xlu0 %v639_v30, %s2880_s26  ;;  %v1401_v19 = vsel %vm1389_vm12, %v1364_v14, %v972_v11  ;;  %v3591_v55 = vor.u32 %v1062_v0, %v1061_v47  ;;  %v1156_v30 = vrot.slane %v3500_v21, 3  ;;  %v1158_v11 = vrot.slane %v3538_v31, 3 }
  0xe2   : > { %727 = vrot.lane.b32.xlu1 %v3533_v8, %s2880_s26 }
  0xe3   : > { %v1100_v46 = vpop.permute.xlu0 %1099  ;;  %v1064_v5 = vsel %vm1000_vm4, %v1059_v25, %v3591_v55  ;;  %v1157_v24 = vsel %vm1130_vm5, %v1154_v43, %v1156_v30  ;;  %v1159_v43 = vsel %vm1130_vm5, %v1156_v30, %v1158_v11 }
  0xe4   : > { %v1102_v57 = vpop.permute.xlu1 %1101  ;;  %v1436_v40 = vsel %vm1426_vm13, %v1399_v13, %v1100_v46  ;;  %v3634_v46 = vshrl.u32 %v3619_v34, 16  ;;  %v810_v13 = vrot.slane %v3631_v44, 2 }
  0xe5   : > { %855 = vrot.lane.b32.xlu0 %v800_v15, %s2884_s9  ;;  %v1438_v52 = vsel %vm1426_vm13, %v1401_v19, %v1102_v57  ;;  %v554_v15 = vsel %vm422_vm2, %v549_v4, %v553_v48  ;;  %v806_v57 = vrot.slane %v3553_v45, 2 }
  0xe6   : > { %857 = vrot.lane.b32.xlu1 %v804_v56, %s2884_s9  ;;  %v809_v36 = vrot.slane %v3634_v46, 1  ;;  %v1065_v6 = vrot.slane %v3634_v46, 2 }
  0xe7   : > { %v1177_v62 = vpop.permute.xlu0 %1176  ;;  %v807_v35 = vor.u32 %v806_v57, %v805_v12  ;;  %v2849_v57 = vld [vmem:[%s2945_s25 + $0x90] ss:$0 sps:$4 sm:$0x11]  }
  0xe8   : > { %v584_v41 = vpop.permute.xlu1 %583  ;;  %v1473_v29 = vsel %vm1463_vm14, %v1436_v40, %v1177_v62  ;;  %v3655_v1 = vor.u32 %v810_v13, %v809_v36  ;;  %v3658_v62 = vld [vmem:[%s2945_s25 + $0x90] sm:$0xff]   ;;  %v1160_v36 = vrot.slane %v3619_v34, 3 }
  0xe9   : > { %932 = vrot.lane.b32.xlu0 %v3470_v23, %s2882_s28  ;;  %2658 = vmatprep.mubr.msk.bf16.mxu0 %vm1520_vm15, %v1473_v29  ;;  %v1218_v0 = vsel %vm1204_vm7, %v3092_v51, %v584_v41  ;;  %v808_v29 = vsel %vm740_vm3, %v3535_v33, %v807_v35  ;;  %v814_v51 = vshrl.u32 %v3658_v62, 16  ;;  %v817_v41 = vshll.u32 %v3658_v62, 16 }
  0xea   : > { %934 = vrot.lane.b32.xlu1 %v899_v26, %s2882_s28  ;;  %v812_v25 = vsel %vm740_vm3, %v807_v35, %v3655_v1  ;;  %v3684_v30 = vrot.slane %v3658_v62, 2  ;;  %v1162_v35 = vrot.slane %v3658_v62, 3 }
  0xeb   : > { %v1179_v22 = vpop.permute.xlu0 %1178 }
  0xec   : > { %v3593_v54 = vpop.permute.xlu1 %585  ;;  %v1475_v23 = vsel %vm1463_vm14, %v1438_v52, %v1179_v22 }
  0xed   : > { %985 = vrot.lane.b32.xlu0 %v899_v26, %s2885_s10  ;;  %2659 = vmatmul.mubr.msk.bf16.gmra.mrb[8].mxu0 %vm1520_vm15, %v1475_v23  ;;  %v3644_v26 = vrot.slane %v3619_v34, 1  ;;  %v1220_v23 = vsel %vm1204_vm7, %v3135_v18, %v3593_v54  ;;  %v1066_v18 = vrot.slane %v3631_v44, 3 }
  0xee   : > { %987 = vrot.lane.b32.xlu1 %v3589_v53, %s2885_s10 }
  0xef   : > { %v661_v3 = vpop.permute.xlu0 %660  ;;  %v3653_v40 = vsel %vm610_vm0, %v642_v49, %v3644_v26 }
  0xf0   : > { %v663_v58 = vpop.permute.xlu1 %662  ;;  %v1255_v7 = vsel %vm1241_vm8, %v1218_v0, %v661_v3 }
  0xf1   : > { %1115 = vrot.lane.b32.xlu0 %v1060_v17, %s2886_s11  ;;  %v1257_v3 = vsel %vm1241_vm8, %v1220_v23, %v663_v58  ;;  %v1070_v58 = vrot.slane %v817_v41, 3 }
  0xf2   : > { %1117 = vrot.lane.b32.xlu1 %v1064_v5, %s2886_s11 }
  0xf3   : > { %v714_v9 = vpop.permute.xlu0 %713 }
  0xf4   : > { %v716_v39 = vpop.permute.xlu1 %715  ;;  %v1292_v14 = vsel %vm1278_vm9, %v1255_v7, %v714_v9 }
  0xf5   : > { %1192 = vrot.lane.b32.xlu0 %v1157_v24, %s2887_s12  ;;  %v1294_v54 = vsel %vm1278_vm9, %v1257_v3, %v716_v39  ;;  %v819_v3 = vrot.slane %v817_v41, 2 }
  0xf6   : > { %599 = vrot.lane.b32.xlu1 %v546_v42, %s2883_s29 }
  0xf7   : > { %v844_v10 = vpop.permute.xlu0 %843 }
  0xf8   : > { %v846_v56 = vpop.permute.xlu1 %845  ;;  %v1329_v52 = vsel %vm1315_vm10, %v1292_v14, %v844_v10  ;;  %v1067_v10 = vor.u32 %v1066_v18, %v1065_v6 }
  0xf9   : > { %1194 = vrot.lane.b32.xlu0 %v1159_v43, %s2887_s12  ;;  %v1331_v9 = vsel %vm1315_vm10, %v1294_v54, %v846_v56 }
  0xfa   : > { %601 = vrot.lane.b32.xlu1 %v554_v15, %s2883_s29 }
  0xfb   : > { %v921_v61 = vpop.permute.xlu0 %920 }
  0xfc   : > { %v923_v37 = vpop.permute.xlu1 %922  ;;  %v1366_v17 = vsel %vm1352_vm11, %v1329_v52, %v921_v61 }
  0xfd   : > { %676 = vrot.lane.b32.xlu0 %v3533_v8, %s2881_s27  ;;  %v902_v8 = vrot.slane %v3619_v34, 2  ;;  %v1368_v43 = vsel %vm1352_vm11, %v1331_v9, %v923_v37 }
  0xfe   : > { %678 = vrot.lane.b32.xlu1 %v643_v59, %s2881_s27 }
  0xff   : > { %v974_v2 = vpop.permute.xlu0 %973  ;;  %v903_v33 = vsel %vm870_vm1, %v900_v27, %v902_v8  ;;  %v1069_v27 = vrot.slane %v814_v51, 2  ;;  %v3710_v56 = vsel %vm870_vm1, %v902_v8, %v3684_v30  ;;  %v557_v8 = vor.u32 %v3556_v20, %v553_v48  ;;  %v2850_v48 = vld [vmem:[%s2945_s25 + $0x98] ss:$0 sps:$4 sm:$0x11]  }
 0x100   : > { %v976_v47 = vpop.permute.xlu1 %975  ;;  %v1403_v5 = vsel %vm1389_vm12, %v1366_v17, %v974_v2  ;;  %v561_v2 = vrot.slane %v3631_v44, 1  ;;  %v1163_v44 = vsel %vm1130_vm5, %v1160_v36, %v1162_v35  ;;  %v646_v20 = vrot.slane %v2849_v57, 1 }
 0x101   : > { %729 = vrot.lane.b32.xlu0 %v643_v59, %s2880_s26  ;;  %v1405_v39 = vsel %vm1389_vm12, %v1368_v43, %v976_v47  ;;  %v3712_v12 = vor.u32 %v1070_v58, %v1069_v27  ;;  %v1068_v59 = vsel %vm1000_vm4, %v3591_v55, %v1067_v10  ;;  %v567_v47 = vshll.u32 %v2849_v57, 16  ;;  %v3764_v58 = vld [vmem:[%s2945_s25 + $0x98] sm:$0xff]   ;;  %v3768_v43 = vld [vmem:[%s2945_s25 + $0xa0] ss:$0 sps:$4 sm:$0x77]  }
 0x102   : > { %731 = vrot.lane.b32.xlu1 %v3653_v40, %s2880_s26  ;;  %v1161_v55 = vsel %vm1130_vm5, %v1158_v11, %v1160_v36  ;;  %v562_v11 = vsel %vm422_vm2, %v557_v8, %v561_v2  ;;  %v647_v6 = vsel %vm610_vm0, %v3644_v26, %v646_v20  ;;  %v699_v18 = vrot.slane %v2850_v48, 1 }
 0x103   : > { %v1104_v19 = vpop.permute.xlu0 %1103  ;;  %v1072_v37 = vsel %vm1000_vm4, %v1067_v10, %v3712_v12  ;;  %v569_v14 = vrot.slane %v567_v47, 1  ;;  %v1074_v57 = vshrl.u32 %v3764_v58, 16  ;;  %v957_v8 = vrot.slane %v3764_v58, 2 }
 0x104   : > { %v1106_v22 = vpop.permute.xlu1 %1105  ;;  %v1440_v16 = vsel %vm1426_vm13, %v1403_v5, %v1104_v19  ;;  %v2851_v19 = vld [vmem:[%s2945_s25 + $0x98] ss:$0 sps:$4 sm:$0x33]  }
 0x105   : > { %859 = vrot.lane.b32.xlu0 %v808_v29, %s2884_s9  ;;  %v1442_v15 = vsel %vm1426_vm13, %v1405_v39, %v1106_v22  ;;  %v565_v29 = vor.u32 %v3634_v46, %v561_v2  ;;  %v823_v22 = vshrl.u32 %v2851_v19, 16  ;;  %v826_v23 = vshll.u32 %v2851_v19, 16 }
 0x106   : > { %861 = vrot.lane.b32.xlu1 %v812_v25, %s2884_s9  ;;  %v697_v46 = vrot.slane %v3658_v62, 1  ;;  %v906_v10 = vrot.slane %v2851_v19, 2 }
 0x107   : > { %v1181_v24 = vpop.permute.xlu0 %1180  ;;  %v570_v45 = vsel %vm422_vm2, %v565_v29, %v569_v14  ;;  %v825_v54 = vrot.slane %v823_v22, 1  ;;  %v1076_v14 = vrot.slane %v1074_v57, 2  ;;  %vm2257_vm2 = vcmask 57344  }
 0x108   : > { %v3698_v42 = vpop.permute.xlu1 %587  ;;  %v1477_v4 = vsel %vm1463_vm14, %v1440_v16, %v1181_v24  ;;  %v828_v16 = vrot.slane %v826_v23, 2  ;;  %v700_v9 = vsel %vm610_vm0, %v697_v46, %v699_v18  ;;  %v907_v47 = vsel %vm870_vm1, %v3684_v30, %v906_v10 }
 0x109   : > { %936 = vrot.lane.b32.xlu0 %v3589_v53, %s2882_s28  ;;  %2662 = vmatprep.mubr.msk.bf16.mxu0 %vm1520_vm15, %v1477_v4 }
 0x10a   : > { %938 = vrot.lane.b32.xlu1 %v903_v33, %s2882_s28  ;;  %v829_v4 = vor.u32 %v828_v16, %v825_v54 }
 0x10b   : > { %v1183_v49 = vpop.permute.xlu0 %1182 }
 0x10c   : > { %v3715_v61 = vpop.permute.xlu1 %589  ;;  %v1479_v53 = vsel %vm1463_vm14, %v1442_v15, %v1183_v49  ;;  %v2853_v15 = vld [vmem:[%s2945_s25 + $0xa0] ss:$0 sps:$4 sm:$0x33]  }
 0x10d   : > { %989 = vrot.lane.b32.xlu0 %v903_v33, %s2885_s10  ;;  %2663 = vmatmul.mubr.msk.bf16.gmra.mrb[12].mxu0 %vm1520_vm15, %v1479_v53  ;;  %v816_v33 = vrot.slane %v814_v51, 1  ;;  %v698_v51 = vsel %vm610_vm0, %v3644_v26, %v697_v46  ;;  %v1077_v53 = vshll.u32 %v3764_v58, 16  ;;  %vm1882_vm0 = vcmask 60416  }
 0x10e   : > { %991 = vrot.lane.b32.xlu1 %v3710_v56, %s2885_s10 }
 0x10f   : > { %v665_v13 = vpop.permute.xlu0 %664  ;;  %v820_v27 = vor.u32 %v819_v3, %v816_v33  ;;  %v1079_v19 = vrot.slane %v1077_v53, 3 }
 0x110   : > { %v3729_v0 = vpop.permute.xlu1 %666 }
 0x111   : > { %1119 = vrot.lane.b32.xlu0 %v1068_v59, %s2886_s11  ;;  %v821_v49 = vsel %vm740_vm3, %v3655_v1, %v820_v27  ;;  %v1224_v1 = vsel %vm1204_vm7, %v3190_v60, %v3715_v61  ;;  %v1080_v46 = vor.u32 %v1079_v19, %v1076_v14 }
 0x112   : > { %1121 = vrot.lane.b32.xlu1 %v1072_v37, %s2886_s11  ;;  %v830_v37 = vsel %vm740_vm3, %v820_v27, %v829_v4 }
 0x113   : > { %v718_v7 = vpop.permute.xlu0 %717 }
 0x114   : > { %v720_v25 = vpop.permute.xlu1 %719 }
 0x115   : > { %1196 = vrot.lane.b32.xlu0 %v1161_v55, %s2887_s12 }
 0x116   : > { %1198 = vrot.lane.b32.xlu1 %v1163_v44, %s2887_s12  ;;  %v1261_v44 = vsel %vm1241_vm8, %v1224_v1, %v3729_v0 }
 0x117   : > { %v848_v52 = vpop.permute.xlu0 %847 }
 0x118   : > { %v850_v17 = vpop.permute.xlu1 %849 }
 0x119   : > { %603 = vrot.lane.b32.xlu0 %v562_v11, %s2883_s29  ;;  %v1298_v11 = vsel %vm1278_vm9, %v1261_v44, %v720_v25  ;;  %v958_v25 = vsel %vm870_vm1, %v3684_v30, %v957_v8  ;;  %v1164_v30 = vrot.slane %v3764_v58, 3 }
 0x11a   : > { %605 = vrot.lane.b32.xlu1 %v570_v45, %s2883_s29  ;;  %v1335_v20 = vsel %vm1315_vm10, %v1298_v11, %v850_v17 }
 0x11b   : > { %v925_v5 = vpop.permute.xlu0 %924  ;;  %v1165_v27 = vsel %vm1130_vm5, %v1162_v35, %v1164_v30 }
 0x11c   : > { %v927_v24 = vpop.permute.xlu1 %926 }
 0x11d   : > { %680 = vrot.lane.b32.xlu0 %v3653_v40, %s2881_s27  ;;  %v1222_v40 = vsel %vm1204_vm7, %v3154_v32, %v3698_v42  ;;  %v1083_v32 = vshrl.u32 %v3768_v43, 16  ;;  %v1086_v42 = vshll.u32 %v3768_v43, 16  ;;  %v1372_v0 = vsel %vm1352_vm11, %v1335_v20, %v927_v24 }
 0x11e   : > { %682 = vrot.lane.b32.xlu1 %v647_v6, %s2881_s27  ;;  %v1259_v26 = vsel %vm1241_vm8, %v1222_v40, %v665_v13  ;;  %v1166_v24 = vrot.slane %v3768_v43, 3  ;;  %s274_s27 = scalar_lea.vmem %s4296_s4, %s4307_s18 }
 0x11f   : > { %v978_v41 = vpop.permute.xlu0 %977  ;;  %v1296_v59 = vsel %vm1278_vm9, %v1259_v26, %v718_v7  ;;  %v959_v7 = vrot.slane %v2853_v15, 2  ;;  %v1088_v45 = vrot.slane %v1086_v42, 3  ;;  %v2855_v15 = vld [vmem:[%s2945_s25 + $0x50] sm:$0xff]  }
 0x120   : > { %v980_v39 = vpop.permute.xlu1 %979  ;;  %v1333_v13 = vsel %vm1315_vm10, %v1296_v59, %v848_v52  ;;  %v1085_v52 = vrot.slane %v1083_v32, 2 }
 0x121   : > { %733 = vrot.lane.b32.xlu0 %v698_v51, %s2880_s26  ;;  %v1370_v55 = vsel %vm1352_vm11, %v1333_v13, %v925_v5  ;;  %v1409_v23 = vsel %vm1389_vm12, %v1372_v0, %v980_v39  ;;  %v960_v3 = vsel %vm870_vm1, %v957_v8, %v959_v7  ;;  %vm2889_vm1 = vmmov 0  }
 0x122   : > { %735 = vrot.lane.b32.xlu1 %v700_v9, %s2880_s26  ;;  %v1407_v29 = vsel %vm1389_vm12, %v1370_v55, %v978_v41  ;;  %v1089_v5 = vor.u32 %v1088_v45, %v1085_v52 }
 0x123   : > { %v1108_v36 = vpop.permute.xlu0 %1107 }
 0x124   : > { %v1110_v2 = vpop.permute.xlu1 %1109  ;;  %v1444_v60 = vsel %vm1426_vm13, %v1407_v29, %v1108_v36  ;;  %v1090_v16 = vsel %vm1000_vm4, %v1080_v46, %v1089_v5 }
 0x125   : > { %863 = vrot.lane.b32.xlu0 %v821_v49, %s2884_s9  ;;  %v1446_v17 = vsel %vm1426_vm13, %v1409_v23, %v1110_v2 }
 0x126   : > { %865 = vrot.lane.b32.xlu1 %v830_v37, %s2884_s9 }
 0x127   : > { %v1185_v61 = vpop.permute.xlu0 %1184 }
 0x128   : > { %v592_v48 = vpop.permute.xlu1 %591  ;;  %v1481_v22 = vsel %vm1463_vm14, %v1444_v60, %v1185_v61 }
 0x129   : > { %940 = vrot.lane.b32.xlu0 %v3710_v56, %s2882_s28  ;;  %2666 = vmatprep.mubr.msk.bf16.mxu0 %vm1520_vm15, %v1481_v22  ;;  %v1081_v56 = vsel %vm1000_vm4, %v3712_v12, %v1080_v46  ;;  %v1167_v12 = vsel %vm1130_vm5, %v1164_v30, %v1166_v24  ;;  %v1226_v26 = vsel %vm1204_vm7, %v2855_v15, %v592_v48 }
 0x12a   : > { %942 = vrot.lane.b32.xlu1 %v907_v47, %s2882_s28 }
 0x12b   : > { %v1187_v33 = vpop.permute.xlu0 %1186 }
 0x12c   : > { %v594_v6 = vpop.permute.xlu1 %593  ;;  %v1483_v18 = vsel %vm1463_vm14, %v1446_v17, %v1187_v33 }
 0x12d   : > { %993 = vrot.lane.b32.xlu0 %v958_v25, %s2885_s10  ;;  %2667 = vmatmul.mubr.msk.bf16.gmra.mrb[16].mxu0 %vm1520_vm15, %v1483_v18  ;;  %v1228_v59 = vsel %vm1204_vm7, %v3262_v28, %v594_v6 }
 0x12e   : > { %995 = vrot.lane.b32.xlu1 %v960_v3, %s2885_s10 }
 0x12f   : > { %v669_v54 = vpop.permute.xlu0 %668 }
 0x130   : > { %v671_v51 = vpop.permute.xlu1 %670  ;;  %v1263_v62 = vsel %vm1241_vm8, %v1226_v26, %v669_v54 }
 0x131   : > { %1123 = vrot.lane.b32.xlu0 %v1081_v56, %s2886_s11  ;;  %v1265_v37 = vsel %vm1241_vm8, %v1228_v59, %v671_v51 }
 0x132   : > { %1125 = vrot.lane.b32.xlu1 %v1090_v16, %s2886_s11 }
 0x133   : > { %v722_v41 = vpop.permute.xlu0 %721 }
 0x134   : > { %v724_v9 = vpop.permute.xlu1 %723  ;;  %v1300_v35 = vsel %vm1278_vm9, %v1263_v62, %v722_v41 }
 0x135   : > { %1200 = vrot.lane.b32.xlu0 %v1165_v27, %s2887_s12  ;;  %v1302_v42 = vsel %vm1278_vm9, %v1265_v37, %v724_v9 }
 0x136   : > { %1202 = vrot.lane.b32.xlu1 %v1167_v12, %s2887_s12 }
 0x137   : > { %v852_v58 = vpop.permute.xlu0 %851 }
 0x138   : > { %v854_v4 = vpop.permute.xlu1 %853  ;;  %v1337_v57 = vsel %vm1315_vm10, %v1300_v35, %v852_v58 }
 0x139   : > { %v1339_v47 = vsel %vm1315_vm10, %v1302_v42, %v854_v4 }
 0x13b   : > { %v929_v43 = vpop.permute.xlu0 %928 }
 0x13c   : > { %v931_v39 = vpop.permute.xlu1 %930  ;;  %v1374_v36 = vsel %vm1352_vm11, %v1337_v57, %v929_v43 }
 0x13d   : > { %v1376_v8 = vsel %vm1352_vm11, %v1339_v47, %v931_v39 }
 0x13f   : > { %v982_v10 = vpop.permute.xlu0 %981 }
 0x140   : > { %v984_v40 = vpop.permute.xlu1 %983  ;;  %v1411_v32 = vsel %vm1389_vm12, %v1374_v36, %v982_v10 }
 0x141   : > { %v1413_v28 = vsel %vm1389_vm12, %v1376_v8, %v984_v40 }
 0x143   : > { %v1112_v49 = vpop.permute.xlu0 %1111 }
 0x144   : > { %v1114_v53 = vpop.permute.xlu1 %1113  ;;  %v1448_v13 = vsel %vm1426_vm13, %v1411_v32, %v1112_v49 }
 0x145   : > { %v1450_v7 = vsel %vm1426_vm13, %v1413_v28, %v1114_v53 }
 0x147   : > { %v1189_v2 = vpop.permute.xlu0 %1188 }
 0x148   : > { %v596_v1 = vpop.permute.xlu1 %595  ;;  %v1485_v55 = vsel %vm1463_vm14, %v1448_v13, %v1189_v2 }
 0x149   : > { %2670 = vmatprep.mubr.msk.bf16.mxu0 %vm1520_vm15, %v1485_v55  ;;  %v1230_v23 = vsel %vm1204_vm7, %v3305_v63, %v596_v1 }
 0x14b   : > { %v1191_v44 = vpop.permute.xlu0 %1190 }
 0x14c   : > { %v598_v29 = vpop.permute.xlu1 %597  ;;  %v1487_v14 = vsel %vm1463_vm14, %v1450_v7, %v1191_v44 }
 0x14d   : > { %2671 = vmatmul.mubr.msk.bf16.gmra.mrb[20].mxu0 %vm1520_vm15, %v1487_v14  ;;  %v1232_v5 = vsel %vm1204_vm7, %v3381_v50, %v598_v29 }
 0x14f   : > { %v673_v19 = vpop.permute.xlu0 %672 }
 0x150   : > { %v675_v11 = vpop.permute.xlu1 %674  ;;  %v1267_v25 = vsel %vm1241_vm8, %v1230_v23, %v673_v19 }
 0x151   : > { %v1269_v18 = vsel %vm1241_vm8, %v1232_v5, %v675_v11 }
 0x153   : > { %v726_v60 = vpop.permute.xlu0 %725 }
 0x154   : > { %v728_v61 = vpop.permute.xlu1 %727  ;;  %v1304_v46 = vsel %vm1278_vm9, %v1267_v25, %v726_v60 }
 0x155   : > { %v1306_v30 = vsel %vm1278_vm9, %v1269_v18, %v728_v61 }
 0x157   : > { %v856_v52 = vpop.permute.xlu0 %855 }
 0x158   : > { %v858_v45 = vpop.permute.xlu1 %857  ;;  %v1341_v33 = vsel %vm1315_vm10, %v1304_v46, %v856_v52 }
 0x159   : > { %v1343_v16 = vsel %vm1315_vm10, %v1306_v30, %v858_v45 }
 0x15b   : > { %v933_v20 = vpop.permute.xlu0 %932 }
 0x15c   : > { %v935_v48 = vpop.permute.xlu1 %934  ;;  %v1378_v6 = vsel %vm1352_vm11, %v1341_v33, %v933_v20 }
 0x15d   : > { %v1380_v27 = vsel %vm1352_vm11, %v1343_v16, %v935_v48 }
 0x15f   : > { %v986_v22 = vpop.permute.xlu0 %985 }
 0x160   : > { %v988_v0 = vpop.permute.xlu1 %987  ;;  %v1415_v56 = vsel %vm1389_vm12, %v1378_v6, %v986_v22 }
 0x161   : > { %v1417_v50 = vsel %vm1389_vm12, %v1380_v27, %v988_v0 }
 0x163   : > { %v1116_v17 = vpop.permute.xlu0 %1115 }
 0x164   : > { %v1118_v3 = vpop.permute.xlu1 %1117  ;;  %v1452_v63 = vsel %vm1426_vm13, %v1415_v56, %v1116_v17 }
 0x165   : > { %v1454_v41 = vsel %vm1426_vm13, %v1417_v50, %v1118_v3 }
 0x167   : > { %v1193_v54 = vpop.permute.xlu0 %1192 }
 0x168   : > { %v600_v24 = vpop.permute.xlu1 %599  ;;  %v1489_v51 = vsel %vm1463_vm14, %v1452_v63, %v1193_v54 }
 0x169   : > { %2674 = vmatprep.mubr.msk.bf16.mxu0 %vm1520_vm15, %v1489_v51  ;;  %v1234_v35 = vsel %vm1204_vm7, %v3419_v38, %v600_v24 }
 0x16b   : > { %v1195_v12 = vpop.permute.xlu0 %1194 }
 0x16c   : > { %v602_v9 = vpop.permute.xlu1 %601  ;;  %v1491_v58 = vsel %vm1463_vm14, %v1454_v41, %v1195_v12 }
 0x16d   : > { %2675 = vmatmul.mubr.msk.bf16.gmra.mrb[24].mxu0 %vm1520_vm15, %v1491_v58  ;;  %v1236_v57 = vsel %vm1204_vm7, %v3500_v21, %v602_v9 }
 0x16f   : > { %v677_v4 = vpop.permute.xlu0 %676 }
 0x170   : > { %v679_v43 = vpop.permute.xlu1 %678  ;;  %v1271_v53 = vsel %vm1241_vm8, %v1234_v35, %v677_v4 }
 0x171   : > { %v1273_v37 = vsel %vm1241_vm8, %v1236_v57, %v679_v43 }
 0x173   : > { %v730_v39 = vpop.permute.xlu0 %729 }
 0x174   : > { %v732_v10 = vpop.permute.xlu1 %731  ;;  %v1308_v38 = vsel %vm1278_vm9, %v1271_v53, %v730_v39 }
 0x175   : > { %v1310_v42 = vsel %vm1278_vm9, %v1273_v37, %v732_v10 }
 0x177   : > { %v860_v40 = vpop.permute.xlu0 %859 }
 0x178   : > { %v862_v15 = vpop.permute.xlu1 %861  ;;  %v1345_v13 = vsel %vm1315_vm10, %v1308_v38, %v860_v40 }
 0x179   : > { %v1347_v61 = vsel %vm1315_vm10, %v1310_v42, %v862_v15 }
 0x17b   : > { %v937_v26 = vpop.permute.xlu0 %936 }
 0x17c   : > { %v939_v62 = vpop.permute.xlu1 %938  ;;  %v1382_v52 = vsel %vm1352_vm11, %v1345_v13, %v937_v26 }
 0x17d   : > { %v1384_v20 = vsel %vm1352_vm11, %v1347_v61, %v939_v62 }
 0x17f   : > { %v990_v49 = vpop.permute.xlu0 %989 }
 0x180   : > { %v992_v59 = vpop.permute.xlu1 %991  ;;  %v3880_v36 = vpop.f32.mrb[0].mxu0  ;;  %v1419_v48 = vsel %vm1389_vm12, %v1382_v52, %v990_v49 }
 0x181   : > { %v2509_v21 = vpack.c.bf16 %v3880_v36, %v3880_v36  ;;  %v3886_v32 = vpop.f32.mrb[1].mxu0  ;;  %v3898_v1 = vmul.f32 %v3880_v36, %v3880_v36  ;;  %v1421_v0 = vsel %vm1389_vm12, %v1384_v20, %v992_v59 }
 0x182   : > { %v2507_v2 = vpack.c.bf16 %v3886_v32, %v3886_v32  ;;  %v3892_v47 = vpop.f32.mrb[2].mxu0  ;;  %v3914_v29 = vmul.f32 %v3886_v32, %v3886_v32 }
 0x183   : > { %1885 = vst.msk [vmem:[%s3878_s22 + $0x8] sm:$0xf] %vm1882_vm0, %v2509_v21  ;;  %v2510_v55 = vpack.c.bf16 %v3892_v47, %v3892_v47  ;;  %v2714_v8 = vpack.c.bf16 %v3892_v47, %v3880_v36  ;;  %v3906_v28 = vmul.f32 %v3892_v47, %v3892_v47  ;;  %v3908_v7 = vpop.f32.mrb[3].mxu0  ;;  %v1120_v44 = vpop.permute.xlu0 %1119 }
 0x184   : > { %1883 = vst.msk [vmem:[%s3878_s22] sm:$0xf] %vm1882_vm0, %v2507_v2  ;;  %v1122_v14 = vpop.permute.xlu1 %1121  ;;  %v2508_v19 = vpack.c.bf16 %v3908_v7, %v3908_v7  ;;  %v3920_v11 = vmul.f32 %v3908_v7, %v3908_v7  ;;  %v2710_v60 = vpack.c.bf16 %v3908_v7, %v3886_v32  ;;  %v1456_v23 = vsel %vm1426_vm13, %v1419_v48, %v1120_v44 }
 0x185   : > { %1886 = vst.msk [vmem:[%s3878_s22 + $0xc] sm:$0xf] %vm1882_vm0, %v2510_v55  ;;  %v2752_v45 = vpack.c.bf16 %v3906_v28, %v3898_v1  ;;  %v1458_v46 = vsel %vm1426_vm13, %v1421_v0, %v1122_v14 }
 0x186   : > { %1884 = vst.msk [vmem:[%s3878_s22 + $0x4] sm:$0xf] %vm1882_vm0, %v2508_v19  ;;  %v2748_v22 = vpack.c.bf16 %v3920_v11, %v3914_v29 }
 0x187   : > { %v1197_v25 = vpop.permute.xlu0 %1196 }
 0x188   : > { %v1199_v17 = vpop.permute.xlu1 %1198  ;;  %v1493_v33 = vsel %vm1463_vm14, %v1456_v23, %v1197_v25 }
 0x189   : > { %v1495_v3 = vsel %vm1463_vm14, %v1458_v46, %v1199_v17  ;;  %2678 = vmatprep.mubr.msk.bf16.mxu0 %vm1520_vm15, %v1493_v33 }
 0x18a   : > { %2679 = vmatmul.mubr.msk.bf16.gmra.mrb[28].mxu0 %vm1520_vm15, %v1495_v3 }
 0x18b   : > { %v604_v5 = vpop.permute.xlu0 %603 }
 0x18c   : > { %v606_v6 = vpop.permute.xlu1 %605  ;;  %v1238_v27 = vsel %vm1204_vm7, %v3538_v31, %v604_v5 }
 0x18d   : > { %v1240_v41 = vsel %vm1204_vm7, %v3619_v34, %v606_v6 }
 0x18f   : > { %v681_v18 = vpop.permute.xlu0 %680 }
 0x190   : > { %v683_v56 = vpop.permute.xlu1 %682  ;;  %v1275_v12 = vsel %vm1241_vm8, %v1238_v27, %v681_v18 }
 0x191   : > { %v1277_v4 = vsel %vm1241_vm8, %v1240_v41, %v683_v56 }
 0x193   : > { %v734_v30 = vpop.permute.xlu0 %733 }
 0x194   : > { %v736_v63 = vpop.permute.xlu1 %735  ;;  %v1312_v43 = vsel %vm1278_vm9, %v1275_v12, %v734_v30 }
 0x195   : > { %v1314_v31 = vsel %vm1278_vm9, %v1277_v4, %v736_v63 }
 0x197   : > { %v864_v54 = vpop.permute.xlu0 %863 }
 0x198   : > { %v866_v16 = vpop.permute.xlu1 %865  ;;  %v1349_v40 = vsel %vm1315_vm10, %v1312_v43, %v864_v54 }
 0x199   : > { %v1351_v13 = vsel %vm1315_vm10, %v1314_v31, %v866_v16 }
 0x19b   : > { %v941_v24 = vpop.permute.xlu0 %940 }
 0x19c   : > { %v943_v51 = vpop.permute.xlu1 %942  ;;  %v1386_v2 = vsel %vm1352_vm11, %v1349_v40, %v941_v24 }
 0x19d   : > { %v1388_v44 = vsel %vm1352_vm11, %v1351_v13, %v943_v51 }
 0x19f   : > { %v994_v50 = vpop.permute.xlu0 %993 }
 0x1a0   : > { %v996_v9 = vpop.permute.xlu1 %995  ;;  %v3948_v58 = vpop.f32.mrb[4].mxu0  ;;  %v1423_v14 = vsel %vm1389_vm12, %v1386_v2, %v994_v50 }
 0x1a1   : > { %v2513_v39 = vpack.c.bf16 %v3948_v58, %v3948_v58  ;;  %v3954_v10 = vpop.f32.mrb[5].mxu0  ;;  %v3966_v26 = vmul.f32 %v3948_v58, %v3948_v58  ;;  %v1425_v61 = vsel %vm1389_vm12, %v1388_v44, %v996_v9 }
 0x1a2   : > { %v2511_v34 = vpack.c.bf16 %v3954_v10, %v3954_v10  ;;  %v3960_v15 = vpop.f32.mrb[6].mxu0  ;;  %v3982_v59 = vmul.f32 %v3954_v10, %v3954_v10 }
 0x1a3   : > { %1889 = vst.msk [vmem:[%s3878_s22 + $0x18] sm:$0xf] %vm1882_vm0, %v2513_v39  ;;  %v2514_v62 = vpack.c.bf16 %v3960_v15, %v3960_v15  ;;  %v2722_v35 = vpack.c.bf16 %v3960_v15, %v3948_v58  ;;  %v3974_v49 = vmul.f32 %v3960_v15, %v3960_v15  ;;  %v3976_v57 = vpop.f32.mrb[7].mxu0  ;;  %v1124_v53 = vpop.permute.xlu0 %1123 }
 0x1a4   : > { %1887 = vst.msk [vmem:[%s3878_s22 + $0x10] sm:$0xf] %vm1882_vm0, %v2511_v34  ;;  %v1126_v37 = vpop.permute.xlu1 %1125  ;;  %v2512_v38 = vpack.c.bf16 %v3976_v57, %v3976_v57  ;;  %v2718_v21 = vpack.c.bf16 %v3976_v57, %v3954_v10  ;;  %v3990_v42 = vmul.f32 %v3976_v57, %v3976_v57  ;;  %v1460_v52 = vsel %vm1426_vm13, %v1423_v14, %v1124_v53 }
 0x1a5   : > { %1890 = vst.msk [vmem:[%s3878_s22 + $0x1c] sm:$0xf] %vm1882_vm0, %v2514_v62  ;;  %v2760_v55 = vpack.c.bf16 %v3974_v49, %v3966_v26  ;;  %v1462_v48 = vsel %vm1426_vm13, %v1425_v61, %v1126_v37  ;;  %v1921_v14 = vlaneseq }
 0x1a6   : > { %1888 = vst.msk [vmem:[%s3878_s22 + $0x14] sm:$0xf] %vm1882_vm0, %v2512_v38  ;;  %v2756_v19 = vpack.c.bf16 %v3990_v42, %v3982_v59 }
 0x1a7   : > { %v1201_v20 = vpop.permute.xlu0 %1200  ;;  %v1922_v61 = vshrl.u32 %v1921_v14, 7 }
 0x1a8   : > { %v1203_v0 = vpop.permute.xlu1 %1202  ;;  %v1497_v23 = vsel %vm1463_vm14, %v1460_v52, %v1201_v20  ;;  %v1919_v20 = vld [vmem:[%s4294_s2] sm:$0x7] }
 0x1a9   : > { %v1499_v25 = vsel %vm1463_vm14, %v1462_v48, %v1203_v0  ;;  %2682 = vmatprep.mubr.msk.bf16.mxu0 %vm1520_vm15, %v1497_v23  ;;  %v1927_v52 = vsub.s32 1, %v1922_v61  ;;  %v1923_v48 = vsub.s32 0, %v1922_v61 }
 0x1aa   : > { %2683 = vmatmul.mubr.msk.bf16.gmra.mrb[32].mxu0 %vm1520_vm15, %v1499_v25 }
 0x1ab   : > { %v4110_v23 = vrot.slane %v1919_v20, %v1927_v52  ;;  %v1931_v52 = vsub.s32 2, %v1922_v61 }
 0x1ad   : > { %2001 = vmatprep.mubr.f32.mxu1 %v4110_v23  ;;  %v4129_v50 = vrot.slane %v1919_v20, %v1931_v52 }
 0x1c0   : > { %v4011_v46 = vpop.f32.mrb[8].mxu0 }
 0x1c1   : > { %v2517_v17 = vpack.c.bf16 %v4011_v46, %v4011_v46  ;;  %v4015_v33 = vpop.f32.mrb[9].mxu0  ;;  %v4025_v6 = vmul.f32 %v4011_v46, %v4011_v46 }
 0x1c2   : > { %v2515_v3 = vpack.c.bf16 %v4015_v33, %v4015_v33  ;;  %v4019_v5 = vpop.f32.mrb[10].mxu0  ;;  %v4041_v54 = vmul.f32 %v4015_v33, %v4015_v33 }
 0x1c3   : > { %1893 = vst.msk [vmem:[%s3878_s22 + $0x28] sm:$0xf] %vm1882_vm0, %v2517_v17  ;;  %v2518_v18 = vpack.c.bf16 %v4019_v5, %v4019_v5  ;;  %v2730_v56 = vpack.c.bf16 %v4019_v5, %v4011_v46  ;;  %v4033_v30 = vmul.f32 %v4019_v5, %v4019_v5  ;;  %v4035_v63 = vpop.f32.mrb[11].mxu0 }
 0x1c4   : > { %1891 = vst.msk [vmem:[%s3878_s22 + $0x20] sm:$0xf] %vm1882_vm0, %v2515_v3  ;;  %v2516_v16 = vpack.c.bf16 %v4035_v63, %v4035_v63  ;;  %v2726_v24 = vpack.c.bf16 %v4035_v63, %v4015_v33  ;;  %v4049_v51 = vmul.f32 %v4035_v63, %v4035_v63  ;;  %v4112_v3 = vrot.slane %v1919_v20, %v1923_v48 }
 0x1c5   : > { %1894 = vst.msk [vmem:[%s3878_s22 + $0x2c] sm:$0xf] %vm1882_vm0, %v2518_v18  ;;  %v4299_v28 = vpack.c.bf16 %v4033_v30, %v4025_v6 }
 0x1c6   : > { %1892 = vst.msk [vmem:[%s3878_s22 + $0x24] sm:$0xf] %vm1882_vm0, %v2516_v16  ;;  %v4298_v1 = vpack.c.bf16 %v4049_v51, %v4041_v54 }
 0x1e0   : > { %v4059_v41 = vpop.f32.mrb[12].mxu0 }
 0x1e1   : > { %v2521_v12 = vpack.c.bf16 %v4059_v41, %v4059_v41  ;;  %v4063_v9 = vpop.f32.mrb[13].mxu0  ;;  %v4073_v39 = vmul.f32 %v4059_v41, %v4059_v41 }
 0x1e2   : > { %v2519_v4 = vpack.c.bf16 %v4063_v9, %v4063_v9  ;;  %v4067_v43 = vpop.f32.mrb[14].mxu0  ;;  %v4089_v53 = vmul.f32 %v4063_v9, %v4063_v9 }
 0x1e3   : > { %1897 = vst.msk [vmem:[%s3878_s22 + $0x38] sm:$0xf] %vm1882_vm0, %v2521_v12  ;;  %v2522_v31 = vpack.c.bf16 %v4067_v43, %v4067_v43  ;;  %v2738_v40 = vpack.c.bf16 %v4067_v43, %v4059_v41  ;;  %v4081_v34 = vmul.f32 %v4067_v43, %v4067_v43  ;;  %v4083_v62 = vpop.f32.mrb[15].mxu0 }
 0x1e4   : > { %1895 = vst.msk [vmem:[%s3878_s22 + $0x30] sm:$0xf] %vm1882_vm0, %v2519_v4  ;;  %v2520_v37 = vpack.c.bf16 %v4083_v62, %v4083_v62  ;;  %v2734_v38 = vpack.c.bf16 %v4083_v62, %v4063_v9  ;;  %v4097_v13 = vmul.f32 %v4083_v62, %v4083_v62 }
 0x1e5   : > { %1898 = vst.msk [vmem:[%s3878_s22 + $0x3c] sm:$0xf] %vm1882_vm0, %v2522_v31  ;;  %v4301_v11 = vpack.c.bf16 %v4081_v34, %v4073_v39 }
 0x1e6   : > { %1896 = vst.msk [vmem:[%s3878_s22 + $0x34] sm:$0xf] %vm1882_vm0, %v2520_v37  ;;  %v4300_v29 = vpack.c.bf16 %v4097_v13, %v4089_v53 }
 0x200   : > { %v2668_v0 = vpop.f32.mrb[16].mxu0 }
 0x201   : > { %v2525_v25 = vpack.c.bf16 %v2668_v0, %v2668_v0  ;;  %v1659_v17 = vpop.f32.mrb[17].mxu0  ;;  %v4114_v18 = vmul.f32 %v2668_v0, %v2668_v0 }
 0x202   : > { %v2523_v16 = vpack.c.bf16 %v1659_v17, %v1659_v17  ;;  %v2669_v12 = vpop.f32.mrb[18].mxu0  ;;  %v4123_v48 = vmul.f32 %v1659_v17, %v1659_v17 }
 0x203   : > { %1901 = vst.msk [vmem:[%s3878_s22 + $0x48] sm:$0xf] %vm1882_vm0, %v2525_v25  ;;  %v2526_v4 = vpack.c.bf16 %v2669_v12, %v2669_v12  ;;  %v2712_v31 = vpack.c.bf16 %v2669_v12, %v2668_v0  ;;  %v4119_v37 = vmul.f32 %v2669_v12, %v2669_v12  ;;  %v1662_v14 = vpop.f32.mrb[19].mxu0 }
 0x204   : > { %1899 = vst.msk [vmem:[%s3878_s22 + $0x40] sm:$0xf] %vm1882_vm0, %v2523_v16  ;;  %v2524_v2 = vpack.c.bf16 %v1662_v14, %v1662_v14  ;;  %v4125_v44 = vmul.f32 %v1662_v14, %v1662_v14  ;;  %v2708_v27 = vpack.c.bf16 %v1662_v14, %v1659_v17 }
 0x205   : > { %1902 = vst.msk [vmem:[%s3878_s22 + $0x4c] sm:$0xf] %vm1882_vm0, %v2526_v4  ;;  %v2750_v0 = vpack.c.bf16 %v4119_v37, %v4114_v18 }
 0x206   : > { %1900 = vst.msk [vmem:[%s3878_s22 + $0x44] sm:$0xf] %vm1882_vm0, %v2524_v2  ;;  %2709 = vmatprep.subr.bf16.mxu1 %v2708_v27  ;;  %v2746_v61 = vpack.c.bf16 %v4125_v44, %v4123_v48 }
 0x207   : > { %2711 = vmatpush3.bf16.msra.mxu1 %v2710_v60 }
 0x208   : > { %2713 = vmatprep.subr.bf16.mxu1 %v2712_v31 }
 0x20b   : > { %2715 = vmatpush3.bf16.msra.mxu1 %v2714_v8 }
 0x220   : > { %v2672_v20 = vpop.f32.mrb[20].mxu0 }
 0x221   : > { %v2529_v25 = vpack.c.bf16 %v2672_v20, %v2672_v20  ;;  %v1675_v17 = vpop.f32.mrb[21].mxu0  ;;  %v4145_v16 = vmul.f32 %v2672_v20, %v2672_v20 }
 0x222   : > { %v2527_v2 = vpack.c.bf16 %v1675_v17, %v1675_v17  ;;  %v2673_v27 = vpop.f32.mrb[22].mxu0  ;;  %v4151_v36 = vmul.f32 %v1675_v17, %v1675_v17 }
 0x223   : > { %1905 = vst.msk [vmem:[%s3878_s22 + $0x58] sm:$0xf] %vm1882_vm0, %v2529_v25  ;;  %v2530_v12 = vpack.c.bf16 %v2673_v27, %v2673_v27  ;;  %v2720_v4 = vpack.c.bf16 %v2673_v27, %v2672_v20  ;;  %v4147_v32 = vmul.f32 %v2673_v27, %v2673_v27  ;;  %v1678_v7 = vpop.f32.mrb[23].mxu0 }
 0x224   : > { %1903 = vst.msk [vmem:[%s3878_s22 + $0x50] sm:$0xf] %vm1882_vm0, %v2527_v2  ;;  %v2528_v47 = vpack.c.bf16 %v1678_v7, %v1678_v7  ;;  %v2716_v8 = vpack.c.bf16 %v1678_v7, %v1675_v17  ;;  %v4153_v60 = vmul.f32 %v1678_v7, %v1678_v7 }
 0x225   : > { %1906 = vst.msk [vmem:[%s3878_s22 + $0x5c] sm:$0xf] %vm1882_vm0, %v2530_v12  ;;  %v2758_v31 = vpack.c.bf16 %v4147_v32, %v4145_v16 }
 0x226   : > { %1904 = vst.msk [vmem:[%s3878_s22 + $0x54] sm:$0xf] %vm1882_vm0, %v2528_v47  ;;  %2717 = vmatprep.subr.bf16.mxu1 %v2716_v8  ;;  %v2754_v14 = vpack.c.bf16 %v4153_v60, %v4151_v36 }
 0x227   : > { %2719 = vmatpush3.bf16.msra.mxu1 %v2718_v21 }
 0x228   : > { %2721 = vmatprep.subr.bf16.mxu1 %v2720_v4 }
 0x22b   : > { %2723 = vmatpush3.bf16.msra.mxu1 %v2722_v35 }
 0x240   : > { %v2676_v52 = vpop.f32.mrb[24].mxu0 }
 0x241   : > { %v2533_v20 = vpack.c.bf16 %v2676_v52, %v2676_v52  ;;  %v1691_v25 = vpop.f32.mrb[25].mxu0  ;;  %v4171_v27 = vmul.f32 %v2676_v52, %v2676_v52 }
 0x242   : > { %v2531_v17 = vpack.c.bf16 %v1691_v25, %v1691_v25  ;;  %v2677_v2 = vpop.f32.mrb[26].mxu0  ;;  %v4177_v58 = vmul.f32 %v1691_v25, %v1691_v25 }
 0x243   : > { %1909 = vst.msk [vmem:[%s3878_s22 + $0x68] sm:$0xf] %vm1882_vm0, %v2533_v20  ;;  %v2534_v12 = vpack.c.bf16 %v2677_v2, %v2677_v2  ;;  %v2728_v7 = vpack.c.bf16 %v2677_v2, %v2676_v52  ;;  %v4173_v10 = vmul.f32 %v2677_v2, %v2677_v2  ;;  %v1694_v57 = vpop.f32.mrb[27].mxu0 }
 0x244   : > { %1907 = vst.msk [vmem:[%s3878_s22 + $0x60] sm:$0xf] %vm1882_vm0, %v2531_v17  ;;  %v2532_v15 = vpack.c.bf16 %v1694_v57, %v1694_v57  ;;  %v2724_v35 = vpack.c.bf16 %v1694_v57, %v1691_v25  ;;  %v4179_v21 = vmul.f32 %v1694_v57, %v1694_v57 }
 0x245   : > { %1910 = vst.msk [vmem:[%s3878_s22 + $0x6c] sm:$0xf] %vm1882_vm0, %v2534_v12  ;;  %v2766_v4 = vpack.c.bf16 %v4173_v10, %v4171_v27 }
 0x246   : > { %1908 = vst.msk [vmem:[%s3878_s22 + $0x64] sm:$0xf] %vm1882_vm0, %v2532_v15  ;;  %2725 = vmatprep.subr.bf16.mxu1 %v2724_v35  ;;  %v2762_v47 = vpack.c.bf16 %v4179_v21, %v4177_v58  ;;  %v2888_v35 = vmov 0.0|0.0  }
 0x247   : > { %2727 = vmatpush3.bf16.msra.mxu1 %v2726_v24 }
 0x248   : > { %2729 = vmatprep.subr.bf16.mxu1 %v2728_v7 }
 0x24b   : > { %2731 = vmatpush3.bf16.msra.mxu1 %v2730_v56 }
 0x25d   : > { %v2680_v8 = vpop.f32.mrb[28].mxu0 }
 0x25e   : > { %v2537_v52 = vpack.c.bf16 %v2680_v8, %v2680_v8  ;;  %v1707_v20 = vpop.f32.mrb[29].mxu0  ;;  %v4197_v2 = vmul.f32 %v2680_v8, %v2680_v8 }
 0x25f   : > { %v2535_v25 = vpack.c.bf16 %v1707_v20, %v1707_v20  ;;  %v2681_v17 = vpop.f32.mrb[30].mxu0  ;;  %v2105_v24 = vmul.f32 %v1707_v20, %v1707_v20 }
 0x260   : > { %1913 = vst.msk [vmem:[%s3878_s22 + $0x78] sm:$0xf] %vm1882_vm0, %v2537_v52  ;;  %v2538_v12 = vpack.c.bf16 %v2681_v17, %v2681_v17  ;;  %v2736_v57 = vpack.c.bf16 %v2681_v17, %v2680_v8  ;;  %v2108_v33 = vmul.f32 %v2681_v17, %v2681_v17  ;;  %v1710_v63 = vpop.f32.mrb[31].mxu0  ;;  %v2890_v8 = vmov 0.0  }
 0x261   : > { %1911 = vst.msk [vmem:[%s3878_s22 + $0x70] sm:$0xf] %vm1882_vm0, %v2535_v25  ;;  %v2536_v46 = vpack.c.bf16 %v1710_v63, %v1710_v63  ;;  %v2732_v5 = vpack.c.bf16 %v1710_v63, %v1707_v20  ;;  %v2106_v56 = vmul.f32 %v1710_v63, %v1710_v63 }
 0x262   : > { %1914 = vst.msk [vmem:[%s3878_s22 + $0x7c] sm:$0xf] %vm1882_vm0, %v2538_v12  ;;  %v2774_v7 = vpack.c.bf16 %v2108_v33, %v4197_v2 }
 0x263   : > { %1912 = vst.msk [vmem:[%s3878_s22 + $0x74] sm:$0xf] %vm1882_vm0, %v2536_v46  ;;  %2733 = vmatprep.subr.bf16.mxu1 %v2732_v5  ;;  %v2770_v15 = vpack.c.bf16 %v2106_v56, %v2105_v24 }
 0x264   : > { %2735 = vmatpush3.bf16.msra.mxu1 %v2734_v38  ;;  %2258 = vst.msk [vmem:[%s274_s27] sm:$0x1] %vm2257_vm2, %v2890_v8  ;;  %2259 = vst.msk [vmem:[%s277_s30] sm:$0x1] %vm2257_vm2, %v2890_v8 }
 0x265   : > { %2737 = vmatprep.subr.bf16.mxu1 %v2736_v57 }
 0x268   : > { %2739 = vmatpush3.bf16.msra.mxu1 %v2738_v40 }
 0x269   : > { %2740 = vmatprep.subr.bf16.mxu1 %v2888_v35 }
 0x26b   : > { %2002 = vmatmul.mubr.f32.vlgmr.msra.gmra.mrb[0].mxu1 %v4112_v3  ;;  %v2260_v59 = vld [vmem:[%s274_s27] sm:$0x1] }
 0x26c   : > { %2694 = vmatprep.mubr.msk.f32.mxu1 %vm2889_vm1, %v2890_v8 }
 0x27d   : > { %v2684_v52 = vpop.f32.mrb[32].mxu0 }
 0x27e   : > { %v2541_v20 = vpack.c.bf16 %v2684_v52, %v2684_v52  ;;  %v1723_v25 = vpop.f32.mrb[33].mxu0  ;;  %v2111_v41 = vmul.f32 %v2684_v52, %v2684_v52 }
 0x27f   : > { %v2539_v9 = vpack.c.bf16 %v1723_v25, %v1723_v25  ;;  %v2685_v62 = vpop.f32.mrb[34].mxu0  ;;  %v2109_v2 = vmul.f32 %v1723_v25, %v1723_v25 }
 0x280   : > { %1917 = vst.msk [vmem:[%s3878_s22 + $0x88] sm:$0xf] %vm1882_vm0, %v2541_v20  ;;  %v2542_v43 = vpack.c.bf16 %v2685_v62, %v2685_v62  ;;  %v2744_v40 = vpack.c.bf16 %v2685_v62, %v2684_v52  ;;  %v2112_v38 = vmul.f32 %v2685_v62, %v2685_v62  ;;  %v1726_v17 = vpop.f32.mrb[35].mxu0 }
 0x281   : > { %1915 = vst.msk [vmem:[%s3878_s22 + $0x80] sm:$0xf] %vm1882_vm0, %v2539_v9  ;;  %v2540_v12 = vpack.c.bf16 %v1726_v17, %v1726_v17  ;;  %v2741_v57 = vpack.c.bf16 %v1726_v17, %v1723_v25  ;;  %v2110_v33 = vmul.f32 %v1726_v17, %v1726_v17 }
 0x282   : > { %1918 = vst.msk [vmem:[%s3878_s22 + $0x8c] sm:$0xf] %vm1882_vm0, %v2542_v43  ;;  %v2782_v63 = vpack.c.bf16 %v2112_v38, %v2111_v41 }
 0x283   : > { %1916 = vst.msk [vmem:[%s3878_s22 + $0x84] sm:$0xf] %vm1882_vm0, %v2540_v12  ;;  %v2779_v24 = vpack.c.bf16 %v2110_v33, %v2109_v2  ;;  %2742 = vmatpush3.bf16.msra.mxu1 %v2741_v57 }
 0x284   : > { %2743 = vmatprep.subr.bf16.mxu1 %v2888_v35 }
 0x287   : > { %2745 = vmatpush3.bf16.msra.mxu1 %v2744_v40 }
 0x288   : > { %2747 = vmatprep.subr.bf16.mxu1 %v2746_v61 }
 0x28a   : > { %2695 = vmatmul.mubr.msk.f32.vlgmr.msra.gmra.mrb[2].mxu1 %vm1463_vm14, %v4129_v50 }
 0x28b   : > { %2749 = vmatpush3.bf16.msra.mxu1 %v2748_v22  ;;  %2177 = vmatprep.mubr.f32.mxu1 %v4110_v23 }
 0x28c   : > { %2751 = vmatprep.subr.bf16.mxu1 %v2750_v0 }
 0x28f   : > { %2753 = vmatpush3.bf16.msra.mxu1 %v2752_v45 }
 0x290   : > { %2755 = vmatprep.subr.bf16.mxu1 %v2754_v14 }
 0x293   : > { %2757 = vmatpush3.bf16.msra.mxu1 %v2756_v19 }
 0x294   : > { %2759 = vmatprep.subr.bf16.mxu1 %v2758_v31 }
 0x297   : > { %2761 = vmatpush3.bf16.msra.mxu1 %v2760_v55 }
 0x298   : > { %2763 = vmatprep.subr.bf16.mxu1 %v2762_v47 }
 0x29b   : > { %2765 = vmatpush3.bf16.msra.mxu1 %v4298_v1 }
 0x29c   : > { %2767 = vmatprep.subr.bf16.mxu1 %v2766_v4 }
 0x29f   : > { %2769 = vmatpush3.bf16.msra.mxu1 %v4299_v28 }
 0x2a0   : > { %2771 = vmatprep.subr.bf16.mxu1 %v2770_v15 }
 0x2a3   : > { %2773 = vmatpush3.bf16.msra.mxu1 %v4300_v29 }
 0x2a4   : > { %2775 = vmatprep.subr.bf16.mxu1 %v2774_v7 }
 0x2a7   : > { %2777 = vmatpush3.bf16.msra.mxu1 %v4301_v11 }
 0x2a8   : > { %2778 = vmatprep.subr.bf16.mxu1 %v2888_v35 }
 0x2aa   : > { %2178 = vmatmul.mubr.f32.vlgmr.msra.gmra.mrb[4].mxu1 %v4112_v3 }
 0x2ab   : > { %2780 = vmatpush3.bf16.msra.mxu1 %v2779_v24  ;;  %2705 = vmatprep.mubr.msk.f32.mxu1 %vm2889_vm1, %v2890_v8 }
 0x2ac   : > { %2781 = vmatprep.subr.bf16.mxu1 %v2888_v35 }
 0x2af   : > { %2783 = vmatpush3.bf16.msra.mxu1 %v2782_v63 }
 0x2b2   : > { %2706 = vmatmul.mubr.msk.f32.vlgmr.msra.gmra.mrb[6].mxu1 %vm1463_vm14, %v4129_v50  ;;  %v2264_v50 = vld [vmem:[%s277_s30] sm:$0x1] }
 0x33e   : > { %v2596_v45 = vpop.f32.mrb[0].mxu1 }
 0x33f   : > { %v2597_v22 = vpop.f32.mrb[1].mxu1 }
 0x340   : > { %v2598_v26 = vadd.f32 %v2597_v22, %v2596_v45 }
 0x35d   : > { %v2073_v49 = vpop.f32.mrb[2].mxu1 }
 0x35e   : > { %v2074_v42 = vadd.f32 %v2598_v26, %v2073_v49  ;;  %v2696_v55 = vpop.f32.mrb[3].mxu1 }
 0x360   : > { %v2261_v19 = vadd.f32 %v2260_v59, %v2074_v42 }
 0x362   : > { %2263 = vst.msk [vmem:[%s274_s27] sm:$0x1] %vm2257_vm2, %v2261_v19 }
 0x37d   : > { %v2636_v6 = vpop.f32.mrb[4].mxu1 }
 0x37e   : > { %v2637_v30 = vpop.f32.mrb[5].mxu1 }
 0x37f   : > { %v2638_v54 = vadd.f32 %v2637_v30, %v2636_v6 }
 0x385   : > { %v2249_v51 = vpop.f32.mrb[6].mxu1 }
 0x386   : > { %v2250_v39 = vadd.f32 %v2638_v54, %v2249_v51  ;;  %v2707_v34 = vpop.f32.mrb[7].mxu1 }
 0x388   : > { %v2265_v53 = vadd.f32 %v2264_v50, %v2250_v39 }
 0x38a   : > { %2266 = vst.msk [vmem:[%s277_s30] sm:$0x1] %vm2257_vm2, %v2265_v53 }
 0x38b PF: > { %s16_s20 = sadd.s32 1, %s2878_s20   ;;  %s4302_s18 = smov %s2874_s19 }
 0x38c   : > { %p13_p5 = scmp.ge.s32.totalorder %s16_s20, 4   ;;  %s4303_s19 = smov %s4305_s21 }
 0x38e   :  { %15 = sbr.rel (!%p13_p5) target bundleno = 2 (0x2), region = 90 }

// kernel: unet_down_forward.10
= control target key start
LH: loop header
LB: loop body
LE: loop exit
PB: predicated region body
PF: predicated region fallthrough
CT: control target
= control target key end

     0   :  { %s2947_s18 = smov 0   ;;  %s2949_s19 = smov 0   ;;  %s4328_s0 = inlined_call_operand.vmem [shape: bf16[2,1,342,8], index: 0, kind: input, shape index: {}]   ;;  %s4329_s1 = inlined_call_operand.vmem [shape: bf16[72,8], index: 1, kind: input, shape index: {}]   ;;  %s4330_s2 = inlined_call_operand.vmem [shape: f32[1,288], index: 2, kind: input, shape index: {}]   ;;  %s4331_s3 = inlined_call_operand.vmem [shape: bf16[2,1,288,8], index: 3, kind: output, shape index: {0}]   ;;  %s4332_s4 = inlined_call_operand.vmem [shape: f32[2,1,8], index: 4, kind: output, shape index: {1}]   ;;  %s4333_s5 = inlined_call_operand.vmem [shape: f32[2,1,8], index: 5, kind: output, shape index: {2}]  }
   0x1   :  { %s2951_s20 = smov 0  }
   0x2 LB: > { %s28_s21 = sadd.s32 1, %s2900_s19  ;;  %p2429_p0 = scmp.ge.s32.totalorder %s2904_s20, 1  ;;  %s2904_s20 = sphi %s2951_s20, %s16_s20   ;;  %s2900_s19 = sphi %s2949_s19, %s4339_s19   ;;  %s2896_s18 = sphi %s2947_s18, %s4338_s18  }
   0x3   : > { %p30_p1 = scmp.ge.s32.totalorder %s28_s21, 2  ;;  %p212_p2 = scmp.lt.s32.totalorder %s2904_s20, 3 }
   0x5   : > { %s4341_s21 = smov (%p30_p1, %s28_s21), 0  ;;  %p213_p3 = pnand %p2429_p0, %p212_p2 }
   0x6   : > { %p254_p4 = scmp.lt.s32.totalorder (!%p213_p3), %s2896_s18, 1  ;;  %vm610_vm0 = vcmask (!%p213_p3), 1046528   ;;  %vm870_vm1 = vcmask (!%p213_p3), 1045504   ;;  %vm422_vm2 = vsmask.f32 (!%p213_p3), 7424  ;;  %s2906_s26 = smov (!%p213_p3), 24  }
   0x7   : > { %216 = sbr.rel (%p213_p3) target bundleno = 907 (0x38b), region = 32  ;;  %s2907_s27 = smov (!%p213_p3), 16   ;;  %vm740_vm3 = vsmask.f32 (!%p213_p3), 6400  ;;  %v2862_v59 = vld [vmem:[%s4329_s1] sm:$0xff] (!%p213_p3)   ;;  %v2863_v60 = vld [vmem:[%s4329_s1 + $0x8] sm:$0xff] (!%p213_p3)  }
   0x8   : > { %s2908_s28 = smov (!%p213_p3), 40   ;;  %s2909_s29 = smov (!%p213_p3), 8   ;;  %2664 = vmatprep.subr.bf16.mxu0 (!%p213_p3), %v2862_v59  ;;  %vm1000_vm4 = vsmask.f32 (!%p213_p3), 5376  ;;  %vm1130_vm5 = vcmask (!%p213_p3), 1044480   ;;  %vm1573_vm6 = vcmask (!%p213_p3), 1043456  }
   0x9   : > { %2665 = vmatpush3.bf16.msra.mxu0 (!%p213_p3), %v2862_v59  ;;  %s2910_s11 = smov (!%p213_p3), 32   ;;  %s2911_s14 = smov (!%p213_p3), 48   ;;  %vm1204_vm7 = vcmask (!%p213_p3), 64512   ;;  %vm1241_vm8 = vcmask (!%p213_p3), 130048   ;;  %vm1278_vm9 = vcmask (!%p213_p3), 195584   ;;  %vm1315_vm10 = vcmask (!%p213_p3), 261120  }
   0xa   : > { %2666 = vmatprep.subr.bf16.mxu0 (!%p213_p3), %v2863_v60  ;;  %s2912_s15 = smov (!%p213_p3), 56   ;;  %s2913_s16 = smov (!%p213_p3), 64   ;;  %vm1352_vm11 = vcmask (!%p213_p3), 326656   ;;  %vm1389_vm12 = vcmask (!%p213_p3), 392192   ;;  %vm1426_vm13 = vcmask (!%p213_p3), 457728   ;;  %vm1463_vm14 = vcmask (!%p213_p3), 523264  }
   0xb   : > { %vm1536_vm15 = vcmask (!%p213_p3), 588800  }
   0xd   : > { %2667 = vmatpush3.bf16.msra.mxu0 (!%p213_p3), %v2863_v60 }
   0xe   : > { %s4343_s18 = smov (!%p254_p4, %s2896_s18), 1 }
   0xf   : > { %s2809_s22 = smul.u32 172, %s4343_s18  ;;  %s274_s6 = scalar_lea.vmem %s4332_s4, %s4343_s18 }
  0x10   : > { %s2810_s23 = smul.u32 144, %s4343_s18  ;;  %s277_s9 = scalar_lea.vmem %s4333_s5, %s4343_s18 }
  0x11   : > { %s2971_s25 = scalar_lea.vmem %s4328_s0, %s2809_s22 }
  0x12   : > { %v282_v0 = vld [vmem:[%s2971_s25 + $0xc] sm:$0xf]  ;;  %v283_v1 = vld [vmem:[%s2971_s25 + $0x10] sm:$0xf]  ;;  %v2976_v2 = vld [vmem:[%s2971_s25 + $0x14] sm:$0xf] }
  0x13   : > { %v317_v3 = vld [vmem:[%s2971_s25 + $0x8] sm:$0xe]  ;;  %v2980_v4 = vcombine.low %v283_v1, %v2976_v2  ;;  %v280_v5 = vld [vmem:[%s2971_s25 + $0x4] sm:$0xf]  ;;  %v316_v8 = vld [vmem:[%s2971_s25] sm:$0xe] }
  0x14   : > { %v281_v6 = vld [vmem:[%s2971_s25 + $0x8] sm:$0xf]  ;;  %v2452_v7 = vcombine.low %v317_v3, %v282_v0  ;;  %v279_v10 = vld [vmem:[%s2971_s25] sm:$0xf]  ;;  %v2451_v13 = vcombine.low %v316_v8, %v280_v5  ;;  %v2993_v16 = vld [vmem:[%s2971_s25 + $0x18] sm:$0xff]  }
  0x15   : > { %v2985_v9 = vcombine.low %v281_v6, %v282_v0  ;;  %v322_v11 = vld [vmem:[%s2971_s25 + $0x8] sm:$0xc]  ;;  %v614_v12 = vrot.slane %v2980_v4, 1  ;;  %v2990_v14 = vcombine.low %v279_v10, %v280_v5  ;;  %v872_v19 = vrot.slane %v2980_v4, 2  ;;  %v323_v34 = vld [vmem:[%s2971_s25 + $0x10] sm:$0xc] }
  0x16   : > { %v2456_v15 = vcombine.low %v322_v11, %v282_v0  ;;  %v695_v17 = vrot.slane %v2452_v7, 1  ;;  %v611_v21 = vrot.slane %v2451_v13, 1  ;;  %v616_v28 = vrot.slane %v2993_v16, 1  ;;  %v3024_v45 = vld [vmem:[%s2971_s25 + $0x20] sm:$0xff]   ;;  %v328_v6 = vld [vmem:[%s2971_s25 + $0x10] sm:$0x8] }
  0x17   : > { %v612_v18 = vrot.slane %v2985_v9, 1  ;;  %v431_v20 = vshll.u32 %v2985_v9, 16  ;;  %v424_v24 = vshrl.u32 %v2990_v14, 16  ;;  %v426_v25 = vshll.u32 %v2990_v14, 16 }
  0x18   : > { %v871_v22 = vrot.slane %v2456_v15, 2  ;;  %v696_v23 = vsel %vm610_vm0, %v695_v17, %v614_v12  ;;  %v435_v31 = vshrl.u32 %v2985_v9, 16  ;;  %v439_v32 = vshll.u32 %v2980_v4, 16 }
  0x19   : > { %701 = vrot.lane.b32.xlu0 %v696_v23, %s2906_s26  ;;  %v613_v26 = vsel %vm610_vm0, %v611_v21, %v612_v18  ;;  %v433_v29 = vrot.slane %v431_v20, 1  ;;  %v428_v30 = vrot.slane %v426_v25, 1  ;;  %v443_v33 = vshrl.u32 %v2980_v4, 16 }
  0x1a   : > { %v873_v27 = vsel %vm870_vm1, %v871_v22, %v872_v19  ;;  %648 = vrot.lane.b32.xlu1 %v613_v26, %s2907_s27  ;;  %v615_v35 = vsel %vm610_vm0, %v612_v18, %v614_v12  ;;  %v3012_v36 = vshll.u32 %v2993_v16, 16  ;;  %v3015_v37 = vshrl.u32 %v2993_v16, 16  ;;  %v2866_v22 = vld [vmem:[%s4329_s1 + $0x18] sm:$0xff]  }
  0x1b   : > { %v742_v38 = vshrl.u32 %v2452_v7, 16  ;;  %v429_v39 = vor.u32 %v428_v30, %v424_v24  ;;  %v874_v40 = vrot.slane %v2993_v16, 2  ;;  %v437_v41 = vor.u32 %v435_v31, %v433_v29 }
  0x1c   : > { %v3019_v42 = vrot.slane %v439_v32, 1  ;;  %v749_v43 = vrot.slane %v443_v33, 1  ;;  %v750_v44 = vrot.slane %v439_v32, 2  ;;  %v745_v48 = vshll.u32 %v2452_v7, 16  ;;  %v2864_v7 = vld [vmem:[%s4329_s1 + $0x10] sm:$0xff]  }
  0x1d   : > { %908 = vrot.lane.b32.xlu0 %v873_v27, %s2908_s28  ;;  %v434_v46 = vsel %vm422_vm2, %v429_v39, %v433_v29  ;;  %v744_v47 = vrot.slane %v742_v38, 1  ;;  %v3031_v49 = vsel %vm610_vm0, %v614_v12, %v616_v28  ;;  %v753_v50 = vrot.slane %v3015_v37, 1  ;;  %2668 = vmatprep.subr.bf16.mxu0 %v2864_v7 }
  0x1e   : > { %650 = vrot.lane.b32.xlu1 %v615_v35, %s2907_s27  ;;  %v754_v51 = vrot.slane %v3012_v36, 2  ;;  %v2457_v52 = vcombine.low %v323_v34, %v2976_v2  ;;  %v747_v53 = vrot.slane %v745_v48, 2  ;;  %v442_v54 = vsel %vm422_vm2, %v437_v41, %v3019_v42  ;;  %2669 = vmatpush3.bf16.msra.mxu0 %v2864_v7 }
  0x1f   : > { %v751_v55 = vor.u32 %v750_v44, %v749_v43  ;;  %v875_v61 = vsel %vm870_vm1, %v872_v19, %v874_v40  ;;  %v3051_v63 = vshll.u32 %v3024_v45, 16  ;;  %v3054_v0 = vshrl.u32 %v3024_v45, 16  ;;  %2670 = vmatprep.subr.bf16.mxu0 %v2866_v22 }
  0x20   : > { %v748_v56 = vor.u32 %v747_v53, %v744_v47  ;;  %v1002_v57 = vshrl.u32 %v2457_v52, 16  ;;  %v1005_v58 = vshll.u32 %v2457_v52, 16  ;;  %v3048_v62 = vor.u32 %v754_v51, %v753_v50  ;;  %v3127_v53 = vld [vmem:[%s2971_s25 + $0x30] sm:$0xff]  }
  0x21   : > { %571 = vrot.lane.b32.xlu0 %v434_v46, %s2909_s29  ;;  %v955_v1 = vrot.slane %v2457_v52, 2  ;;  %v1009_v3 = vrot.slane %v3015_v37, 2  ;;  %v1010_v5 = vrot.slane %v3012_v36, 3  ;;  %v876_v13 = vrot.slane %v3024_v45, 2 }
  0x22   : > { %703 = vrot.lane.b32.xlu1 %v3031_v49, %s2906_s26  ;;  %v752_v8 = vsel %vm740_vm3, %v748_v56, %v751_v55  ;;  %v1004_v10 = vrot.slane %v1002_v57, 2  ;;  %v1007_v11 = vrot.slane %v1005_v58, 3  ;;  %v756_v12 = vsel %vm740_vm3, %v751_v55, %v3048_v62  ;;  %2671 = vmatpush3.bf16.msra.mxu0 %v2866_v22  ;;  %v2867_v57 = vld [vmem:[%s4329_s1 + $0x20] ss:$0 sps:$4 sm:$0xff]  }
  0x23   : > { %v1013_v15 = vrot.slane %v3054_v0, 2  ;;  %v1014_v17 = vrot.slane %v3051_v63, 3  ;;  %v956_v18 = vsel %vm870_vm1, %v955_v1, %v874_v40  ;;  %v1011_v19 = vor.u32 %v1010_v5, %v1009_v3  ;;  %2808 = vmatprep.subr.msk.bf16.mxu0 %vm1573_vm6, %v2867_v57 }
  0x24   : > { %v1008_v20 = vor.u32 %v1007_v11, %v1004_v10  ;;  %v2461_v21 = vcombine.low %v328_v6, %v2976_v2  ;;  %v3080_v23 = vsel %vm870_vm1, %v874_v40, %v876_v13  ;;  %v1132_v26 = vrot.slane %v2993_v16, 3 }
  0x25   : > { %573 = vrot.lane.b32.xlu0 %v442_v54, %s2909_s29  ;;  %v3082_v24 = vor.u32 %v1014_v17, %v1013_v15  ;;  %v445_v29 = vor.u32 %v443_v33, %v3019_v42  ;;  %v449_v30 = vrot.slane %v3012_v36, 1  ;;  %v1134_v32 = vrot.slane %v3024_v45, 3  ;;  %v3103_v33 = vld [vmem:[%s2971_s25 + $0x28] sm:$0xff]  }
  0x26   : > { %910 = vrot.lane.b32.xlu1 %v875_v61, %s2908_s28  ;;  %v1012_v2 = vsel %vm1000_vm4, %v1008_v20, %v1011_v19  ;;  %v1131_v25 = vrot.slane %v2461_v21, 3  ;;  %v457_v38 = vrot.slane %v3051_v63, 1  ;;  %v618_v40 = vrot.slane %v3024_v45, 1  ;;  %v3171_v20 = vld [vmem:[%s2971_s25 + $0x38] sm:$0xff]  }
  0x27   : > { %v1016_v27 = vsel %vm1000_vm4, %v1011_v19, %v3082_v24  ;;  %v450_v34 = vsel %vm422_vm2, %v445_v29, %v449_v30  ;;  %v453_v35 = vor.u32 %v3015_v37, %v449_v30  ;;  %v1135_v36 = vsel %vm1130_vm5, %v1132_v26, %v1134_v32 }
  0x28   : > { %v1133_v31 = vsel %vm1130_vm5, %v1131_v25, %v1132_v26  ;;  %v463_v41 = vshll.u32 %v3103_v33, 16  ;;  %v467_v37 = vshrl.u32 %v3103_v33, 16  ;;  %v757_v42 = vrot.slane %v3054_v0, 1 }
  0x29   : > { %831 = vrot.lane.b32.xlu0 %v752_v8, %s2910_s11  ;;  %v458_v39 = vsel %vm422_vm2, %v453_v35, %v457_v38  ;;  %v758_v43 = vrot.slane %v3051_v63, 2  ;;  %v619_v44 = vsel %vm610_vm0, %v616_v28, %v618_v40  ;;  %v620_v46 = vrot.slane %v3103_v33, 1  ;;  %v3190_v35 = vld [vmem:[%s2971_s25 + $0x40] sm:$0xff]  }
  0x2a   : > { %833 = vrot.lane.b32.xlu1 %v756_v12, %s2910_s11  ;;  %v761_v47 = vrot.slane %v467_v37, 1  ;;  %v762_v48 = vrot.slane %v463_v41, 2  ;;  %v3137_v55 = vshll.u32 %v3127_v53, 16  ;;  %v3140_v56 = vshrl.u32 %v3127_v53, 16 }
  0x2b   : > { %v759_v50 = vor.u32 %v758_v43, %v757_v42  ;;  %v621_v51 = vsel %vm610_vm0, %v618_v40, %v620_v46  ;;  %v1017_v58 = vrot.slane %v467_v37, 2  ;;  %v1018_v59 = vrot.slane %v463_v41, 3 }
  0x2c   : > { %v3124_v52 = vor.u32 %v762_v48, %v761_v47  ;;  %v880_v61 = vrot.slane %v3127_v53, 2  ;;  %v1022_v63 = vrot.slane %v3137_v55, 3  ;;  %v1575_v3 = vsel %vm1573_vm6, %v2867_v57, 0 }
  0x2d   : > { %961 = vrot.lane.b32.xlu0 %v956_v18, %s2911_s14  ;;  %v760_v28 = vsel %vm740_vm3, %v3048_v62, %v759_v50  ;;  %v1021_v62 = vrot.slane %v3140_v56, 2  ;;  %v1019_v1 = vor.u32 %v1018_v59, %v1017_v58  ;;  %2673 = vmatpush3.bf16.msra.mxu0 %v1575_v3  ;;  %v1136_v8 = vrot.slane %v3103_v33, 3 }
  0x2e   : > { %963 = vrot.lane.b32.xlu1 %v3080_v23, %s2911_s14  ;;  %v764_v54 = vsel %vm740_vm3, %v759_v50, %v3124_v52  ;;  %v461_v11 = vor.u32 %v3054_v0, %v457_v38  ;;  %v465_v12 = vrot.slane %v463_v41, 1  ;;  %v1138_v15 = vrot.slane %v3127_v53, 3 }
  0x2f   : > { %v1023_v6 = vor.u32 %v1022_v63, %v1021_v62  ;;  %v1020_v7 = vsel %vm1000_vm4, %v3082_v24, %v1019_v1  ;;  %v473_v19 = vrot.slane %v3137_v55, 1  ;;  %v622_v22 = vrot.slane %v3127_v53, 1  ;;  %v3226_v62 = vld [vmem:[%s2971_s25 + $0x48] sm:$0xff]  }
  0x30   : > { %v466_v17 = vsel %vm422_vm2, %v461_v11, %v465_v12  ;;  %v469_v18 = vor.u32 %v467_v37, %v465_v12  ;;  %v1139_v0 = vsel %vm1130_vm5, %v1136_v8, %v1138_v15  ;;  %v483_v24 = vshrl.u32 %v3171_v20, 16 }
  0x31   : > { %1091 = vrot.lane.b32.xlu0 %v1012_v2, %s2912_s15  ;;  %v1024_v10 = vsel %vm1000_vm4, %v1019_v1, %v1023_v6  ;;  %v765_v2 = vrot.slane %v3140_v56, 1  ;;  %v766_v25 = vrot.slane %v3137_v55, 2  ;;  %v623_v26 = vsel %vm610_vm0, %v620_v46, %v622_v22 }
  0x32   : > { %1093 = vrot.lane.b32.xlu1 %v1016_v27, %s2912_s15  ;;  %v474_v21 = vsel %vm422_vm2, %v469_v18, %v473_v19  ;;  %v624_v27 = vrot.slane %v3171_v20, 1  ;;  %v769_v29 = vrot.slane %v483_v24, 1  ;;  %v3199_v40 = vshll.u32 %v3190_v35, 16  ;;  %v3251_v18 = vld [vmem:[%s2971_s25 + $0x50] sm:$0xff]  }
  0x33   : > { %v3202_v41 = vshrl.u32 %v3190_v35, 16  ;;  %v1025_v37 = vrot.slane %v483_v24, 2  ;;  %v1142_v58 = vrot.slane %v3190_v35, 3  ;;  %v626_v1 = vrot.slane %v3190_v35, 1 }
  0x34   : > { %v1030_v47 = vrot.slane %v3199_v40, 3  ;;  %v495_v3 = vshll.u32 %v3226_v62, 16 }
  0x35   : > { %1168 = vrot.lane.b32.xlu0 %v1133_v31, %s2913_s16  ;;  %v767_v31 = vor.u32 %v766_v25, %v765_v2  ;;  %v1029_v46 = vrot.slane %v3202_v41, 2 }
  0x36   : > { %575 = vrot.lane.b32.xlu1 %v450_v34, %s2909_s29  ;;  %v778_v12 = vrot.slane %v495_v3, 2  ;;  %v1034_v2 = vrot.slane %v495_v3, 3 }
  0x37   : > { %v768_v38 = vsel %vm740_vm3, %v3124_v52, %v767_v31 }
  0x39   : > { %1170 = vrot.lane.b32.xlu0 %v1135_v36, %s2913_s16 }
  0x3a   : > { %577 = vrot.lane.b32.xlu1 %v458_v39, %s2909_s29  ;;  %v882_v39 = vrot.slane %v3171_v20, 2 }
  0x3c   : > { %v883_v43 = vsel %vm870_vm1, %v880_v61, %v882_v39 }
  0x3d   : > { %652 = vrot.lane.b32.xlu0 %v3031_v49, %s2907_s27  ;;  %v878_v49 = vrot.slane %v3103_v33, 2 }
  0x3e   : > { %654 = vrot.lane.b32.xlu1 %v619_v44, %s2907_s27 }
  0x3f   : > { %v879_v60 = vsel %vm870_vm1, %v876_v13, %v878_v49  ;;  %v881_v5 = vsel %vm870_vm1, %v878_v49, %v880_v61  ;;  %v1137_v13 = vsel %vm1130_vm5, %v1134_v32, %v1136_v8  ;;  %v625_v32 = vsel %vm610_vm0, %v622_v22, %v624_v27 }
  0x40   : > { %v477_v49 = vor.u32 %v3140_v56, %v473_v19  ;;  %v489_v61 = vrot.slane %v3199_v40, 1  ;;  %v627_v8 = vsel %vm610_vm0, %v624_v27, %v626_v1  ;;  %v3261_v22 = vshll.u32 %v3251_v18, 16 }
  0x41   : > { %705 = vrot.lane.b32.xlu0 %v619_v44, %s2906_s26  ;;  %v884_v44 = vrot.slane %v3190_v35, 2 }
  0x42   : > { %707 = vrot.lane.b32.xlu1 %v621_v51, %s2906_s26 }
  0x43   : > { %v885_v50 = vsel %vm870_vm1, %v882_v39, %v884_v44  ;;  %v1144_v39 = vrot.slane %v3226_v62, 3 }
  0x45   : > { %835 = vrot.lane.b32.xlu0 %v760_v28, %s2910_s11  ;;  %v1140_v28 = vrot.slane %v3171_v20, 3 }
  0x46   : > { %837 = vrot.lane.b32.xlu1 %v764_v54, %s2910_s11 }
  0x47   : > { %v1141_v57 = vsel %vm1130_vm5, %v1138_v15, %v1140_v28  ;;  %v1143_v56 = vsel %vm1130_vm5, %v1140_v28, %v1142_v58  ;;  %v3298_v28 = vld [vmem:[%s2971_s25 + $0x58] sm:$0xff]  }
  0x49   : > { %912 = vrot.lane.b32.xlu0 %v3080_v23, %s2908_s28  ;;  %v479_v23 = vshll.u32 %v3171_v20, 16 }
  0x4a   : > { %914 = vrot.lane.b32.xlu1 %v879_v60, %s2908_s28 }
  0x4b   : > { %v770_v30 = vrot.slane %v479_v23, 2  ;;  %v1026_v42 = vrot.slane %v479_v23, 3  ;;  %v481_v55 = vrot.slane %v479_v23, 1  ;;  %v3264_v23 = vshrl.u32 %v3251_v18, 16 }
  0x4d   : > { %965 = vrot.lane.b32.xlu0 %v879_v60, %s2911_s14  ;;  %v771_v34 = vor.u32 %v770_v30, %v769_v29  ;;  %v1027_v48 = vor.u32 %v1026_v42, %v1025_v37  ;;  %v482_v59 = vsel %vm422_vm2, %v477_v49, %v481_v55  ;;  %v485_v60 = vor.u32 %v483_v24, %v481_v55 }
  0x4e   : > { %967 = vrot.lane.b32.xlu1 %v881_v5, %s2911_s14  ;;  %v1037_v27 = vrot.slane %v3264_v23, 2  ;;  %v1038_v29 = vrot.slane %v3261_v22, 3  ;;  %v493_v42 = vor.u32 %v3202_v41, %v489_v61 }
  0x4f   : > { %v772_v36 = vsel %vm740_vm3, %v767_v31, %v771_v34  ;;  %v1028_v52 = vsel %vm1000_vm4, %v1023_v6, %v1027_v48  ;;  %v490_v63 = vsel %vm422_vm2, %v485_v60, %v489_v61  ;;  %v773_v6 = vrot.slane %v3202_v41, 1 }
  0x50   : > { %v632_v61 = vrot.slane %v3298_v28, 1 }
  0x51   : > { %1095 = vrot.lane.b32.xlu0 %v1020_v7, %s2912_s15  ;;  %v774_v7 = vrot.slane %v3199_v40, 2 }
  0x52   : > { %1097 = vrot.lane.b32.xlu1 %v1024_v10, %s2912_s15  ;;  %v628_v10 = vrot.slane %v3226_v62, 1 }
  0x54   : > { %v3246_v15 = vsel %vm610_vm0, %v626_v1, %v628_v10 }
  0x55   : > { %1172 = vrot.lane.b32.xlu0 %v1137_v13, %s2913_s16  ;;  %v775_v13 = vor.u32 %v774_v7, %v773_v6 }
  0x56   : > { %579 = vrot.lane.b32.xlu1 %v466_v17, %s2909_s29 }
  0x57   : > { %v776_v19 = vsel %vm740_vm3, %v771_v34, %v775_v13  ;;  %v3279_v34 = vor.u32 %v1038_v29, %v1037_v27 }
  0x59   : > { %1174 = vrot.lane.b32.xlu0 %v1139_v0, %s2913_s16 }
  0x5a   : > { %581 = vrot.lane.b32.xlu1 %v474_v21, %s2909_s29  ;;  %v886_v21 = vrot.slane %v3226_v62, 2 }
  0x5c   : > { %v887_v25 = vsel %vm870_vm1, %v884_v44, %v886_v21 }
  0x5d   : > { %656 = vrot.lane.b32.xlu0 %v621_v51, %s2907_s27  ;;  %v1031_v51 = vor.u32 %v1030_v47, %v1029_v46  ;;  %v1145_v46 = vsel %vm1130_vm5, %v1142_v58, %v1144_v39  ;;  %v1146_v47 = vrot.slane %v3251_v18, 3  ;;  %v3310_v58 = vshll.u32 %v3298_v28, 16 }
  0x5e   : > { %658 = vrot.lane.b32.xlu1 %v623_v26, %s2907_s27 }
  0x5f   : > { %v1032_v54 = vsel %vm1000_vm4, %v1027_v48, %v1031_v51  ;;  %v1147_v41 = vsel %vm1130_vm5, %v1144_v39, %v1146_v47  ;;  %v786_v7 = vrot.slane %v3310_v58, 2 }
  0x61   : > { %709 = vrot.lane.b32.xlu0 %v623_v26, %s2906_s26  ;;  %v888_v26 = vrot.slane %v3251_v18, 2 }
  0x62   : > { %711 = vrot.lane.b32.xlu1 %v625_v32, %s2906_s26 }
  0x65   : > { %839 = vrot.lane.b32.xlu0 %v768_v38, %s2910_s11 }
  0x66   : > { %841 = vrot.lane.b32.xlu1 %v772_v36, %s2910_s11 }
  0x69   : > { %916 = vrot.lane.b32.xlu0 %v881_v5, %s2908_s28  ;;  %v499_v5 = vshrl.u32 %v3226_v62, 16 }
  0x6a   : > { %918 = vrot.lane.b32.xlu1 %v883_v43, %s2908_s28 }
  0x6b   : > { %v777_v11 = vrot.slane %v499_v5, 1  ;;  %v1033_v24 = vrot.slane %v499_v5, 2 }
  0x6d   : > { %969 = vrot.lane.b32.xlu0 %v883_v43, %s2911_s14  ;;  %v3248_v17 = vor.u32 %v778_v12, %v777_v11  ;;  %v1035_v30 = vor.u32 %v1034_v2, %v1033_v24  ;;  %v497_v43 = vrot.slane %v495_v3, 1  ;;  %v890_v24 = vrot.slane %v3298_v28, 2 }
  0x6e   : > { %971 = vrot.lane.b32.xlu1 %v885_v50, %s2911_s14 }
  0x6f   : > { %v780_v0 = vsel %vm740_vm3, %v775_v13, %v3248_v17  ;;  %v1036_v36 = vsel %vm1000_vm4, %v1031_v51, %v1035_v30  ;;  %v1040_v37 = vsel %vm1000_vm4, %v1035_v30, %v3279_v34  ;;  %v501_v51 = vor.u32 %v499_v5, %v497_v43 }
  0x71   : > { %1099 = vrot.lane.b32.xlu0 %v1028_v52, %s2912_s15  ;;  %v505_v52 = vrot.slane %v3261_v22, 1 }
  0x72   : > { %1101 = vrot.lane.b32.xlu1 %v1032_v54, %s2912_s15 }
  0x73   : > { %v506_v55 = vsel %vm422_vm2, %v501_v51, %v505_v52 }
  0x75   : > { %1176 = vrot.lane.b32.xlu0 %v1141_v57, %s2913_s16  ;;  %v630_v57 = vrot.slane %v3251_v18, 1 }
  0x76   : > { %583 = vrot.lane.b32.xlu1 %v482_v59, %s2909_s29  ;;  %v3313_v59 = vshrl.u32 %v3298_v28, 16 }
  0x77   : > { %v631_v5 = vsel %vm610_vm0, %v628_v10, %v630_v57  ;;  %v3336_v10 = vsel %vm610_vm0, %v630_v57, %v632_v61 }
  0x78   : > { %v785_v6 = vrot.slane %v3313_v59, 1 }
  0x79   : > { %1178 = vrot.lane.b32.xlu0 %v1143_v56, %s2913_s16  ;;  %v781_v56 = vrot.slane %v3264_v23, 1 }
  0x7a   : > { %585 = vrot.lane.b32.xlu1 %v490_v63, %s2909_s29  ;;  %v782_v63 = vrot.slane %v3261_v22, 2 }
  0x7d   : > { %660 = vrot.lane.b32.xlu0 %v625_v32, %s2907_s27  ;;  %v3277_v32 = vsel %vm870_vm1, %v886_v21, %v888_v26 }
  0x7e   : > { %662 = vrot.lane.b32.xlu1 %v627_v8, %s2907_s27 }
  0x81   : > { %713 = vrot.lane.b32.xlu0 %v627_v8, %s2906_s26 }
  0x82   : > { %715 = vrot.lane.b32.xlu1 %v3246_v15, %s2906_s26 }
  0x85   : > { %843 = vrot.lane.b32.xlu0 %v776_v19, %s2910_s11  ;;  %v3338_v19 = vor.u32 %v786_v7, %v785_v6 }
  0x86   : > { %845 = vrot.lane.b32.xlu1 %v780_v0, %s2910_s11  ;;  %v3341_v0 = vld [vmem:[%s2971_s25 + $0x60] sm:$0xff]  }
  0x89   : > { %920 = vrot.lane.b32.xlu0 %v885_v50, %s2908_s28  ;;  %v498_v50 = vsel %vm422_vm2, %v493_v42, %v497_v43  ;;  %v1041_v43 = vrot.slane %v3313_v59, 2 }
  0x8a   : > { %922 = vrot.lane.b32.xlu1 %v887_v25, %s2908_s28 }
  0x8b   : > { %v702_v31 = vpop.permute.xlu0 %701 }
  0x8c   : > { %v649_v38 = vpop.permute.xlu1 %648 }
  0x8d   : > { %973 = vrot.lane.b32.xlu0 %v887_v25, %s2911_s14 }
  0x8e   : > { %975 = vrot.lane.b32.xlu1 %v3277_v32, %s2911_s14 }
  0x8f   : > { %v3286_v40 = vpop.permute.xlu0 %908 }
  0x90   : > { %v651_v44 = vpop.permute.xlu1 %650 }
  0x91   : > { %1103 = vrot.lane.b32.xlu0 %v1036_v36, %s2912_s15 }
  0x92   : > { %1105 = vrot.lane.b32.xlu1 %v1040_v37, %s2912_s15 }
  0x93   : > { %v572_v48 = vpop.permute.xlu0 %571 }
  0x94   : > { %v704_v54 = vpop.permute.xlu1 %703  ;;  %v1206_v1 = vsel %vm1204_vm7, %v2990_v14, %v572_v48  ;;  %v783_v14 = vor.u32 %v782_v63, %v781_v56  ;;  %v892_v48 = vrot.slane %v3341_v0, 2 }
  0x95   : > { %1180 = vrot.lane.b32.xlu0 %v1145_v46, %s2913_s16  ;;  %v1243_v12 = vsel %vm1241_vm8, %v1206_v1, %v649_v38  ;;  %v3359_v38 = vshrl.u32 %v3341_v0, 16 }
  0x96   : > { %587 = vrot.lane.b32.xlu1 %v498_v50, %s2909_s29  ;;  %v1280_v21 = vsel %vm1278_vm9, %v1243_v12, %v702_v31  ;;  %v784_v25 = vsel %vm740_vm3, %v3248_v17, %v783_v14  ;;  %v788_v30 = vsel %vm740_vm3, %v783_v14, %v3338_v19  ;;  %v3356_v31 = vshll.u32 %v3341_v0, 16 }
  0x97   : > { %v574_v49 = vpop.permute.xlu0 %573  ;;  %v891_v17 = vsel %vm870_vm1, %v888_v26, %v890_v24  ;;  %v1045_v50 = vrot.slane %v3359_v38, 2  ;;  %v3387_v63 = vsel %vm870_vm1, %v890_v24, %v892_v48  ;;  %v1150_v14 = vrot.slane %v3341_v0, 3 }
  0x98   : > { %v911_v60 = vpop.permute.xlu1 %910  ;;  %v1208_v11 = vsel %vm1204_vm7, %v2985_v9, %v574_v49  ;;  %v1046_v26 = vrot.slane %v3356_v31, 3 }
  0x99   : > { %1182 = vrot.lane.b32.xlu0 %v1147_v41, %s2913_s16  ;;  %v1245_v9 = vsel %vm1241_vm8, %v1208_v11, %v651_v44  ;;  %v1042_v44 = vrot.slane %v3310_v58, 3  ;;  %v513_v11 = vrot.slane %v3310_v58, 1 }
  0x9a   : > { %589 = vrot.lane.b32.xlu1 %v506_v55, %s2909_s29  ;;  %v1282_v27 = vsel %vm1278_vm9, %v1245_v9, %v704_v54  ;;  %v3389_v1 = vor.u32 %v1046_v26, %v1045_v50 }
  0x9b   : > { %v832_v3 = vpop.permute.xlu0 %831  ;;  %v1043_v55 = vor.u32 %v1042_v44, %v1041_v43  ;;  %v517_v22 = vor.u32 %v3313_v59, %v513_v11  ;;  %v634_v59 = vrot.slane %v3341_v0, 1 }
  0x9c   : > { %v834_v8 = vpop.permute.xlu1 %833  ;;  %v1317_v2 = vsel %vm1315_vm10, %v1280_v21, %v832_v3 }
  0x9d   : > { %664 = vrot.lane.b32.xlu0 %v3246_v15, %s2907_s27  ;;  %v1354_v39 = vsel %vm1352_vm11, %v1317_v2, %v3286_v40  ;;  %v1319_v37 = vsel %vm1315_vm10, %v1282_v27, %v834_v8  ;;  %v1044_v3 = vsel %vm1000_vm4, %v3279_v34, %v1043_v55  ;;  %v1048_v7 = vsel %vm1000_vm4, %v1043_v55, %v3389_v1 }
  0x9e   : > { %666 = vrot.lane.b32.xlu1 %v631_v5, %s2907_s27  ;;  %v1356_v41 = vsel %vm1352_vm11, %v1319_v37, %v911_v60  ;;  %v509_v8 = vor.u32 %v3264_v23, %v505_v52  ;;  %v521_v23 = vrot.slane %v3356_v31, 1  ;;  %v3417_v52 = vld [vmem:[%s2971_s25 + $0x68] sm:$0xff]   ;;  %v790_v27 = vrot.slane %v3356_v31, 2 }
  0x9f   : > { %v962_v13 = vpop.permute.xlu0 %961  ;;  %v3429_v21 = vshll.u32 %v3417_v52, 16  ;;  %v3432_v24 = vshrl.u32 %v3417_v52, 16 }
  0xa0   : > { %v964_v15 = vpop.permute.xlu1 %963  ;;  %v1391_v42 = vsel %vm1389_vm12, %v1354_v39, %v962_v13  ;;  %v514_v9 = vsel %vm422_vm2, %v509_v8, %v513_v11 }
  0xa1   : > { %717 = vrot.lane.b32.xlu0 %v631_v5, %s2906_s26  ;;  %v1393_v49 = vsel %vm1389_vm12, %v1356_v41, %v964_v15  ;;  %v1148_v5 = vrot.slane %v3298_v28, 3  ;;  %v522_v15 = vsel %vm422_vm2, %v517_v22, %v521_v23  ;;  %v793_v39 = vrot.slane %v3432_v24, 1 }
  0xa2   : > { %719 = vrot.lane.b32.xlu1 %v3336_v10, %s2906_s26 }
  0xa3   : > { %v1092_v29 = vpop.permute.xlu0 %1091  ;;  %v1149_v34 = vsel %vm1130_vm5, %v1146_v47, %v1148_v5  ;;  %v1151_v18 = vsel %vm1130_vm5, %v1148_v5, %v1150_v14  ;;  %v1049_v5 = vrot.slane %v3432_v24, 2 }
  0xa4   : > { %v1094_v36 = vpop.permute.xlu1 %1093  ;;  %v1428_v40 = vsel %vm1426_vm13, %v1391_v42, %v1092_v29 }
  0xa5   : > { %847 = vrot.lane.b32.xlu0 %v784_v25, %s2910_s11  ;;  %v1430_v57 = vsel %vm1426_vm13, %v1393_v49, %v1094_v36  ;;  %v789_v25 = vrot.slane %v3359_v38, 1  ;;  %v636_v36 = vrot.slane %v3417_v52, 1 }
  0xa6   : > { %849 = vrot.lane.b32.xlu1 %v788_v30, %s2910_s11  ;;  %v635_v30 = vsel %vm610_vm0, %v632_v61, %v634_v59 }
  0xa7   : > { %v1169_v46 = vpop.permute.xlu0 %1168  ;;  %v791_v42 = vor.u32 %v790_v27, %v789_v25  ;;  %v3450_v44 = vsel %vm610_vm0, %v634_v59, %v636_v36 }
  0xa8   : > { %v576_v51 = vpop.permute.xlu1 %575  ;;  %v1465_v54 = vsel %vm1463_vm14, %v1428_v40, %v1169_v46  ;;  %v3455_v40 = vld [vmem:[%s2971_s25 + $0x70] sm:$0xff]  }
  0xa9   : > { %924 = vrot.lane.b32.xlu0 %v3277_v32, %s2908_s28  ;;  %2674 = vmatprep.mubr.msk.bf16.mxu0 %vm1536_vm15, %v1465_v54  ;;  %v1210_v50 = vsel %vm1204_vm7, %v2980_v4, %v576_v51  ;;  %v792_v26 = vsel %vm740_vm3, %v3338_v19, %v791_v42  ;;  %v894_v54 = vrot.slane %v3417_v52, 2  ;;  %v3470_v4 = vshll.u32 %v3455_v40, 16 }
  0xaa   : > { %926 = vrot.lane.b32.xlu1 %v891_v17, %s2908_s28  ;;  %v3473_v51 = vshrl.u32 %v3455_v40, 16 }
  0xab   : > { %v1171_v56 = vpop.permute.xlu0 %1170  ;;  %v895_v8 = vsel %vm870_vm1, %v892_v48, %v894_v54 }
  0xac   : > { %v3391_v60 = vpop.permute.xlu1 %577  ;;  %v1467_v32 = vsel %vm1463_vm14, %v1430_v57, %v1171_v56 }
  0xad   : > { %977 = vrot.lane.b32.xlu0 %v891_v17, %s2911_s14  ;;  %2675 = vmatmul.mubr.msk.bf16.vlgmr.msra.gmra.mrb[0].mxu0 %vm1536_vm15, %v1467_v32  ;;  %v794_v17 = vrot.slane %v3429_v21, 2  ;;  %v1212_v19 = vsel %vm1204_vm7, %v2993_v16, %v3391_v60  ;;  %v1050_v16 = vrot.slane %v3429_v21, 3 }
  0xae   : > { %979 = vrot.lane.b32.xlu1 %v3387_v63, %s2911_s14 }
  0xaf   : > { %v653_v6 = vpop.permute.xlu0 %652  ;;  %v3452_v61 = vor.u32 %v794_v17, %v793_v39 }
  0xb0   : > { %v655_v12 = vpop.permute.xlu1 %654 }
  0xb1   : > { %1107 = vrot.lane.b32.xlu0 %v1044_v3, %s2912_s15  ;;  %v796_v55 = vsel %vm740_vm3, %v791_v42, %v3452_v61  ;;  %v896_v3 = vrot.slane %v3455_v40, 2  ;;  %v529_v42 = vrot.slane %v3429_v21, 1 }
  0xb2   : > { %1109 = vrot.lane.b32.xlu1 %v1048_v7, %s2912_s15 }
  0xb3   : > { %v706_v13 = vpop.permute.xlu0 %705  ;;  %v533_v31 = vor.u32 %v3432_v24, %v529_v42  ;;  %v638_v24 = vrot.slane %v3455_v40, 1 }
  0xb4   : > { %v708_v58 = vpop.permute.xlu1 %707 }
  0xb5   : > { %1184 = vrot.lane.b32.xlu0 %v1149_v34, %s2913_s16 }
  0xb6   : > { %591 = vrot.lane.b32.xlu1 %v514_v9, %s2909_s29  ;;  %v1054_v9 = vrot.slane %v3470_v4, 3 }
  0xb7   : > { %v836_v47 = vpop.permute.xlu0 %835 }
  0xb8   : > { %v838_v2 = vpop.permute.xlu1 %837 }
  0xb9   : > { %1186 = vrot.lane.b32.xlu0 %v1151_v18, %s2913_s16 }
  0xba   : > { %593 = vrot.lane.b32.xlu1 %v522_v15, %s2909_s29 }
  0xbb   : > { %v913_v29 = vpop.permute.xlu0 %912 }
  0xbc   : > { %v915_v37 = vpop.permute.xlu1 %914 }
  0xbd   : > { %668 = vrot.lane.b32.xlu0 %v3336_v10, %s2907_s27  ;;  %v1247_v10 = vsel %vm1241_vm8, %v1210_v50, %v653_v6  ;;  %v1249_v6 = vsel %vm1241_vm8, %v1212_v19, %v655_v12 }
  0xbe   : > { %670 = vrot.lane.b32.xlu1 %v635_v30, %s2907_s27  ;;  %v1284_v41 = vsel %vm1278_vm9, %v1247_v10, %v706_v13  ;;  %v1286_v60 = vsel %vm1278_vm9, %v1249_v6, %v708_v58  ;;  %v1053_v13 = vrot.slane %v3473_v51, 2  ;;  %v1051_v58 = vor.u32 %v1050_v16, %v1049_v5 }
  0xbf   : > { %v966_v43 = vpop.permute.xlu0 %965  ;;  %v1321_v57 = vsel %vm1315_vm10, %v1284_v41, %v836_v47  ;;  %v1323_v12 = vsel %vm1315_vm10, %v1286_v60, %v838_v2  ;;  %v3506_v2 = vsel %vm870_vm1, %v894_v54, %v896_v3 }
  0xc0   : > { %v968_v46 = vpop.permute.xlu1 %967  ;;  %v1358_v32 = vsel %vm1352_vm11, %v1321_v57, %v913_v29  ;;  %v1360_v47 = vsel %vm1352_vm11, %v1323_v12, %v915_v37  ;;  %v3508_v25 = vor.u32 %v1054_v9, %v1053_v13  ;;  %v1052_v29 = vsel %vm1000_vm4, %v3389_v1, %v1051_v58 }
  0xc1   : > { %721 = vrot.lane.b32.xlu0 %v635_v30, %s2906_s26  ;;  %v1395_v7 = vsel %vm1389_vm12, %v1358_v32, %v966_v43  ;;  %v1397_v48 = vsel %vm1389_vm12, %v1360_v47, %v968_v46  ;;  %v1152_v30 = vrot.slane %v3417_v52, 3  ;;  %v525_v37 = vor.u32 %v3359_v38, %v521_v23  ;;  %v3536_v23 = vld [vmem:[%s2971_s25 + $0x78] sm:$0xff]  }
  0xc2   : > { %723 = vrot.lane.b32.xlu1 %v3450_v44, %s2906_s26  ;;  %v1056_v17 = vsel %vm1000_vm4, %v1051_v58, %v3508_v25  ;;  %v1154_v46 = vrot.slane %v3455_v40, 3  ;;  %v537_v38 = vrot.slane %v3470_v4, 1  ;;  %v3548_v41 = vshll.u32 %v3536_v23, 16 }
  0xc3   : > { %v1096_v49 = vpop.permute.xlu0 %1095  ;;  %v1153_v1 = vsel %vm1130_vm5, %v1150_v14, %v1152_v30  ;;  %v530_v10 = vsel %vm422_vm2, %v525_v37, %v529_v42  ;;  %v797_v57 = vrot.slane %v3473_v51, 1  ;;  %v639_v32 = vsel %vm610_vm0, %v636_v36, %v638_v24 }
  0xc4   : > { %v1098_v56 = vpop.permute.xlu1 %1097  ;;  %v1432_v11 = vsel %vm1426_vm13, %v1395_v7, %v1096_v49  ;;  %v1155_v14 = vsel %vm1130_vm5, %v1152_v30, %v1154_v46  ;;  %v538_v54 = vsel %vm422_vm2, %v533_v31, %v537_v38  ;;  %v3551_v49 = vshrl.u32 %v3536_v23, 16 }
  0xc5   : > { %851 = vrot.lane.b32.xlu0 %v792_v26, %s2910_s11  ;;  %v1434_v15 = vsel %vm1426_vm13, %v1397_v48, %v1098_v56  ;;  %v798_v56 = vrot.slane %v3470_v4, 2  ;;  %v640_v5 = vrot.slane %v3536_v23, 1  ;;  %v802_v7 = vrot.slane %v3548_v41, 2 }
  0xc6   : > { %853 = vrot.lane.b32.xlu1 %v796_v55, %s2910_s11  ;;  %v801_v6 = vrot.slane %v3551_v49, 1  ;;  %v1057_v37 = vrot.slane %v3551_v49, 2 }
  0xc7   : > { %v1173_v34 = vpop.permute.xlu0 %1172  ;;  %v799_v16 = vor.u32 %v798_v56, %v797_v57 }
  0xc8   : > { %v580_v22 = vpop.permute.xlu1 %579  ;;  %v1469_v18 = vsel %vm1463_vm14, %v1432_v11, %v1173_v34  ;;  %v3569_v11 = vsel %vm610_vm0, %v638_v24, %v640_v5  ;;  %v3571_v36 = vor.u32 %v802_v7, %v801_v6  ;;  %v3574_v34 = vld [vmem:[%s2971_s25 + $0x80] sm:$0xff]  }
  0xc9   : > { %928 = vrot.lane.b32.xlu0 %v3387_v63, %s2908_s28  ;;  %2678 = vmatprep.mubr.msk.bf16.mxu0 %vm1536_vm15, %v1469_v18  ;;  %v1214_v9 = vsel %vm1204_vm7, %v3024_v45, %v580_v22  ;;  %v800_v18 = vsel %vm740_vm3, %v3452_v61, %v799_v16  ;;  %v3589_v45 = vshll.u32 %v3574_v34, 16  ;;  %v3592_v22 = vshrl.u32 %v3574_v34, 16 }
  0xca   : > { %930 = vrot.lane.b32.xlu1 %v895_v8, %s2908_s28  ;;  %v804_v58 = vsel %vm740_vm3, %v799_v16, %v3571_v36  ;;  %v900_v30 = vrot.slane %v3574_v34, 2  ;;  %v545_v16 = vrot.slane %v3548_v41, 1 }
  0xcb   : > { %v1175_v59 = vpop.permute.xlu0 %1174 }
  0xcc   : > { %v3510_v27 = vpop.permute.xlu1 %581  ;;  %v1471_v63 = vsel %vm1463_vm14, %v1434_v15, %v1175_v59  ;;  %v549_v4 = vor.u32 %v3551_v49, %v545_v16  ;;  %v642_v49 = vrot.slane %v3574_v34, 1 }
  0xcd   : > { %981 = vrot.lane.b32.xlu0 %v895_v8, %s2911_s14  ;;  %2679 = vmatmul.mubr.msk.bf16.gmra.mrb[4].mxu0 %vm1536_vm15, %v1471_v63  ;;  %v1216_v63 = vsel %vm1204_vm7, %v3103_v33, %v3510_v27  ;;  %v1058_v33 = vrot.slane %v3548_v41, 3 }
  0xce   : > { %983 = vrot.lane.b32.xlu1 %v3506_v2, %s2911_s14 }
  0xcf   : > { %v657_v39 = vpop.permute.xlu0 %656 }
  0xd0   : > { %v659_v43 = vpop.permute.xlu1 %658  ;;  %v1251_v12 = vsel %vm1241_vm8, %v1214_v9, %v657_v39 }
  0xd1   : > { %1111 = vrot.lane.b32.xlu0 %v1052_v29, %s2912_s15  ;;  %v1253_v39 = vsel %vm1241_vm8, %v1216_v63, %v659_v43 }
  0xd2   : > { %1113 = vrot.lane.b32.xlu1 %v1056_v17, %s2912_s15 }
  0xd3   : > { %v710_v50 = vpop.permute.xlu0 %709 }
  0xd4   : > { %v712_v21 = vpop.permute.xlu1 %711  ;;  %v1288_v47 = vsel %vm1278_vm9, %v1251_v12, %v710_v50  ;;  %v1061_v50 = vrot.slane %v3592_v22, 2 }
  0xd5   : > { %1188 = vrot.lane.b32.xlu0 %v1153_v1, %s2913_s16  ;;  %v1290_v27 = vsel %vm1278_vm9, %v1253_v39, %v712_v21 }
  0xd6   : > { %595 = vrot.lane.b32.xlu1 %v530_v10, %s2909_s29 }
  0xd7   : > { %v840_v26 = vpop.permute.xlu0 %839 }
  0xd8   : > { %v842_v55 = vpop.permute.xlu1 %841  ;;  %v1325_v15 = vsel %vm1315_vm10, %v1288_v47, %v840_v26  ;;  %v1059_v26 = vor.u32 %v1058_v33, %v1057_v37 }
  0xd9   : > { %1190 = vrot.lane.b32.xlu0 %v1155_v14, %s2913_s16  ;;  %v1327_v10 = vsel %vm1315_vm10, %v1290_v27, %v842_v55 }
  0xda   : > { %597 = vrot.lane.b32.xlu1 %v538_v54, %s2909_s29 }
  0xdb   : > { %v917_v19 = vpop.permute.xlu0 %916 }
  0xdc   : > { %v919_v8 = vpop.permute.xlu1 %918  ;;  %v1362_v61 = vsel %vm1352_vm11, %v1325_v15, %v917_v19  ;;  %v1060_v19 = vsel %vm1000_vm4, %v3508_v25, %v1059_v26  ;;  %v805_v15 = vrot.slane %v3592_v22, 1 }
  0xdd   : > { %672 = vrot.lane.b32.xlu0 %v3450_v44, %s2907_s27  ;;  %v898_v44 = vrot.slane %v3536_v23, 2  ;;  %v1364_v14 = vsel %vm1352_vm11, %v1327_v10, %v919_v8  ;;  %v541_v8 = vor.u32 %v3473_v51, %v537_v38  ;;  %v553_v51 = vrot.slane %v3589_v45, 1  ;;  %v3655_v38 = vld [vmem:[%s2971_s25 + $0x88] sm:$0xff]  }
  0xde   : > { %674 = vrot.lane.b32.xlu1 %v639_v32, %s2907_s27  ;;  %v3667_v47 = vshll.u32 %v3655_v38, 16 }
  0xdf   : > { %v970_v60 = vpop.permute.xlu0 %969  ;;  %v899_v29 = vsel %vm870_vm1, %v896_v3, %v898_v44  ;;  %v1062_v3 = vrot.slane %v3589_v45, 3  ;;  %v3625_v55 = vsel %vm870_vm1, %v898_v44, %v900_v30  ;;  %v546_v44 = vsel %vm422_vm2, %v541_v8, %v545_v16 }
  0xe0   : > { %v972_v13 = vpop.permute.xlu1 %971  ;;  %v1399_v17 = vsel %vm1389_vm12, %v1362_v61, %v970_v60  ;;  %v643_v61 = vsel %vm610_vm0, %v640_v5, %v642_v49 }
  0xe1   : > { %725 = vrot.lane.b32.xlu0 %v639_v32, %s2906_s26  ;;  %v1401_v21 = vsel %vm1389_vm12, %v1364_v14, %v972_v13  ;;  %v3627_v57 = vor.u32 %v1062_v3, %v1061_v50  ;;  %v1156_v32 = vrot.slane %v3536_v23, 3  ;;  %v1158_v13 = vrot.slane %v3574_v34, 3 }
  0xe2   : > { %727 = vrot.lane.b32.xlu1 %v3569_v11, %s2906_s26 }
  0xe3   : > { %v1100_v48 = vpop.permute.xlu0 %1099  ;;  %v1064_v7 = vsel %vm1000_vm4, %v1059_v26, %v3627_v57  ;;  %v1157_v25 = vsel %vm1130_vm5, %v1154_v46, %v1156_v32  ;;  %v1159_v46 = vsel %vm1130_vm5, %v1156_v32, %v1158_v13 }
  0xe4   : > { %v1102_v59 = vpop.permute.xlu1 %1101  ;;  %v1436_v42 = vsel %vm1426_vm13, %v1399_v17, %v1100_v48  ;;  %v3670_v48 = vshrl.u32 %v3655_v38, 16  ;;  %v810_v17 = vrot.slane %v3667_v47, 2 }
  0xe5   : > { %855 = vrot.lane.b32.xlu0 %v800_v18, %s2910_s11  ;;  %v1438_v54 = vsel %vm1426_vm13, %v1401_v21, %v1102_v59  ;;  %v554_v18 = vsel %vm422_vm2, %v549_v4, %v553_v51  ;;  %v806_v59 = vrot.slane %v3589_v45, 2 }
  0xe6   : > { %857 = vrot.lane.b32.xlu1 %v804_v58, %s2910_s11  ;;  %v809_v39 = vrot.slane %v3670_v48, 1  ;;  %v1065_v8 = vrot.slane %v3670_v48, 2 }
  0xe7   : > { %v1177_v1 = vpop.permute.xlu0 %1176  ;;  %v807_v33 = vor.u32 %v806_v59, %v805_v15  ;;  %v2875_v59 = vld [vmem:[%s2971_s25 + $0x90] ss:$0 sps:$4 sm:$0x11]  }
  0xe8   : > { %v584_v43 = vpop.permute.xlu1 %583  ;;  %v1473_v31 = vsel %vm1463_vm14, %v1436_v42, %v1177_v1  ;;  %v3691_v5 = vor.u32 %v810_v17, %v809_v39  ;;  %v3694_v1 = vld [vmem:[%s2971_s25 + $0x90] sm:$0xff]   ;;  %v1160_v39 = vrot.slane %v3655_v38, 3 }
  0xe9   : > { %932 = vrot.lane.b32.xlu0 %v3506_v2, %s2908_s28  ;;  %2682 = vmatprep.mubr.msk.bf16.mxu0 %vm1536_vm15, %v1473_v31  ;;  %v1218_v3 = vsel %vm1204_vm7, %v3127_v53, %v584_v43  ;;  %v808_v31 = vsel %vm740_vm3, %v3571_v36, %v807_v33  ;;  %v814_v53 = vshrl.u32 %v3694_v1, 16  ;;  %v817_v43 = vshll.u32 %v3694_v1, 16 }
  0xea   : > { %934 = vrot.lane.b32.xlu1 %v899_v29, %s2908_s28  ;;  %v812_v26 = vsel %vm740_vm3, %v807_v33, %v3691_v5  ;;  %v3720_v32 = vrot.slane %v3694_v1, 2  ;;  %v1162_v33 = vrot.slane %v3694_v1, 3 }
  0xeb   : > { %v1179_v24 = vpop.permute.xlu0 %1178 }
  0xec   : > { %v3629_v56 = vpop.permute.xlu1 %585  ;;  %v1475_v2 = vsel %vm1463_vm14, %v1438_v54, %v1179_v24 }
  0xed   : > { %985 = vrot.lane.b32.xlu0 %v899_v29, %s2911_s14  ;;  %2683 = vmatmul.mubr.msk.bf16.gmra.mrb[8].mxu0 %vm1536_vm15, %v1475_v2  ;;  %v3680_v29 = vrot.slane %v3655_v38, 1  ;;  %v1220_v2 = vsel %vm1204_vm7, %v3171_v20, %v3629_v56  ;;  %v1066_v20 = vrot.slane %v3667_v47, 3 }
  0xee   : > { %987 = vrot.lane.b32.xlu1 %v3625_v55, %s2911_s14 }
  0xef   : > { %v661_v6 = vpop.permute.xlu0 %660  ;;  %v3689_v42 = vsel %vm610_vm0, %v642_v49, %v3680_v29 }
  0xf0   : > { %v663_v60 = vpop.permute.xlu1 %662  ;;  %v1255_v10 = vsel %vm1241_vm8, %v1218_v3, %v661_v6 }
  0xf1   : > { %1115 = vrot.lane.b32.xlu0 %v1060_v19, %s2912_s15  ;;  %v1257_v6 = vsel %vm1241_vm8, %v1220_v2, %v663_v60  ;;  %v1070_v60 = vrot.slane %v817_v43, 3 }
  0xf2   : > { %1117 = vrot.lane.b32.xlu1 %v1064_v7, %s2912_s15 }
  0xf3   : > { %v714_v9 = vpop.permute.xlu0 %713 }
  0xf4   : > { %v716_v41 = vpop.permute.xlu1 %715  ;;  %v1292_v14 = vsel %vm1278_vm9, %v1255_v10, %v714_v9 }
  0xf5   : > { %1192 = vrot.lane.b32.xlu0 %v1157_v25, %s2913_s16  ;;  %v1294_v56 = vsel %vm1278_vm9, %v1257_v6, %v716_v41  ;;  %v819_v6 = vrot.slane %v817_v43, 2 }
  0xf6   : > { %599 = vrot.lane.b32.xlu1 %v546_v44, %s2909_s29 }
  0xf7   : > { %v844_v12 = vpop.permute.xlu0 %843 }
  0xf8   : > { %v846_v58 = vpop.permute.xlu1 %845  ;;  %v1329_v54 = vsel %vm1315_vm10, %v1292_v14, %v844_v12  ;;  %v1067_v12 = vor.u32 %v1066_v20, %v1065_v8 }
  0xf9   : > { %1194 = vrot.lane.b32.xlu0 %v1159_v46, %s2913_s16  ;;  %v1331_v9 = vsel %vm1315_vm10, %v1294_v56, %v846_v58 }
  0xfa   : > { %601 = vrot.lane.b32.xlu1 %v554_v18, %s2909_s29 }
  0xfb   : > { %v921_v63 = vpop.permute.xlu0 %920 }
  0xfc   : > { %v923_v37 = vpop.permute.xlu1 %922  ;;  %v1366_v19 = vsel %vm1352_vm11, %v1329_v54, %v921_v63 }
  0xfd   : > { %676 = vrot.lane.b32.xlu0 %v3569_v11, %s2907_s27  ;;  %v902_v11 = vrot.slane %v3655_v38, 2  ;;  %v1368_v46 = vsel %vm1352_vm11, %v1331_v9, %v923_v37 }
  0xfe   : > { %678 = vrot.lane.b32.xlu1 %v643_v61, %s2907_s27 }
  0xff   : > { %v974_v27 = vpop.permute.xlu0 %973  ;;  %v903_v36 = vsel %vm870_vm1, %v900_v30, %v902_v11  ;;  %v1069_v30 = vrot.slane %v814_v53, 2  ;;  %v3746_v58 = vsel %vm870_vm1, %v902_v11, %v3720_v32  ;;  %v557_v11 = vor.u32 %v3592_v22, %v553_v51  ;;  %v2876_v51 = vld [vmem:[%s2971_s25 + $0x98] ss:$0 sps:$4 sm:$0x11]  }
 0x100   : > { %v976_v50 = vpop.permute.xlu1 %975  ;;  %v1403_v7 = vsel %vm1389_vm12, %v1366_v19, %v974_v27  ;;  %v561_v27 = vrot.slane %v3667_v47, 1  ;;  %v1163_v47 = vsel %vm1130_vm5, %v1160_v39, %v1162_v33  ;;  %v646_v22 = vrot.slane %v2875_v59, 1 }
 0x101   : > { %729 = vrot.lane.b32.xlu0 %v643_v61, %s2906_s26  ;;  %v1405_v41 = vsel %vm1389_vm12, %v1368_v46, %v976_v50  ;;  %v3748_v15 = vor.u32 %v1070_v60, %v1069_v30  ;;  %v1068_v61 = vsel %vm1000_vm4, %v3627_v57, %v1067_v12  ;;  %v567_v50 = vshll.u32 %v2875_v59, 16  ;;  %v3800_v60 = vld [vmem:[%s2971_s25 + $0x98] sm:$0xff]   ;;  %v3804_v46 = vld [vmem:[%s2971_s25 + $0xa0] ss:$0 sps:$4 sm:$0x77]  }
 0x102   : > { %731 = vrot.lane.b32.xlu1 %v3689_v42, %s2906_s26  ;;  %v1161_v57 = vsel %vm1130_vm5, %v1158_v13, %v1160_v39  ;;  %v562_v13 = vsel %vm422_vm2, %v557_v11, %v561_v27  ;;  %v647_v8 = vsel %vm610_vm0, %v3680_v29, %v646_v22  ;;  %v699_v20 = vrot.slane %v2876_v51, 1 }
 0x103   : > { %v1104_v21 = vpop.permute.xlu0 %1103  ;;  %v1072_v37 = vsel %vm1000_vm4, %v1067_v12, %v3748_v15  ;;  %v569_v14 = vrot.slane %v567_v50, 1  ;;  %v1074_v59 = vshrl.u32 %v3800_v60, 16  ;;  %v957_v11 = vrot.slane %v3800_v60, 2 }
 0x104   : > { %v1106_v24 = vpop.permute.xlu1 %1105  ;;  %v1440_v16 = vsel %vm1426_vm13, %v1403_v7, %v1104_v21  ;;  %v2877_v21 = vld [vmem:[%s2971_s25 + $0x98] ss:$0 sps:$4 sm:$0x33]  }
 0x105   : > { %859 = vrot.lane.b32.xlu0 %v808_v31, %s2910_s11  ;;  %v1442_v18 = vsel %vm1426_vm13, %v1405_v41, %v1106_v24  ;;  %v565_v31 = vor.u32 %v3670_v48, %v561_v27  ;;  %v823_v24 = vshrl.u32 %v2877_v21, 16  ;;  %v826_v2 = vshll.u32 %v2877_v21, 16 }
 0x106   : > { %861 = vrot.lane.b32.xlu1 %v812_v26, %s2910_s11  ;;  %v697_v48 = vrot.slane %v3694_v1, 1  ;;  %v906_v12 = vrot.slane %v2877_v21, 2 }
 0x107   : > { %v1181_v25 = vpop.permute.xlu0 %1180  ;;  %v570_v45 = vsel %vm422_vm2, %v565_v31, %v569_v14  ;;  %v825_v56 = vrot.slane %v823_v24, 1  ;;  %v1076_v14 = vrot.slane %v1074_v59, 2  ;;  %vm2273_vm2 = vcmask 57344  }
 0x108   : > { %v3734_v44 = vpop.permute.xlu1 %587  ;;  %v1477_v4 = vsel %vm1463_vm14, %v1440_v16, %v1181_v25  ;;  %v828_v16 = vrot.slane %v826_v2, 2  ;;  %v700_v9 = vsel %vm610_vm0, %v697_v48, %v699_v20  ;;  %v907_v50 = vsel %vm870_vm1, %v3720_v32, %v906_v12 }
 0x109   : > { %936 = vrot.lane.b32.xlu0 %v3625_v55, %s2908_s28  ;;  %2686 = vmatprep.mubr.msk.bf16.mxu0 %vm1536_vm15, %v1477_v4 }
 0x10a   : > { %938 = vrot.lane.b32.xlu1 %v903_v36, %s2908_s28  ;;  %v829_v4 = vor.u32 %v828_v16, %v825_v56 }
 0x10b   : > { %v1183_v49 = vpop.permute.xlu0 %1182 }
 0x10c   : > { %v3751_v63 = vpop.permute.xlu1 %589  ;;  %v1479_v55 = vsel %vm1463_vm14, %v1442_v18, %v1183_v49  ;;  %v2879_v18 = vld [vmem:[%s2971_s25 + $0xa0] ss:$0 sps:$4 sm:$0x33]  }
 0x10d   : > { %989 = vrot.lane.b32.xlu0 %v903_v36, %s2911_s14  ;;  %2687 = vmatmul.mubr.msk.bf16.gmra.mrb[12].mxu0 %vm1536_vm15, %v1479_v55  ;;  %v816_v36 = vrot.slane %v814_v53, 1  ;;  %v698_v53 = vsel %vm610_vm0, %v3680_v29, %v697_v48  ;;  %v1077_v55 = vshll.u32 %v3800_v60, 16  ;;  %vm1898_vm0 = vcmask 60416  }
 0x10e   : > { %991 = vrot.lane.b32.xlu1 %v3746_v58, %s2911_s14 }
 0x10f   : > { %v665_v17 = vpop.permute.xlu0 %664  ;;  %v820_v30 = vor.u32 %v819_v6, %v816_v36  ;;  %v1079_v21 = vrot.slane %v1077_v55, 3 }
 0x110   : > { %v3765_v3 = vpop.permute.xlu1 %666 }
 0x111   : > { %1119 = vrot.lane.b32.xlu0 %v1068_v61, %s2912_s15  ;;  %v821_v49 = vsel %vm740_vm3, %v3691_v5, %v820_v30  ;;  %v1224_v5 = vsel %vm1204_vm7, %v3226_v62, %v3751_v63  ;;  %v1080_v48 = vor.u32 %v1079_v21, %v1076_v14 }
 0x112   : > { %1121 = vrot.lane.b32.xlu1 %v1072_v37, %s2912_s15  ;;  %v830_v37 = vsel %vm740_vm3, %v820_v30, %v829_v4 }
 0x113   : > { %v718_v10 = vpop.permute.xlu0 %717 }
 0x114   : > { %v720_v26 = vpop.permute.xlu1 %719 }
 0x115   : > { %1196 = vrot.lane.b32.xlu0 %v1161_v57, %s2913_s16 }
 0x116   : > { %1198 = vrot.lane.b32.xlu1 %v1163_v47, %s2913_s16  ;;  %v1261_v47 = vsel %vm1241_vm8, %v1224_v5, %v3765_v3 }
 0x117   : > { %v848_v54 = vpop.permute.xlu0 %847 }
 0x118   : > { %v850_v19 = vpop.permute.xlu1 %849 }
 0x119   : > { %603 = vrot.lane.b32.xlu0 %v562_v13, %s2909_s29  ;;  %v1298_v13 = vsel %vm1278_vm9, %v1261_v47, %v720_v26  ;;  %v958_v26 = vsel %vm870_vm1, %v3720_v32, %v957_v11  ;;  %v1164_v32 = vrot.slane %v3800_v60, 3 }
 0x11a   : > { %605 = vrot.lane.b32.xlu1 %v570_v45, %s2909_s29  ;;  %v1335_v22 = vsel %vm1315_vm10, %v1298_v13, %v850_v19 }
 0x11b   : > { %v925_v7 = vpop.permute.xlu0 %924  ;;  %v1165_v30 = vsel %vm1130_vm5, %v1162_v33, %v1164_v32 }
 0x11c   : > { %v927_v25 = vpop.permute.xlu1 %926 }
 0x11d   : > { %680 = vrot.lane.b32.xlu0 %v3689_v42, %s2907_s27  ;;  %v1222_v42 = vsel %vm1204_vm7, %v3190_v35, %v3734_v44  ;;  %v1083_v35 = vshrl.u32 %v3804_v46, 16  ;;  %v1086_v44 = vshll.u32 %v3804_v46, 16  ;;  %v1372_v3 = vsel %vm1352_vm11, %v1335_v22, %v927_v25 }
 0x11e   : > { %682 = vrot.lane.b32.xlu1 %v647_v8, %s2907_s27  ;;  %v1259_v29 = vsel %vm1241_vm8, %v1222_v42, %v665_v17  ;;  %v1166_v25 = vrot.slane %v3804_v46, 3 }
 0x11f   : > { %v978_v43 = vpop.permute.xlu0 %977  ;;  %v1296_v61 = vsel %vm1278_vm9, %v1259_v29, %v718_v10  ;;  %v959_v10 = vrot.slane %v2879_v18, 2  ;;  %v1088_v45 = vrot.slane %v1086_v44, 3  ;;  %v2881_v18 = vld [vmem:[%s2971_s25 + $0x50] sm:$0xff]  }
 0x120   : > { %v980_v41 = vpop.permute.xlu1 %979  ;;  %v1333_v17 = vsel %vm1315_vm10, %v1296_v61, %v848_v54  ;;  %v1085_v54 = vrot.slane %v1083_v35, 2 }
 0x121   : > { %733 = vrot.lane.b32.xlu0 %v698_v53, %s2906_s26  ;;  %v1370_v57 = vsel %vm1352_vm11, %v1333_v17, %v925_v7  ;;  %v1409_v2 = vsel %vm1389_vm12, %v1372_v3, %v980_v41  ;;  %v960_v6 = vsel %vm870_vm1, %v957_v11, %v959_v10  ;;  %vm2915_vm1 = vmmov 0  }
 0x122   : > { %735 = vrot.lane.b32.xlu1 %v700_v9, %s2906_s26  ;;  %v1407_v31 = vsel %vm1389_vm12, %v1370_v57, %v978_v43  ;;  %v1089_v7 = vor.u32 %v1088_v45, %v1085_v54  ;;  %s3914_s26 = scalar_lea.vmem %s4331_s3, %s2810_s23 }
 0x123   : > { %v1108_v39 = vpop.permute.xlu0 %1107 }
 0x124   : > { %v1110_v27 = vpop.permute.xlu1 %1109  ;;  %v1444_v62 = vsel %vm1426_vm13, %v1407_v31, %v1108_v39  ;;  %v1090_v16 = vsel %vm1000_vm4, %v1080_v48, %v1089_v7 }
 0x125   : > { %863 = vrot.lane.b32.xlu0 %v821_v49, %s2910_s11  ;;  %v1446_v19 = vsel %vm1426_vm13, %v1409_v2, %v1110_v27 }
 0x126   : > { %865 = vrot.lane.b32.xlu1 %v830_v37, %s2910_s11 }
 0x127   : > { %v1185_v63 = vpop.permute.xlu0 %1184 }
 0x128   : > { %v592_v51 = vpop.permute.xlu1 %591  ;;  %v1481_v24 = vsel %vm1463_vm14, %v1444_v62, %v1185_v63 }
 0x129   : > { %940 = vrot.lane.b32.xlu0 %v3746_v58, %s2908_s28  ;;  %2690 = vmatprep.mubr.msk.bf16.mxu0 %vm1536_vm15, %v1481_v24  ;;  %v1081_v58 = vsel %vm1000_vm4, %v3748_v15, %v1080_v48  ;;  %v1167_v15 = vsel %vm1130_vm5, %v1164_v32, %v1166_v25  ;;  %v1226_v29 = vsel %vm1204_vm7, %v2881_v18, %v592_v51 }
 0x12a   : > { %942 = vrot.lane.b32.xlu1 %v907_v50, %s2908_s28 }
 0x12b   : > { %v1187_v36 = vpop.permute.xlu0 %1186 }
 0x12c   : > { %v594_v8 = vpop.permute.xlu1 %593  ;;  %v1483_v20 = vsel %vm1463_vm14, %v1446_v19, %v1187_v36 }
 0x12d   : > { %993 = vrot.lane.b32.xlu0 %v958_v26, %s2911_s14  ;;  %2691 = vmatmul.mubr.msk.bf16.gmra.mrb[16].mxu0 %vm1536_vm15, %v1483_v20  ;;  %v1228_v61 = vsel %vm1204_vm7, %v3298_v28, %v594_v8 }
 0x12e   : > { %995 = vrot.lane.b32.xlu1 %v960_v6, %s2911_s14 }
 0x12f   : > { %v669_v56 = vpop.permute.xlu0 %668 }
 0x130   : > { %v671_v53 = vpop.permute.xlu1 %670  ;;  %v1263_v1 = vsel %vm1241_vm8, %v1226_v29, %v669_v56 }
 0x131   : > { %1123 = vrot.lane.b32.xlu0 %v1081_v58, %s2912_s15  ;;  %v1265_v37 = vsel %vm1241_vm8, %v1228_v61, %v671_v53 }
 0x132   : > { %1125 = vrot.lane.b32.xlu1 %v1090_v16, %s2912_s15 }
 0x133   : > { %v722_v43 = vpop.permute.xlu0 %721 }
 0x134   : > { %v724_v9 = vpop.permute.xlu1 %723  ;;  %v1300_v33 = vsel %vm1278_vm9, %v1263_v1, %v722_v43 }
 0x135   : > { %1200 = vrot.lane.b32.xlu0 %v1165_v30, %s2913_s16  ;;  %v1302_v44 = vsel %vm1278_vm9, %v1265_v37, %v724_v9 }
 0x136   : > { %1202 = vrot.lane.b32.xlu1 %v1167_v15, %s2913_s16 }
 0x137   : > { %v852_v60 = vpop.permute.xlu0 %851 }
 0x138   : > { %v854_v4 = vpop.permute.xlu1 %853  ;;  %v1337_v59 = vsel %vm1315_vm10, %v1300_v33, %v852_v60 }
 0x139   : > { %v1339_v50 = vsel %vm1315_vm10, %v1302_v44, %v854_v4 }
 0x13b   : > { %v929_v46 = vpop.permute.xlu0 %928 }
 0x13c   : > { %v931_v41 = vpop.permute.xlu1 %930  ;;  %v1374_v39 = vsel %vm1352_vm11, %v1337_v59, %v929_v46 }
 0x13d   : > { %v1376_v11 = vsel %vm1352_vm11, %v1339_v50, %v931_v41 }
 0x13f   : > { %v982_v12 = vpop.permute.xlu0 %981 }
 0x140   : > { %v984_v42 = vpop.permute.xlu1 %983  ;;  %v1411_v35 = vsel %vm1389_vm12, %v1374_v39, %v982_v12 }
 0x141   : > { %v1413_v28 = vsel %vm1389_vm12, %v1376_v11, %v984_v42 }
 0x143   : > { %v1112_v49 = vpop.permute.xlu0 %1111 }
 0x144   : > { %v1114_v55 = vpop.permute.xlu1 %1113  ;;  %v1448_v17 = vsel %vm1426_vm13, %v1411_v35, %v1112_v49 }
 0x145   : > { %v1450_v10 = vsel %vm1426_vm13, %v1413_v28, %v1114_v55 }
 0x147   : > { %v1189_v27 = vpop.permute.xlu0 %1188 }
 0x148   : > { %v596_v5 = vpop.permute.xlu1 %595  ;;  %v1485_v57 = vsel %vm1463_vm14, %v1448_v17, %v1189_v27 }
 0x149   : > { %2694 = vmatprep.mubr.msk.bf16.mxu0 %vm1536_vm15, %v1485_v57  ;;  %v1230_v2 = vsel %vm1204_vm7, %v3341_v0, %v596_v5 }
 0x14b   : > { %v1191_v47 = vpop.permute.xlu0 %1190 }
 0x14c   : > { %v598_v31 = vpop.permute.xlu1 %597  ;;  %v1487_v14 = vsel %vm1463_vm14, %v1450_v10, %v1191_v47 }
 0x14d   : > { %2695 = vmatmul.mubr.msk.bf16.gmra.mrb[20].mxu0 %vm1536_vm15, %v1487_v14  ;;  %v1232_v7 = vsel %vm1204_vm7, %v3417_v52, %v598_v31 }
 0x14f   : > { %v673_v21 = vpop.permute.xlu0 %672 }
 0x150   : > { %v675_v13 = vpop.permute.xlu1 %674  ;;  %v1267_v26 = vsel %vm1241_vm8, %v1230_v2, %v673_v21 }
 0x151   : > { %v1269_v20 = vsel %vm1241_vm8, %v1232_v7, %v675_v13 }
 0x153   : > { %v726_v62 = vpop.permute.xlu0 %725 }
 0x154   : > { %v728_v63 = vpop.permute.xlu1 %727  ;;  %v1304_v48 = vsel %vm1278_vm9, %v1267_v26, %v726_v62 }
 0x155   : > { %v1306_v32 = vsel %vm1278_vm9, %v1269_v20, %v728_v63 }
 0x157   : > { %v856_v54 = vpop.permute.xlu0 %855 }
 0x158   : > { %v858_v45 = vpop.permute.xlu1 %857  ;;  %v1341_v36 = vsel %vm1315_vm10, %v1304_v48, %v856_v54 }
 0x159   : > { %v1343_v16 = vsel %vm1315_vm10, %v1306_v32, %v858_v45 }
 0x15b   : > { %v933_v22 = vpop.permute.xlu0 %932 }
 0x15c   : > { %v935_v51 = vpop.permute.xlu1 %934  ;;  %v1378_v8 = vsel %vm1352_vm11, %v1341_v36, %v933_v22 }
 0x15d   : > { %v1380_v30 = vsel %vm1352_vm11, %v1343_v16, %v935_v51 }
 0x15f   : > { %v986_v24 = vpop.permute.xlu0 %985 }
 0x160   : > { %v988_v3 = vpop.permute.xlu1 %987  ;;  %v1415_v58 = vsel %vm1389_vm12, %v1378_v8, %v986_v24 }
 0x161   : > { %v1417_v52 = vsel %vm1389_vm12, %v1380_v30, %v988_v3 }
 0x163   : > { %v1116_v19 = vpop.permute.xlu0 %1115 }
 0x164   : > { %v1118_v6 = vpop.permute.xlu1 %1117  ;;  %v1452_v0 = vsel %vm1426_vm13, %v1415_v58, %v1116_v19 }
 0x165   : > { %v1454_v43 = vsel %vm1426_vm13, %v1417_v52, %v1118_v6 }
 0x167   : > { %v1193_v56 = vpop.permute.xlu0 %1192 }
 0x168   : > { %v600_v25 = vpop.permute.xlu1 %599  ;;  %v1489_v53 = vsel %vm1463_vm14, %v1452_v0, %v1193_v56 }
 0x169   : > { %2698 = vmatprep.mubr.msk.bf16.mxu0 %vm1536_vm15, %v1489_v53  ;;  %v1234_v33 = vsel %vm1204_vm7, %v3455_v40, %v600_v25 }
 0x16b   : > { %v1195_v15 = vpop.permute.xlu0 %1194 }
 0x16c   : > { %v602_v9 = vpop.permute.xlu1 %601  ;;  %v1491_v60 = vsel %vm1463_vm14, %v1454_v43, %v1195_v15 }
 0x16d   : > { %2699 = vmatmul.mubr.msk.bf16.gmra.mrb[24].mxu0 %vm1536_vm15, %v1491_v60  ;;  %v1236_v59 = vsel %vm1204_vm7, %v3536_v23, %v602_v9 }
 0x16f   : > { %v677_v4 = vpop.permute.xlu0 %676 }
 0x170   : > { %v679_v46 = vpop.permute.xlu1 %678  ;;  %v1271_v55 = vsel %vm1241_vm8, %v1234_v33, %v677_v4 }
 0x171   : > { %v1273_v37 = vsel %vm1241_vm8, %v1236_v59, %v679_v46 }
 0x173   : > { %v730_v41 = vpop.permute.xlu0 %729 }
 0x174   : > { %v732_v12 = vpop.permute.xlu1 %731  ;;  %v1308_v40 = vsel %vm1278_vm9, %v1271_v55, %v730_v41 }
 0x175   : > { %v1310_v44 = vsel %vm1278_vm9, %v1273_v37, %v732_v12 }
 0x177   : > { %v860_v42 = vpop.permute.xlu0 %859 }
 0x178   : > { %v862_v18 = vpop.permute.xlu1 %861  ;;  %v1345_v17 = vsel %vm1315_vm10, %v1308_v40, %v860_v42 }
 0x179   : > { %v1347_v63 = vsel %vm1315_vm10, %v1310_v44, %v862_v18 }
 0x17b   : > { %v937_v29 = vpop.permute.xlu0 %936 }
 0x17c   : > { %v939_v1 = vpop.permute.xlu1 %938  ;;  %v1382_v54 = vsel %vm1352_vm11, %v1345_v17, %v937_v29 }
 0x17d   : > { %v1384_v22 = vsel %vm1352_vm11, %v1347_v63, %v939_v1 }
 0x17f   : > { %v990_v49 = vpop.permute.xlu0 %989 }
 0x180   : > { %v992_v61 = vpop.permute.xlu1 %991  ;;  %v3916_v39 = vpop.f32.mrb[0].mxu0  ;;  %v1419_v51 = vsel %vm1389_vm12, %v1382_v54, %v990_v49 }
 0x181   : > { %v2527_v23 = vpack.c.bf16 %v3916_v39, %v3916_v39  ;;  %v3922_v35 = vpop.f32.mrb[1].mxu0  ;;  %v3934_v5 = vmul.f32 %v3916_v39, %v3916_v39  ;;  %v1421_v3 = vsel %vm1389_vm12, %v1384_v22, %v992_v61 }
 0x182   : > { %v2525_v27 = vpack.c.bf16 %v3922_v35, %v3922_v35  ;;  %v3928_v50 = vpop.f32.mrb[2].mxu0  ;;  %v3950_v31 = vmul.f32 %v3922_v35, %v3922_v35 }
 0x183   : > { %1901 = vst.msk [vmem:[%s3914_s26 + $0x8] sm:$0xf] %vm1898_vm0, %v2527_v23  ;;  %v2528_v57 = vpack.c.bf16 %v3928_v50, %v3928_v50  ;;  %v2738_v11 = vpack.c.bf16 %v3928_v50, %v3916_v39  ;;  %v3942_v28 = vmul.f32 %v3928_v50, %v3928_v50  ;;  %v3944_v10 = vpop.f32.mrb[3].mxu0  ;;  %v1120_v47 = vpop.permute.xlu0 %1119 }
 0x184   : > { %1899 = vst.msk [vmem:[%s3914_s26] sm:$0xf] %vm1898_vm0, %v2525_v27  ;;  %v1122_v14 = vpop.permute.xlu1 %1121  ;;  %v2526_v21 = vpack.c.bf16 %v3944_v10, %v3944_v10  ;;  %v3956_v13 = vmul.f32 %v3944_v10, %v3944_v10  ;;  %v2734_v62 = vpack.c.bf16 %v3944_v10, %v3922_v35  ;;  %v1456_v2 = vsel %vm1426_vm13, %v1419_v51, %v1120_v47 }
 0x185   : > { %1902 = vst.msk [vmem:[%s3914_s26 + $0xc] sm:$0xf] %vm1898_vm0, %v2528_v57  ;;  %v2776_v45 = vpack.c.bf16 %v3942_v28, %v3934_v5  ;;  %v1458_v48 = vsel %vm1426_vm13, %v1421_v3, %v1122_v14 }
 0x186   : > { %1900 = vst.msk [vmem:[%s3914_s26 + $0x4] sm:$0xf] %vm1898_vm0, %v2526_v21  ;;  %v2772_v24 = vpack.c.bf16 %v3956_v13, %v3950_v31 }
 0x187   : > { %v1197_v26 = vpop.permute.xlu0 %1196 }
 0x188   : > { %v1199_v19 = vpop.permute.xlu1 %1198  ;;  %v1493_v36 = vsel %vm1463_vm14, %v1456_v2, %v1197_v26 }
 0x189   : > { %v1495_v6 = vsel %vm1463_vm14, %v1458_v48, %v1199_v19  ;;  %2702 = vmatprep.mubr.msk.bf16.mxu0 %vm1536_vm15, %v1493_v36 }
 0x18a   : > { %2703 = vmatmul.mubr.msk.bf16.gmra.mrb[28].mxu0 %vm1536_vm15, %v1495_v6 }
 0x18b   : > { %v604_v7 = vpop.permute.xlu0 %603 }
 0x18c   : > { %v606_v8 = vpop.permute.xlu1 %605  ;;  %v1238_v30 = vsel %vm1204_vm7, %v3574_v34, %v604_v7 }
 0x18d   : > { %v1240_v43 = vsel %vm1204_vm7, %v3655_v38, %v606_v8 }
 0x18f   : > { %v681_v20 = vpop.permute.xlu0 %680 }
 0x190   : > { %v683_v58 = vpop.permute.xlu1 %682  ;;  %v1275_v15 = vsel %vm1241_vm8, %v1238_v30, %v681_v20 }
 0x191   : > { %v1277_v4 = vsel %vm1241_vm8, %v1240_v43, %v683_v58 }
 0x193   : > { %v734_v32 = vpop.permute.xlu0 %733 }
 0x194   : > { %v736_v0 = vpop.permute.xlu1 %735  ;;  %v1312_v46 = vsel %vm1278_vm9, %v1275_v15, %v734_v32 }
 0x195   : > { %v1314_v34 = vsel %vm1278_vm9, %v1277_v4, %v736_v0 }
 0x197   : > { %v864_v56 = vpop.permute.xlu0 %863 }
 0x198   : > { %v866_v16 = vpop.permute.xlu1 %865  ;;  %v1349_v42 = vsel %vm1315_vm10, %v1312_v46, %v864_v56 }
 0x199   : > { %v1351_v17 = vsel %vm1315_vm10, %v1314_v34, %v866_v16 }
 0x19b   : > { %v941_v25 = vpop.permute.xlu0 %940 }
 0x19c   : > { %v943_v53 = vpop.permute.xlu1 %942  ;;  %v1386_v27 = vsel %vm1352_vm11, %v1349_v42, %v941_v25 }
 0x19d   : > { %v1388_v47 = vsel %vm1352_vm11, %v1351_v17, %v943_v53 }
 0x19f   : > { %v994_v52 = vpop.permute.xlu0 %993 }
 0x1a0   : > { %v996_v9 = vpop.permute.xlu1 %995  ;;  %v3984_v60 = vpop.f32.mrb[4].mxu0  ;;  %v1423_v14 = vsel %vm1389_vm12, %v1386_v27, %v994_v52 }
 0x1a1   : > { %v2531_v41 = vpack.c.bf16 %v3984_v60, %v3984_v60  ;;  %v3990_v12 = vpop.f32.mrb[5].mxu0  ;;  %v4002_v29 = vmul.f32 %v3984_v60, %v3984_v60  ;;  %v1425_v63 = vsel %vm1389_vm12, %v1388_v47, %v996_v9 }
 0x1a2   : > { %v2529_v38 = vpack.c.bf16 %v3990_v12, %v3990_v12  ;;  %v3996_v18 = vpop.f32.mrb[6].mxu0  ;;  %v4018_v61 = vmul.f32 %v3990_v12, %v3990_v12 }
 0x1a3   : > { %1905 = vst.msk [vmem:[%s3914_s26 + $0x18] sm:$0xf] %vm1898_vm0, %v2531_v41  ;;  %v2532_v1 = vpack.c.bf16 %v3996_v18, %v3996_v18  ;;  %v2746_v33 = vpack.c.bf16 %v3996_v18, %v3984_v60  ;;  %v4010_v49 = vmul.f32 %v3996_v18, %v3996_v18  ;;  %v4012_v59 = vpop.f32.mrb[7].mxu0  ;;  %v1124_v55 = vpop.permute.xlu0 %1123 }
 0x1a4   : > { %1903 = vst.msk [vmem:[%s3914_s26 + $0x10] sm:$0xf] %vm1898_vm0, %v2529_v38  ;;  %v1126_v37 = vpop.permute.xlu1 %1125  ;;  %v2530_v40 = vpack.c.bf16 %v4012_v59, %v4012_v59  ;;  %v2742_v23 = vpack.c.bf16 %v4012_v59, %v3990_v12  ;;  %v4026_v44 = vmul.f32 %v4012_v59, %v4012_v59  ;;  %v1460_v54 = vsel %vm1426_vm13, %v1423_v14, %v1124_v55 }
 0x1a5   : > { %1906 = vst.msk [vmem:[%s3914_s26 + $0x1c] sm:$0xf] %vm1898_vm0, %v2532_v1  ;;  %v2784_v57 = vpack.c.bf16 %v4010_v49, %v4002_v29  ;;  %v1462_v51 = vsel %vm1426_vm13, %v1425_v63, %v1126_v37  ;;  %v1937_v14 = vlaneseq }
 0x1a6   : > { %1904 = vst.msk [vmem:[%s3914_s26 + $0x14] sm:$0xf] %vm1898_vm0, %v2530_v40  ;;  %v2780_v21 = vpack.c.bf16 %v4026_v44, %v4018_v61 }
 0x1a7   : > { %v1201_v22 = vpop.permute.xlu0 %1200  ;;  %v1938_v63 = vshrl.u32 %v1937_v14, 7 }
 0x1a8   : > { %v1203_v3 = vpop.permute.xlu1 %1202  ;;  %v1497_v2 = vsel %vm1463_vm14, %v1460_v54, %v1201_v22  ;;  %v1935_v22 = vld [vmem:[%s4330_s2] sm:$0x7] }
 0x1a9   : > { %v1499_v26 = vsel %vm1463_vm14, %v1462_v51, %v1203_v3  ;;  %2706 = vmatprep.mubr.msk.bf16.mxu0 %vm1536_vm15, %v1497_v2  ;;  %v1943_v54 = vsub.s32 1, %v1938_v63  ;;  %v1939_v51 = vsub.s32 0, %v1938_v63 }
 0x1aa   : > { %2707 = vmatmul.mubr.msk.bf16.gmra.mrb[32].mxu0 %vm1536_vm15, %v1499_v26 }
 0x1ab   : > { %v4146_v2 = vrot.slane %v1935_v22, %v1943_v54  ;;  %v1947_v54 = vsub.s32 2, %v1938_v63 }
 0x1ad   : > { %2017 = vmatprep.mubr.f32.mxu1 %v4146_v2  ;;  %v4165_v52 = vrot.slane %v1935_v22, %v1947_v54 }
 0x1c0   : > { %v4047_v48 = vpop.f32.mrb[8].mxu0 }
 0x1c1   : > { %v2535_v19 = vpack.c.bf16 %v4047_v48, %v4047_v48  ;;  %v4051_v36 = vpop.f32.mrb[9].mxu0  ;;  %v4061_v8 = vmul.f32 %v4047_v48, %v4047_v48 }
 0x1c2   : > { %v2533_v6 = vpack.c.bf16 %v4051_v36, %v4051_v36  ;;  %v4055_v7 = vpop.f32.mrb[10].mxu0  ;;  %v4077_v56 = vmul.f32 %v4051_v36, %v4051_v36 }
 0x1c3   : > { %1909 = vst.msk [vmem:[%s3914_s26 + $0x28] sm:$0xf] %vm1898_vm0, %v2535_v19  ;;  %v2536_v20 = vpack.c.bf16 %v4055_v7, %v4055_v7  ;;  %v2754_v58 = vpack.c.bf16 %v4055_v7, %v4047_v48  ;;  %v4069_v32 = vmul.f32 %v4055_v7, %v4055_v7  ;;  %v4071_v0 = vpop.f32.mrb[11].mxu0 }
 0x1c4   : > { %1907 = vst.msk [vmem:[%s3914_s26 + $0x20] sm:$0xf] %vm1898_vm0, %v2533_v6  ;;  %v2534_v16 = vpack.c.bf16 %v4071_v0, %v4071_v0  ;;  %v2750_v25 = vpack.c.bf16 %v4071_v0, %v4051_v36  ;;  %v4085_v53 = vmul.f32 %v4071_v0, %v4071_v0  ;;  %v4148_v6 = vrot.slane %v1935_v22, %v1939_v51 }
 0x1c5   : > { %1910 = vst.msk [vmem:[%s3914_s26 + $0x2c] sm:$0xf] %vm1898_vm0, %v2536_v20  ;;  %v4335_v28 = vpack.c.bf16 %v4069_v32, %v4061_v8 }
 0x1c6   : > { %1908 = vst.msk [vmem:[%s3914_s26 + $0x24] sm:$0xf] %vm1898_vm0, %v2534_v16  ;;  %v4334_v5 = vpack.c.bf16 %v4085_v53, %v4077_v56 }
 0x1e0   : > { %v4095_v43 = vpop.f32.mrb[12].mxu0 }
 0x1e1   : > { %v2539_v15 = vpack.c.bf16 %v4095_v43, %v4095_v43  ;;  %v4099_v9 = vpop.f32.mrb[13].mxu0  ;;  %v4109_v41 = vmul.f32 %v4095_v43, %v4095_v43 }
 0x1e2   : > { %v2537_v4 = vpack.c.bf16 %v4099_v9, %v4099_v9  ;;  %v4103_v46 = vpop.f32.mrb[14].mxu0  ;;  %v4125_v55 = vmul.f32 %v4099_v9, %v4099_v9 }
 0x1e3   : > { %1913 = vst.msk [vmem:[%s3914_s26 + $0x38] sm:$0xf] %vm1898_vm0, %v2539_v15  ;;  %v2540_v34 = vpack.c.bf16 %v4103_v46, %v4103_v46  ;;  %v2762_v42 = vpack.c.bf16 %v4103_v46, %v4095_v43  ;;  %v4117_v38 = vmul.f32 %v4103_v46, %v4103_v46  ;;  %v4119_v1 = vpop.f32.mrb[15].mxu0 }
 0x1e4   : > { %1911 = vst.msk [vmem:[%s3914_s26 + $0x30] sm:$0xf] %vm1898_vm0, %v2537_v4  ;;  %v2538_v37 = vpack.c.bf16 %v4119_v1, %v4119_v1  ;;  %v2758_v40 = vpack.c.bf16 %v4119_v1, %v4099_v9  ;;  %v4133_v17 = vmul.f32 %v4119_v1, %v4119_v1 }
 0x1e5   : > { %1914 = vst.msk [vmem:[%s3914_s26 + $0x3c] sm:$0xf] %vm1898_vm0, %v2540_v34  ;;  %v4337_v13 = vpack.c.bf16 %v4117_v38, %v4109_v41 }
 0x1e6   : > { %1912 = vst.msk [vmem:[%s3914_s26 + $0x34] sm:$0xf] %vm1898_vm0, %v2538_v37  ;;  %v4336_v31 = vpack.c.bf16 %v4133_v17, %v4125_v55 }
 0x200   : > { %v2692_v3 = vpop.f32.mrb[16].mxu0 }
 0x201   : > { %v2543_v26 = vpack.c.bf16 %v2692_v3, %v2692_v3  ;;  %v1675_v19 = vpop.f32.mrb[17].mxu0  ;;  %v4150_v20 = vmul.f32 %v2692_v3, %v2692_v3 }
 0x202   : > { %v2541_v16 = vpack.c.bf16 %v1675_v19, %v1675_v19  ;;  %v2693_v15 = vpop.f32.mrb[18].mxu0  ;;  %v4159_v51 = vmul.f32 %v1675_v19, %v1675_v19 }
 0x203   : > { %1917 = vst.msk [vmem:[%s3914_s26 + $0x48] sm:$0xf] %vm1898_vm0, %v2543_v26  ;;  %v2544_v4 = vpack.c.bf16 %v2693_v15, %v2693_v15  ;;  %v2736_v34 = vpack.c.bf16 %v2693_v15, %v2692_v3  ;;  %v4155_v37 = vmul.f32 %v2693_v15, %v2693_v15  ;;  %v1678_v14 = vpop.f32.mrb[19].mxu0 }
 0x204   : > { %1915 = vst.msk [vmem:[%s3914_s26 + $0x40] sm:$0xf] %vm1898_vm0, %v2541_v16  ;;  %v2542_v27 = vpack.c.bf16 %v1678_v14, %v1678_v14  ;;  %v4161_v47 = vmul.f32 %v1678_v14, %v1678_v14  ;;  %v2732_v30 = vpack.c.bf16 %v1678_v14, %v1675_v19 }
 0x205   : > { %1918 = vst.msk [vmem:[%s3914_s26 + $0x4c] sm:$0xf] %vm1898_vm0, %v2544_v4  ;;  %v2774_v3 = vpack.c.bf16 %v4155_v37, %v4150_v20 }
 0x206   : > { %1916 = vst.msk [vmem:[%s3914_s26 + $0x44] sm:$0xf] %vm1898_vm0, %v2542_v27  ;;  %2733 = vmatprep.subr.bf16.mxu1 %v2732_v30  ;;  %v2770_v63 = vpack.c.bf16 %v4161_v47, %v4159_v51 }
 0x207   : > { %2735 = vmatpush3.bf16.msra.mxu1 %v2734_v62 }
 0x208   : > { %2737 = vmatprep.subr.bf16.mxu1 %v2736_v34 }
 0x20b   : > { %2739 = vmatpush3.bf16.msra.mxu1 %v2738_v11 }
 0x220   : > { %v2696_v22 = vpop.f32.mrb[20].mxu0 }
 0x221   : > { %v2547_v26 = vpack.c.bf16 %v2696_v22, %v2696_v22  ;;  %v1691_v19 = vpop.f32.mrb[21].mxu0  ;;  %v4181_v16 = vmul.f32 %v2696_v22, %v2696_v22 }
 0x222   : > { %v2545_v27 = vpack.c.bf16 %v1691_v19, %v1691_v19  ;;  %v2697_v30 = vpop.f32.mrb[22].mxu0  ;;  %v4187_v39 = vmul.f32 %v1691_v19, %v1691_v19 }
 0x223   : > { %1921 = vst.msk [vmem:[%s3914_s26 + $0x58] sm:$0xf] %vm1898_vm0, %v2547_v26  ;;  %v2548_v15 = vpack.c.bf16 %v2697_v30, %v2697_v30  ;;  %v2744_v4 = vpack.c.bf16 %v2697_v30, %v2696_v22  ;;  %v4183_v35 = vmul.f32 %v2697_v30, %v2697_v30  ;;  %v1694_v10 = vpop.f32.mrb[23].mxu0 }
 0x224   : > { %1919 = vst.msk [vmem:[%s3914_s26 + $0x50] sm:$0xf] %vm1898_vm0, %v2545_v27  ;;  %v2546_v50 = vpack.c.bf16 %v1694_v10, %v1694_v10  ;;  %v2740_v11 = vpack.c.bf16 %v1694_v10, %v1691_v19  ;;  %v4189_v62 = vmul.f32 %v1694_v10, %v1694_v10 }
 0x225   : > { %1922 = vst.msk [vmem:[%s3914_s26 + $0x5c] sm:$0xf] %vm1898_vm0, %v2548_v15  ;;  %v2782_v34 = vpack.c.bf16 %v4183_v35, %v4181_v16 }
 0x226   : > { %1920 = vst.msk [vmem:[%s3914_s26 + $0x54] sm:$0xf] %vm1898_vm0, %v2546_v50  ;;  %2741 = vmatprep.subr.bf16.mxu1 %v2740_v11  ;;  %v2778_v14 = vpack.c.bf16 %v4189_v62, %v4187_v39 }
 0x227   : > { %2743 = vmatpush3.bf16.msra.mxu1 %v2742_v23 }
 0x228   : > { %2745 = vmatprep.subr.bf16.mxu1 %v2744_v4 }
 0x22b   : > { %2747 = vmatpush3.bf16.msra.mxu1 %v2746_v33 }
 0x240   : > { %v2700_v54 = vpop.f32.mrb[24].mxu0 }
 0x241   : > { %v2551_v22 = vpack.c.bf16 %v2700_v54, %v2700_v54  ;;  %v1707_v26 = vpop.f32.mrb[25].mxu0  ;;  %v4207_v30 = vmul.f32 %v2700_v54, %v2700_v54 }
 0x242   : > { %v2549_v19 = vpack.c.bf16 %v1707_v26, %v1707_v26  ;;  %v2701_v27 = vpop.f32.mrb[26].mxu0  ;;  %v4213_v60 = vmul.f32 %v1707_v26, %v1707_v26 }
 0x243   : > { %1925 = vst.msk [vmem:[%s3914_s26 + $0x68] sm:$0xf] %vm1898_vm0, %v2551_v22  ;;  %v2552_v15 = vpack.c.bf16 %v2701_v27, %v2701_v27  ;;  %v2752_v10 = vpack.c.bf16 %v2701_v27, %v2700_v54  ;;  %v4209_v12 = vmul.f32 %v2701_v27, %v2701_v27  ;;  %v1710_v59 = vpop.f32.mrb[27].mxu0 }
 0x244   : > { %1923 = vst.msk [vmem:[%s3914_s26 + $0x60] sm:$0xf] %vm1898_vm0, %v2549_v19  ;;  %v2550_v18 = vpack.c.bf16 %v1710_v59, %v1710_v59  ;;  %v2748_v33 = vpack.c.bf16 %v1710_v59, %v1707_v26  ;;  %v4215_v23 = vmul.f32 %v1710_v59, %v1710_v59 }
 0x245   : > { %1926 = vst.msk [vmem:[%s3914_s26 + $0x6c] sm:$0xf] %vm1898_vm0, %v2552_v15  ;;  %v2790_v4 = vpack.c.bf16 %v4209_v12, %v4207_v30 }
 0x246   : > { %1924 = vst.msk [vmem:[%s3914_s26 + $0x64] sm:$0xf] %vm1898_vm0, %v2550_v18  ;;  %2749 = vmatprep.subr.bf16.mxu1 %v2748_v33  ;;  %v2786_v50 = vpack.c.bf16 %v4215_v23, %v4213_v60  ;;  %v2914_v33 = vmov 0.0|0.0  }
 0x247   : > { %2751 = vmatpush3.bf16.msra.mxu1 %v2750_v25 }
 0x248   : > { %2753 = vmatprep.subr.bf16.mxu1 %v2752_v10 }
 0x24b   : > { %2755 = vmatpush3.bf16.msra.mxu1 %v2754_v58 }
 0x25d   : > { %v2704_v11 = vpop.f32.mrb[28].mxu0 }
 0x25e   : > { %v2555_v54 = vpack.c.bf16 %v2704_v11, %v2704_v11  ;;  %v1723_v22 = vpop.f32.mrb[29].mxu0  ;;  %v4233_v27 = vmul.f32 %v2704_v11, %v2704_v11 }
 0x25f   : > { %v2553_v26 = vpack.c.bf16 %v1723_v22, %v1723_v22  ;;  %v2705_v19 = vpop.f32.mrb[30].mxu0  ;;  %v2121_v25 = vmul.f32 %v1723_v22, %v1723_v22 }
 0x260   : > { %1929 = vst.msk [vmem:[%s3914_s26 + $0x78] sm:$0xf] %vm1898_vm0, %v2555_v54  ;;  %v2556_v15 = vpack.c.bf16 %v2705_v19, %v2705_v19  ;;  %v2760_v59 = vpack.c.bf16 %v2705_v19, %v2704_v11  ;;  %v2124_v36 = vmul.f32 %v2705_v19, %v2705_v19  ;;  %v1726_v0 = vpop.f32.mrb[31].mxu0  ;;  %v2916_v11 = vmov 0.0  }
 0x261   : > { %1927 = vst.msk [vmem:[%s3914_s26 + $0x70] sm:$0xf] %vm1898_vm0, %v2553_v26  ;;  %v2554_v48 = vpack.c.bf16 %v1726_v0, %v1726_v0  ;;  %v2756_v7 = vpack.c.bf16 %v1726_v0, %v1723_v22  ;;  %v2122_v58 = vmul.f32 %v1726_v0, %v1726_v0 }
 0x262   : > { %1930 = vst.msk [vmem:[%s3914_s26 + $0x7c] sm:$0xf] %vm1898_vm0, %v2556_v15  ;;  %v2798_v10 = vpack.c.bf16 %v2124_v36, %v4233_v27 }
 0x263   : > { %1928 = vst.msk [vmem:[%s3914_s26 + $0x74] sm:$0xf] %vm1898_vm0, %v2554_v48  ;;  %2757 = vmatprep.subr.bf16.mxu1 %v2756_v7  ;;  %v2794_v18 = vpack.c.bf16 %v2122_v58, %v2121_v25 }
 0x264   : > { %2759 = vmatpush3.bf16.msra.mxu1 %v2758_v40  ;;  %2274 = vst.msk [vmem:[%s274_s6] sm:$0x1] %vm2273_vm2, %v2916_v11  ;;  %2275 = vst.msk [vmem:[%s277_s9] sm:$0x1] %vm2273_vm2, %v2916_v11 }
 0x265   : > { %2761 = vmatprep.subr.bf16.mxu1 %v2760_v59 }
 0x268   : > { %2763 = vmatpush3.bf16.msra.mxu1 %v2762_v42 }
 0x269   : > { %2764 = vmatprep.subr.bf16.mxu1 %v2914_v33 }
 0x26b   : > { %2018 = vmatmul.mubr.f32.vlgmr.msra.gmra.mrb[0].mxu1 %v4148_v6  ;;  %v2276_v61 = vld [vmem:[%s274_s6] sm:$0x1] }
 0x26c   : > { %2718 = vmatprep.mubr.msk.f32.mxu1 %vm2915_vm1, %v2916_v11 }
 0x27d   : > { %v2708_v54 = vpop.f32.mrb[32].mxu0 }
 0x27e   : > { %v2559_v22 = vpack.c.bf16 %v2708_v54, %v2708_v54  ;;  %v1739_v26 = vpop.f32.mrb[33].mxu0  ;;  %v2127_v43 = vmul.f32 %v2708_v54, %v2708_v54 }
 0x27f   : > { %v2557_v9 = vpack.c.bf16 %v1739_v26, %v1739_v26  ;;  %v2709_v1 = vpop.f32.mrb[34].mxu0  ;;  %v2125_v27 = vmul.f32 %v1739_v26, %v1739_v26 }
 0x280   : > { %1933 = vst.msk [vmem:[%s3914_s26 + $0x88] sm:$0xf] %vm1898_vm0, %v2559_v22  ;;  %v2560_v46 = vpack.c.bf16 %v2709_v1, %v2709_v1  ;;  %v2768_v42 = vpack.c.bf16 %v2709_v1, %v2708_v54  ;;  %v2128_v40 = vmul.f32 %v2709_v1, %v2709_v1  ;;  %v1742_v19 = vpop.f32.mrb[35].mxu0 }
 0x281   : > { %1931 = vst.msk [vmem:[%s3914_s26 + $0x80] sm:$0xf] %vm1898_vm0, %v2557_v9  ;;  %v2558_v15 = vpack.c.bf16 %v1742_v19, %v1742_v19  ;;  %v2765_v59 = vpack.c.bf16 %v1742_v19, %v1739_v26  ;;  %v2126_v36 = vmul.f32 %v1742_v19, %v1742_v19 }
 0x282   : > { %1934 = vst.msk [vmem:[%s3914_s26 + $0x8c] sm:$0xf] %vm1898_vm0, %v2560_v46  ;;  %v2806_v0 = vpack.c.bf16 %v2128_v40, %v2127_v43 }
 0x283   : > { %1932 = vst.msk [vmem:[%s3914_s26 + $0x84] sm:$0xf] %vm1898_vm0, %v2558_v15  ;;  %v2803_v25 = vpack.c.bf16 %v2126_v36, %v2125_v27  ;;  %2766 = vmatpush3.bf16.msra.mxu1 %v2765_v59 }
 0x284   : > { %2767 = vmatprep.subr.bf16.mxu1 %v2914_v33 }
 0x287   : > { %2769 = vmatpush3.bf16.msra.mxu1 %v2768_v42 }
 0x288   : > { %2771 = vmatprep.subr.bf16.mxu1 %v2770_v63 }
 0x28a   : > { %2719 = vmatmul.mubr.msk.f32.vlgmr.msra.gmra.mrb[2].mxu1 %vm1315_vm10, %v4165_v52 }
 0x28b   : > { %2773 = vmatpush3.bf16.msra.mxu1 %v2772_v24  ;;  %2193 = vmatprep.mubr.f32.mxu1 %v4146_v2 }
 0x28c   : > { %2775 = vmatprep.subr.bf16.mxu1 %v2774_v3 }
 0x28f   : > { %2777 = vmatpush3.bf16.msra.mxu1 %v2776_v45 }
 0x290   : > { %2779 = vmatprep.subr.bf16.mxu1 %v2778_v14 }
 0x293   : > { %2781 = vmatpush3.bf16.msra.mxu1 %v2780_v21 }
 0x294   : > { %2783 = vmatprep.subr.bf16.mxu1 %v2782_v34 }
 0x297   : > { %2785 = vmatpush3.bf16.msra.mxu1 %v2784_v57 }
 0x298   : > { %2787 = vmatprep.subr.bf16.mxu1 %v2786_v50 }
 0x29b   : > { %2789 = vmatpush3.bf16.msra.mxu1 %v4334_v5 }
 0x29c   : > { %2791 = vmatprep.subr.bf16.mxu1 %v2790_v4 }
 0x29f   : > { %2793 = vmatpush3.bf16.msra.mxu1 %v4335_v28 }
 0x2a0   : > { %2795 = vmatprep.subr.bf16.mxu1 %v2794_v18 }
 0x2a3   : > { %2797 = vmatpush3.bf16.msra.mxu1 %v4336_v31 }
 0x2a4   : > { %2799 = vmatprep.subr.bf16.mxu1 %v2798_v10 }
 0x2a7   : > { %2801 = vmatpush3.bf16.msra.mxu1 %v4337_v13 }
 0x2a8   : > { %2802 = vmatprep.subr.bf16.mxu1 %v2914_v33 }
 0x2aa   : > { %2194 = vmatmul.mubr.f32.vlgmr.msra.gmra.mrb[4].mxu1 %v4148_v6 }
 0x2ab   : > { %2804 = vmatpush3.bf16.msra.mxu1 %v2803_v25  ;;  %2729 = vmatprep.mubr.msk.f32.mxu1 %vm2915_vm1, %v2916_v11 }
 0x2ac   : > { %2805 = vmatprep.subr.bf16.mxu1 %v2914_v33 }
 0x2af   : > { %2807 = vmatpush3.bf16.msra.mxu1 %v2806_v0 }
 0x2b2   : > { %2730 = vmatmul.mubr.msk.f32.vlgmr.msra.gmra.mrb[6].mxu1 %vm1315_vm10, %v4165_v52  ;;  %v2280_v52 = vld [vmem:[%s277_s9] sm:$0x1] }
 0x33e   : > { %v2616_v45 = vpop.f32.mrb[0].mxu1 }
 0x33f   : > { %v2617_v24 = vpop.f32.mrb[1].mxu1 }
 0x340   : > { %v2618_v29 = vadd.f32 %v2617_v24, %v2616_v45 }
 0x35d   : > { %v2089_v49 = vpop.f32.mrb[2].mxu1 }
 0x35e   : > { %v2090_v44 = vadd.f32 %v2618_v29, %v2089_v49  ;;  %v2720_v57 = vpop.f32.mrb[3].mxu1 }
 0x360   : > { %v2277_v21 = vadd.f32 %v2276_v61, %v2090_v44 }
 0x362   : > { %2279 = vst.msk [vmem:[%s274_s6] sm:$0x1] %vm2273_vm2, %v2277_v21 }
 0x37d   : > { %v2656_v8 = vpop.f32.mrb[4].mxu1 }
 0x37e   : > { %v2657_v32 = vpop.f32.mrb[5].mxu1 }
 0x37f   : > { %v2658_v56 = vadd.f32 %v2657_v32, %v2656_v8 }
 0x385   : > { %v2265_v53 = vpop.f32.mrb[6].mxu1 }
 0x386   : > { %v2266_v41 = vadd.f32 %v2658_v56, %v2265_v53  ;;  %v2731_v38 = vpop.f32.mrb[7].mxu1 }
 0x388   : > { %v2281_v55 = vadd.f32 %v2280_v52, %v2266_v41 }
 0x38a   : > { %2282 = vst.msk [vmem:[%s277_s9] sm:$0x1] %vm2273_vm2, %v2281_v55 }
 0x38b PF: > { %s16_s20 = sadd.s32 1, %s2904_s20   ;;  %s4338_s18 = smov %s2900_s19 }
 0x38c   : > { %p13_p5 = scmp.ge.s32.totalorder %s16_s20, 4   ;;  %s4339_s19 = smov %s4341_s21 }
 0x38e   :  { %15 = sbr.rel (!%p13_p5) target bundleno = 2 (0x2), region = 90 }

</bundles_post_ra>
